<compile_context>
chip_gen: v6e
topology: v6e:2x2x1
jax: 0.10.0
libtpu: 0.0.40
codegen_flags: <defaults>
</compile_context>

<pallas_src>
import functools
import math

import jax
import jax.numpy as jnp
from jax.experimental import pallas as pl
from jax.experimental.pallas import tpu as pltpu


# ----------------------------- config (small) --------------------------------
class SiglipVisionConfig:
    def __init__(self):
        self.hidden_size = 32
        self.intermediate_size = 64
        self.num_hidden_layers = 2
        self.num_attention_layers = 2       # encoder depth (mirrors the module)
        self.num_attention_heads = 4
        self.num_channels = 3
        self.image_size = 32
        self.patch_size = 8
        self.layer_norm_eps = 1e-6
        self.attention_dropout = 0.0        # eval mode: dropout is identity


CFG = SiglipVisionConfig()
HEAD_DIM = CFG.hidden_size // CFG.num_attention_heads
NUM_PATCHES = (CFG.image_size // CFG.patch_size) ** 2


# ------------------------------ kernel helpers --------------------------------
def _layernorm(x, w, b, eps):
    mu = jnp.mean(x, axis=-1, keepdims=True)
    var = jnp.mean(jnp.square(x - mu), axis=-1, keepdims=True)
    return (x - mu) * jax.lax.rsqrt(var + eps) * w + b


def _gelu_tanh(x):
    c = math.sqrt(2.0 / math.pi)
    return 0.5 * x * (1.0 + jnp.tanh(c * (x + 0.044715 * x * x * x)))


# ------------------------------ fused Pallas kernel ----------------------------
def siglip_fused_kernel(
    patches_ref, pw_ref, pb_ref, pos_ref,
    ln1w_ref, ln1b_ref,
    wq_ref, bq_ref, wk_ref, bk_ref, wv_ref, bv_ref, wo_ref, bo_ref,
    ln2w_ref, ln2b_ref, w1_ref, b1_ref, w2_ref, b2_ref,
    postw_ref, postb_ref,
    out_ref,
    *, num_layers, num_heads, eps):
    f32 = jnp.float32
    bf16 = jnp.bfloat16

    # ---- patch embedding (stride == kernel "valid" conv == per-patch matmul) ----
    # patches already bf16; accumulate in f32, add bias + positional embedding (f32).
    x = jnp.dot(patches_ref[...], pw_ref[...], preferred_element_type=f32)
    x = x + pb_ref[...] + pos_ref[...]                          # (S, D) f32

    for l in range(num_layers):                                 # static layer loop
        # ---- LayerNorm1 + multi-head self-attention + residual ----
        h = _layernorm(x, ln1w_ref[l], ln1b_ref[l], eps)        # f32
        hb = h.astype(bf16)

        attn_acc = None
        for hi in range(num_heads):                             # static head loop
            # Per-head projections straight from pre-sliced weight slabs.
            # 1/sqrt(head_dim) is already folded into wq/bq offline.
            q = jnp.dot(hb, wq_ref[l, hi], preferred_element_type=f32) + bq_ref[l, hi]
            k = jnp.dot(hb, wk_ref[l, hi], preferred_element_type=f32) + bk_ref[l, hi]
            v = jnp.dot(hb, wv_ref[l, hi], preferred_element_type=f32) + bv_ref[l, hi]

            # scores = q @ k^T (NT dot_general, no explicit transpose)
            s = jax.lax.dot_general(
                q.astype(bf16), k.astype(bf16),
                dimension_numbers=(((1,), (1,)), ((), ())),
                preferred_element_type=f32)                     # (S, S) f32
            s = s - jnp.max(s, axis=-1, keepdims=True)
            p = jnp.exp(s)
            p = p * pl.reciprocal(jnp.sum(p, axis=-1, keepdims=True), approx=True)

            o = jnp.dot(p.astype(bf16), v.astype(bf16),
                        preferred_element_type=f32)             # (S, hd)
            # Head concat folded into the output projection: accumulate o_h @ Wo_h.
            part = jnp.dot(o.astype(bf16), wo_ref[l, hi],
                           preferred_element_type=f32)          # (S, D)
            attn_acc = part if attn_acc is None else attn_acc + part

        x = x + attn_acc + bo_ref[l]

        # ---- LayerNorm2 + MLP (tanh-GELU) + residual ----
        h = _layernorm(x, ln2w_ref[l], ln2b_ref[l], eps)
        h1 = jnp.dot(h.astype(bf16), w1_ref[l], preferred_element_type=f32) + b1_ref[l]
        h1 = _gelu_tanh(h1)
        h2 = jnp.dot(h1.astype(bf16), w2_ref[l], preferred_element_type=f32) + b2_ref[l]
        x = x + h2

    # ---- final (post) LayerNorm ----
    out_ref[...] = _layernorm(x, postw_ref[...], postb_ref[...], eps)


# ------------------------------ glue (plain JAX) -------------------------------
def extract_patches(pixel_values, patch_size):
    # NCHW -> [B, N, C*P*P]; flatten order (C, Ph, Pw) matches nn.Conv2d's weight
    # [D, C, Ph, Pw] flattened to [D, C*P*P]  (stride==kernel conv == matmul).
    B, C, H, W = pixel_values.shape
    P = patch_size
    x = pixel_values.reshape(B, C, H // P, P, W // P, P)
    x = jnp.transpose(x, (0, 2, 4, 1, 3, 5))          # B, H/P, W/P, C, P, P
    return x.reshape(B, (H // P) * (W // P), C * P * P)


@jax.jit
def siglip_vision_forward(pixel_values, kp):
    B = pixel_values.shape[0]
    D = CFG.hidden_size
    S = NUM_PATCHES
    K = CFG.num_channels * CFG.patch_size ** 2
    L = CFG.num_attention_layers
    H = CFG.num_attention_heads

    # Layout plumbing (outside the kernel): per-patch rows, bf16 operands.
    patches = extract_patches(pixel_values, CFG.patch_size).reshape(B * S, K)
    patches = patches.astype(jnp.bfloat16)

    kern = functools.partial(
        siglip_fused_kernel,
        num_layers=L, num_heads=H, eps=CFG.layer_norm_eps)

    def const_spec(a):
        nd = a.ndim
        return pl.BlockSpec(a.shape, lambda b, _nd=nd: (0,) * _nd)

    weight_args = (
        kp["patch_w"], kp["patch_b"], kp["pos"],
        kp["ln1w"], kp["ln1b"],
        kp["wq"], kp["bq"], kp["wk"], kp["bk"], kp["wv"], kp["bv"],
        kp["wo"], kp["bo"],
        kp["ln2w"], kp["ln2b"],
        kp["w1"], kp["b1"], kp["w2"], kp["b2"],
        kp["post_ln_w"], kp["post_ln_b"],
    )

    out = pl.pallas_call(
        kern,
        out_shape=jax.ShapeDtypeStruct((B * S, D), jnp.float32),
        grid=(B,),
        in_specs=[pl.BlockSpec((S, K), lambda b: (b, 0))]      # per-batch patch block
                 + [const_spec(a) for a in weight_args],        # weights stay resident
        out_specs=pl.BlockSpec((S, D), lambda b: (b, 0)),
        compiler_params=pltpu.CompilerParams(
            dimension_semantics=("parallel",)),                 # megacore on v7x
    )(patches, *weight_args)
    return out.reshape(B, S, D)


# ------------------------------ parameter init ---------------------------------
def init_params(key):
    D, I = CFG.hidden_size, CFG.intermediate_size
    K = CFG.num_channels * CFG.patch_size ** 2
    L = CFG.num_attention_layers
    keys = iter(jax.random.split(key, 64))

    def w(shape, scale=0.05):
        v = scale * jax.random.normal(next(keys), shape, dtype=jnp.float32)
        # Round-trip through bf16 so the kernel's bf16 weights and the f32 reference
        # use bit-identical parameter values (kernel weights are stored as bf16).
        return v.astype(jnp.bfloat16).astype(jnp.float32)

    return {
        "patch_w": w((K, D)),                       # conv weight, flattened & transposed
        "patch_b": w((1, D), 0.02),
        "pos": w((NUM_PATCHES, D), 0.02),           # nn.Embedding table (all positions)
        "post_ln_w": jnp.ones((1, D), jnp.float32),
        "post_ln_b": jnp.zeros((1, D), jnp.float32),
        # per-layer weights, stacked with a leading layer axis, stored (in, out)
        "ln1w": jnp.ones((L, 1, D), jnp.float32),
        "ln1b": jnp.zeros((L, 1, D), jnp.float32),
        "wq": w((L, D, D)), "bq": w((L, 1, D), 0.02),
        "wk": w((L, D, D)), "bk": w((L, 1, D), 0.02),
        "wv": w((L, D, D)), "bv": w((L, 1, D), 0.02),
        "wo": w((L, D, D)), "bo": w((L, 1, D), 0.02),
        "ln2w": jnp.ones((L, 1, D), jnp.float32),
        "ln2b": jnp.zeros((L, 1, D), jnp.float32),
        "w1": w((L, D, I)), "b1": w((L, 1, I), 0.02),
        "w2": w((L, I, D)), "b2": w((L, 1, D), 0.02),
    }


def prep_kernel_params(params):
    """One-time offline transform of model params into the kernel layout:
       - per-head Q/K/V weight slabs (L, H, D, hd) and output-proj slabs (L, H, hd, D)
         so heads come straight out of dot_generals (no in-kernel relayout),
       - 1/sqrt(head_dim) folded into the Q projection weight/bias,
       - matmul weights stored bf16 (MXU operands); biases / LN / pos stay f32."""
    D = CFG.hidden_size
    Hh, hd = CFG.num_attention_heads, HEAD_DIM
    L = CFG.num_attention_layers
    scale = hd ** (-0.5)
    bf = jnp.bfloat16

    def per_head_in(wmat):   # (L, D, D) -> (L, H, D, hd)
        return wmat.reshape(L, D, Hh, hd).transpose(0, 2, 1, 3)

    def per_head_bias(b):    # (L, 1, D) -> (L, H, 1, hd)
        return b.reshape(L, 1, Hh, hd).transpose(0, 2, 1, 3)

    return {
        "patch_w": params["patch_w"].astype(bf),
        "patch_b": params["patch_b"],
        "pos": params["pos"],
        "ln1w": params["ln1w"], "ln1b": params["ln1b"],
        "wq": (per_head_in(params["wq"]) * scale).astype(bf),
        "bq": per_head_bias(params["bq"]) * scale,
        "wk": per_head_in(params["wk"]).astype(bf),
        "bk": per_head_bias(params["bk"]),
        "wv": per_head_in(params["wv"]).astype(bf),
        "bv": per_head_bias(params["bv"]),
        "wo": params["wo"].reshape(L, Hh, hd, D).astype(bf),
        "bo": params["bo"],
        "ln2w": params["ln2w"], "ln2b": params["ln2b"],
        "w1": params["w1"].astype(bf), "b1": params["b1"],
        "w2": params["w2"].astype(bf), "b2": params["b2"],
        "post_ln_w": params["post_ln_w"], "post_ln_b": params["post_ln_b"],
    }


# ------------------------------ pure-JAX reference ------------------------------
def _ref_ln(x, wgt, b, eps):
    mu = x.mean(-1, keepdims=True)
    var = ((x - mu) ** 2).mean(-1, keepdims=True)
    return (x - mu) / jnp.sqrt(var + eps) * wgt + b


def reference_forward(pixel_values, params):
    Hh, hd, D = CFG.num_attention_heads, HEAD_DIM, CFG.hidden_size
    eps = CFG.layer_norm_eps
    patches = extract_patches(pixel_values, CFG.patch_size)      # (B, N, K)
    x = patches @ params["patch_w"] + params["patch_b"] + params["pos"]
    B, S, _ = x.shape
    for l in range(CFG.num_attention_layers):
        r = x
        h = _ref_ln(x, params["ln1w"][l], params["ln1b"][l], eps)
        q = h @ params["wq"][l] + params["bq"][l]
        k = h @ params["wk"][l] + params["bk"][l]
        v = h @ params["wv"][l] + params["bv"][l]
        q = q.reshape(B, S, Hh, hd).transpose(0, 2, 1, 3)
        k = k.reshape(B, S, Hh, hd).transpose(0, 2, 1, 3)
        v = v.reshape(B, S, Hh, hd).transpose(0, 2, 1, 3)
        s = jnp.einsum("bhqd,bhkd->bhqk", q, k) * hd ** (-0.5)
        a = jax.nn.softmax(s.astype(jnp.float32), axis=-1)
        o = jnp.einsum("bhqk,bhkd->bhqd", a, v).transpose(0, 2, 1, 3).reshape(B, S, D)
        x = r + (o @ params["wo"][l] + params["bo"][l])
        r = x
        h = _ref_ln(x, params["ln2w"][l], params["ln2b"][l], eps)
        h = jax.nn.gelu(h @ params["w1"][l] + params["b1"][l], approximate=True)
        x = r + (h @ params["w2"][l] + params["b2"][l])
    return _ref_ln(x, params["post_ln_w"], params["post_ln_b"], eps)


# --------------------------------- main -----------------------------------------
if __name__ == "__main__":
    key = jax.random.PRNGKey(0)
    k_params, k_pix = jax.random.split(key)
    params = init_params(k_params)
    kparams = prep_kernel_params(params)     # one-time init transform, not per-call

    batch = 2
    pixel_values = jax.random.normal(
        k_pix, (batch, CFG.num_channels, CFG.image_size, CFG.image_size),
        dtype=jnp.float32)

    out = siglip_vision_forward(pixel_values, kparams)
    out = jax.block_until_ready(out)

    # Reference checker runs at full f32 precision (checker-only; the kernel path
    # deliberately uses bf16 matmul operands per the perf review).
    with jax.default_matmul_precision("highest"):
        ref = reference_forward(pixel_values, params)

    assert out.shape == (batch, NUM_PATCHES, CFG.hidden_size)
    assert bool(jnp.all(jnp.isfinite(out)))
    assert bool(jnp.allclose(out, ref, atol=1e-2, rtol=1e-2)), "mismatch vs JAX reference"

    print("KERNEL_OK")
</pallas_src>

<mosaic_0001>
module attributes {stable_mosaic.version = 11 : i64} {
  func.func @siglip_fused_kernel(%arg0: i32, %arg1: memref<16x192xbf16, #tpu.memory_space<vmem>>, %arg2: memref<192x32xbf16, #tpu.memory_space<vmem>>, %arg3: memref<1x32xf32, #tpu.memory_space<vmem>>, %arg4: memref<16x32xf32, #tpu.memory_space<vmem>>, %arg5: memref<2x1x32xf32, #tpu.memory_space<vmem>>, %arg6: memref<2x1x32xf32, #tpu.memory_space<vmem>>, %arg7: memref<2x4x32x8xbf16, #tpu.memory_space<vmem>>, %arg8: memref<2x4x1x8xf32, #tpu.memory_space<vmem>>, %arg9: memref<2x4x32x8xbf16, #tpu.memory_space<vmem>>, %arg10: memref<2x4x1x8xf32, #tpu.memory_space<vmem>>, %arg11: memref<2x4x32x8xbf16, #tpu.memory_space<vmem>>, %arg12: memref<2x4x1x8xf32, #tpu.memory_space<vmem>>, %arg13: memref<2x4x8x32xbf16, #tpu.memory_space<vmem>>, %arg14: memref<2x1x32xf32, #tpu.memory_space<vmem>>, %arg15: memref<2x1x32xf32, #tpu.memory_space<vmem>>, %arg16: memref<2x1x32xf32, #tpu.memory_space<vmem>>, %arg17: memref<2x32x64xbf16, #tpu.memory_space<vmem>>, %arg18: memref<2x1x64xf32, #tpu.memory_space<vmem>>, %arg19: memref<2x64x32xbf16, #tpu.memory_space<vmem>>, %arg20: memref<2x1x32xf32, #tpu.memory_space<vmem>>, %arg21: memref<1x32xf32, #tpu.memory_space<vmem>>, %arg22: memref<1x32xf32, #tpu.memory_space<vmem>>, %arg23: memref<16x32xf32, #tpu.memory_space<vmem>>) attributes {dimension_semantics = [#tpu.dimension_semantics<parallel>], iteration_bounds = array<i64: 2>, scalar_prefetch = 0 : i64, scratch_operands = 0 : i64, tpu.core_type = #tpu.core_type<tc>, window_params = [{transform_indices = @transform_0, window_bounds = array<i64: 16, 192>}, {pipeline_mode = #tpu.pipeline_mode<synchronous>, transform_indices = @transform_1, window_bounds = array<i64: 192, 32>}, {pipeline_mode = #tpu.pipeline_mode<synchronous>, transform_indices = @transform_2, window_bounds = array<i64: 1, 32>}, {pipeline_mode = #tpu.pipeline_mode<synchronous>, transform_indices = @transform_3, window_bounds = array<i64: 16, 32>}, {pipeline_mode = #tpu.pipeline_mode<synchronous>, transform_indices = @transform_4, window_bounds = array<i64: 2, 1, 32>}, {pipeline_mode = #tpu.pipeline_mode<synchronous>, transform_indices = @transform_5, window_bounds = array<i64: 2, 1, 32>}, {pipeline_mode = #tpu.pipeline_mode<synchronous>, transform_indices = @transform_6, window_bounds = array<i64: 2, 4, 32, 8>}, {pipeline_mode = #tpu.pipeline_mode<synchronous>, transform_indices = @transform_7, window_bounds = array<i64: 2, 4, 1, 8>}, {pipeline_mode = #tpu.pipeline_mode<synchronous>, transform_indices = @transform_8, window_bounds = array<i64: 2, 4, 32, 8>}, {pipeline_mode = #tpu.pipeline_mode<synchronous>, transform_indices = @transform_9, window_bounds = array<i64: 2, 4, 1, 8>}, {pipeline_mode = #tpu.pipeline_mode<synchronous>, transform_indices = @transform_10, window_bounds = array<i64: 2, 4, 32, 8>}, {pipeline_mode = #tpu.pipeline_mode<synchronous>, transform_indices = @transform_11, window_bounds = array<i64: 2, 4, 1, 8>}, {pipeline_mode = #tpu.pipeline_mode<synchronous>, transform_indices = @transform_12, window_bounds = array<i64: 2, 4, 8, 32>}, {pipeline_mode = #tpu.pipeline_mode<synchronous>, transform_indices = @transform_13, window_bounds = array<i64: 2, 1, 32>}, {pipeline_mode = #tpu.pipeline_mode<synchronous>, transform_indices = @transform_14, window_bounds = array<i64: 2, 1, 32>}, {pipeline_mode = #tpu.pipeline_mode<synchronous>, transform_indices = @transform_15, window_bounds = array<i64: 2, 1, 32>}, {pipeline_mode = #tpu.pipeline_mode<synchronous>, transform_indices = @transform_16, window_bounds = array<i64: 2, 32, 64>}, {pipeline_mode = #tpu.pipeline_mode<synchronous>, transform_indices = @transform_17, window_bounds = array<i64: 2, 1, 64>}, {pipeline_mode = #tpu.pipeline_mode<synchronous>, transform_indices = @transform_18, window_bounds = array<i64: 2, 64, 32>}, {pipeline_mode = #tpu.pipeline_mode<synchronous>, transform_indices = @transform_19, window_bounds = array<i64: 2, 1, 32>}, {pipeline_mode = #tpu.pipeline_mode<synchronous>, transform_indices = @transform_20, window_bounds = array<i64: 1, 32>}, {pipeline_mode = #tpu.pipeline_mode<synchronous>, transform_indices = @transform_21, window_bounds = array<i64: 1, 32>}, {transform_indices = @transform_22, window_bounds = array<i64: 16, 32>}]} {
    %c0 = arith.constant 0 : index
    %c0_0 = arith.constant 0 : index
    %0 = vector.load %arg1[%c0, %c0_0] : memref<16x192xbf16, #tpu.memory_space<vmem>>, vector<16x192xbf16>
    %c0_1 = arith.constant 0 : index
    %c0_2 = arith.constant 0 : index
    %1 = vector.load %arg2[%c0_1, %c0_2] : memref<192x32xbf16, #tpu.memory_space<vmem>>, vector<192x32xbf16>
    %cst = arith.constant dense<0.000000e+00> : vector<16x32xf32>
    %2 = tpu.matmul %0, %1, %cst {dimension_numbers = #tpu.dot_dimension_numbers<[1], [0], [0], [1], [0, 0, 1, 1], [], []>} : vector<16x192xbf16>, vector<192x32xbf16>, vector<16x32xf32> -> vector<16x32xf32>
    %c0_3 = arith.constant 0 : index
    %c0_4 = arith.constant 0 : index
    %3 = vector.load %arg3[%c0_3, %c0_4] : memref<1x32xf32, #tpu.memory_space<vmem>>, vector<1x32xf32>
    %4 = vector.broadcast %3 : vector<1x32xf32> to vector<16x32xf32>
    %5 = arith.addf %2, %4 : vector<16x32xf32>
    %c0_5 = arith.constant 0 : index
    %c0_6 = arith.constant 0 : index
    %6 = vector.load %arg4[%c0_5, %c0_6] : memref<16x32xf32, #tpu.memory_space<vmem>>, vector<16x32xf32>
    %7 = arith.addf %5, %6 : vector<16x32xf32>
    %c0_7 = arith.constant 0 : index
    %c0_8 = arith.constant 0 : index
    %c0_9 = arith.constant 0 : index
    %8 = vector.load %arg5[%c0_7, %c0_8, %c0_9] : memref<2x1x32xf32, #tpu.memory_space<vmem>>, vector<1x1x32xf32>
    %9 = vector.shape_cast %8 : vector<1x1x32xf32> to vector<1x32xf32>
    %c0_10 = arith.constant 0 : index
    %c0_11 = arith.constant 0 : index
    %c0_12 = arith.constant 0 : index
    %10 = vector.load %arg6[%c0_10, %c0_11, %c0_12] : memref<2x1x32xf32, #tpu.memory_space<vmem>>, vector<1x1x32xf32>
    %11 = vector.shape_cast %10 : vector<1x1x32xf32> to vector<1x32xf32>
    %cst_13 = arith.constant dense<0.000000e+00> : vector<16xf32>
    %12 = vector.multi_reduction <add>, %7, %cst_13 [1] : vector<16x32xf32> to vector<16xf32>
    %13 = vector.shape_cast %12 : vector<16xf32> to vector<16x1xf32>
    %cst_14 = arith.constant 3.200000e+01 : f32
    %14 = vector.broadcast %cst_14 : f32 to vector<16x1xf32>
    %15 = arith.divf %13, %14 : vector<16x1xf32>
    %16 = vector.broadcast %15 : vector<16x1xf32> to vector<16x32xf32>
    %17 = arith.subf %7, %16 : vector<16x32xf32>
    %18 = arith.mulf %17, %17 : vector<16x32xf32>
    %cst_15 = arith.constant dense<0.000000e+00> : vector<16xf32>
    %19 = vector.multi_reduction <add>, %18, %cst_15 [1] : vector<16x32xf32> to vector<16xf32>
    %20 = vector.shape_cast %19 : vector<16xf32> to vector<16x1xf32>
    %cst_16 = arith.constant 3.200000e+01 : f32
    %21 = vector.broadcast %cst_16 : f32 to vector<16x1xf32>
    %22 = arith.divf %20, %21 : vector<16x1xf32>
    %23 = vector.broadcast %15 : vector<16x1xf32> to vector<16x32xf32>
    %24 = arith.subf %7, %23 : vector<16x32xf32>
    %cst_17 = arith.constant 9.99999997E-7 : f32
    %25 = vector.broadcast %cst_17 : f32 to vector<16x1xf32>
    %26 = arith.addf %22, %25 : vector<16x1xf32>
    %27 = math.rsqrt %26 : vector<16x1xf32>
    %28 = vector.broadcast %27 : vector<16x1xf32> to vector<16x32xf32>
    %29 = arith.mulf %24, %28 : vector<16x32xf32>
    %30 = vector.broadcast %9 : vector<1x32xf32> to vector<16x32xf32>
    %31 = arith.mulf %29, %30 : vector<16x32xf32>
    %32 = vector.broadcast %11 : vector<1x32xf32> to vector<16x32xf32>
    %33 = arith.addf %31, %32 : vector<16x32xf32>
    %34 = arith.truncf %33 : vector<16x32xf32> to vector<16x32xbf16>
    %c0_18 = arith.constant 0 : index
    %c0_19 = arith.constant 0 : index
    %c0_20 = arith.constant 0 : index
    %c0_21 = arith.constant 0 : index
    %35 = vector.load %arg7[%c0_18, %c0_19, %c0_20, %c0_21] : memref<2x4x32x8xbf16, #tpu.memory_space<vmem>>, vector<1x1x32x8xbf16>
    %36 = vector.shape_cast %35 : vector<1x1x32x8xbf16> to vector<32x8xbf16>
    %cst_22 = arith.constant dense<0.000000e+00> : vector<16x8xf32>
    %37 = tpu.matmul %34, %36, %cst_22 {dimension_numbers = #tpu.dot_dimension_numbers<[1], [0], [0], [1], [0, 0, 1, 1], [], []>} : vector<16x32xbf16>, vector<32x8xbf16>, vector<16x8xf32> -> vector<16x8xf32>
    %c0_23 = arith.constant 0 : index
    %c0_24 = arith.constant 0 : index
    %c0_25 = arith.constant 0 : index
    %c0_26 = arith.constant 0 : index
    %38 = vector.load %arg8[%c0_23, %c0_24, %c0_25, %c0_26] : memref<2x4x1x8xf32, #tpu.memory_space<vmem>>, vector<1x1x1x8xf32>
    %39 = vector.shape_cast %38 : vector<1x1x1x8xf32> to vector<1x8xf32>
    %40 = vector.broadcast %39 : vector<1x8xf32> to vector<16x8xf32>
    %41 = arith.addf %37, %40 : vector<16x8xf32>
    %c0_27 = arith.constant 0 : index
    %c0_28 = arith.constant 0 : index
    %c0_29 = arith.constant 0 : index
    %c0_30 = arith.constant 0 : index
    %42 = vector.load %arg9[%c0_27, %c0_28, %c0_29, %c0_30] : memref<2x4x32x8xbf16, #tpu.memory_space<vmem>>, vector<1x1x32x8xbf16>
    %43 = vector.shape_cast %42 : vector<1x1x32x8xbf16> to vector<32x8xbf16>
    %cst_31 = arith.constant dense<0.000000e+00> : vector<16x8xf32>
    %44 = tpu.matmul %34, %43, %cst_31 {dimension_numbers = #tpu.dot_dimension_numbers<[1], [0], [0], [1], [0, 0, 1, 1], [], []>} : vector<16x32xbf16>, vector<32x8xbf16>, vector<16x8xf32> -> vector<16x8xf32>
    %c0_32 = arith.constant 0 : index
    %c0_33 = arith.constant 0 : index
    %c0_34 = arith.constant 0 : index
    %c0_35 = arith.constant 0 : index
    %45 = vector.load %arg10[%c0_32, %c0_33, %c0_34, %c0_35] : memref<2x4x1x8xf32, #tpu.memory_space<vmem>>, vector<1x1x1x8xf32>
    %46 = vector.shape_cast %45 : vector<1x1x1x8xf32> to vector<1x8xf32>
    %47 = vector.broadcast %46 : vector<1x8xf32> to vector<16x8xf32>
    %48 = arith.addf %44, %47 : vector<16x8xf32>
    %c0_36 = arith.constant 0 : index
    %c0_37 = arith.constant 0 : index
    %c0_38 = arith.constant 0 : index
    %c0_39 = arith.constant 0 : index
    %49 = vector.load %arg11[%c0_36, %c0_37, %c0_38, %c0_39] : memref<2x4x32x8xbf16, #tpu.memory_space<vmem>>, vector<1x1x32x8xbf16>
    %50 = vector.shape_cast %49 : vector<1x1x32x8xbf16> to vector<32x8xbf16>
    %cst_40 = arith.constant dense<0.000000e+00> : vector<16x8xf32>
    %51 = tpu.matmul %34, %50, %cst_40 {dimension_numbers = #tpu.dot_dimension_numbers<[1], [0], [0], [1], [0, 0, 1, 1], [], []>} : vector<16x32xbf16>, vector<32x8xbf16>, vector<16x8xf32> -> vector<16x8xf32>
    %c0_41 = arith.constant 0 : index
    %c0_42 = arith.constant 0 : index
    %c0_43 = arith.constant 0 : index
    %c0_44 = arith.constant 0 : index
    %52 = vector.load %arg12[%c0_41, %c0_42, %c0_43, %c0_44] : memref<2x4x1x8xf32, #tpu.memory_space<vmem>>, vector<1x1x1x8xf32>
    %53 = vector.shape_cast %52 : vector<1x1x1x8xf32> to vector<1x8xf32>
    %54 = vector.broadcast %53 : vector<1x8xf32> to vector<16x8xf32>
    %55 = arith.addf %51, %54 : vector<16x8xf32>
    %56 = arith.truncf %41 : vector<16x8xf32> to vector<16x8xbf16>
    %57 = arith.truncf %48 : vector<16x8xf32> to vector<16x8xbf16>
    %cst_45 = arith.constant dense<0.000000e+00> : vector<16x16xf32>
    %58 = tpu.matmul %56, %57, %cst_45 {dimension_numbers = #tpu.dot_dimension_numbers<[1], [1], [0], [0], [0, 0, 1, 0], [], []>} : vector<16x8xbf16>, vector<16x8xbf16>, vector<16x16xf32> -> vector<16x16xf32>
    %cst_46 = arith.constant dense<0xFF800000> : vector<16xf32>
    %59 = vector.multi_reduction <maximumf>, %58, %cst_46 [1] : vector<16x16xf32> to vector<16xf32>
    %60 = vector.shape_cast %59 : vector<16xf32> to vector<16x1xf32>
    %61 = vector.broadcast %60 : vector<16x1xf32> to vector<16x16xf32>
    %62 = arith.subf %58, %61 : vector<16x16xf32>
    %63 = math.exp %62 : vector<16x16xf32>
    %cst_47 = arith.constant dense<0.000000e+00> : vector<16xf32>
    %64 = vector.multi_reduction <add>, %63, %cst_47 [1] : vector<16x16xf32> to vector<16xf32>
    %65 = vector.shape_cast %64 : vector<16xf32> to vector<16x1xf32>
    %66 = tpu.reciprocal %65 {approx = true} : vector<16x1xf32> -> vector<16x1xf32>
    %67 = vector.broadcast %66 : vector<16x1xf32> to vector<16x16xf32>
    %68 = arith.mulf %63, %67 : vector<16x16xf32>
    %69 = arith.truncf %68 : vector<16x16xf32> to vector<16x16xbf16>
    %70 = arith.truncf %55 : vector<16x8xf32> to vector<16x8xbf16>
    %cst_48 = arith.constant dense<0.000000e+00> : vector<16x8xf32>
    %71 = tpu.matmul %69, %70, %cst_48 {dimension_numbers = #tpu.dot_dimension_numbers<[1], [0], [0], [1], [0, 0, 1, 1], [], []>} : vector<16x16xbf16>, vector<16x8xbf16>, vector<16x8xf32> -> vector<16x8xf32>
    %72 = arith.truncf %71 : vector<16x8xf32> to vector<16x8xbf16>
    %c0_49 = arith.constant 0 : index
    %c0_50 = arith.constant 0 : index
    %c0_51 = arith.constant 0 : index
    %c0_52 = arith.constant 0 : index
    %73 = vector.load %arg13[%c0_49, %c0_50, %c0_51, %c0_52] : memref<2x4x8x32xbf16, #tpu.memory_space<vmem>>, vector<1x1x8x32xbf16>
    %74 = vector.shape_cast %73 : vector<1x1x8x32xbf16> to vector<8x32xbf16>
    %cst_53 = arith.constant dense<0.000000e+00> : vector<16x32xf32>
    %75 = tpu.matmul %72, %74, %cst_53 {dimension_numbers = #tpu.dot_dimension_numbers<[1], [0], [0], [1], [0, 0, 1, 1], [], []>} : vector<16x8xbf16>, vector<8x32xbf16>, vector<16x32xf32> -> vector<16x32xf32>
    %c0_54 = arith.constant 0 : index
    %c1 = arith.constant 1 : index
    %c0_55 = arith.constant 0 : index
    %c0_56 = arith.constant 0 : index
    %76 = vector.load %arg7[%c0_54, %c1, %c0_55, %c0_56] : memref<2x4x32x8xbf16, #tpu.memory_space<vmem>>, vector<1x1x32x8xbf16>
    %77 = vector.shape_cast %76 : vector<1x1x32x8xbf16> to vector<32x8xbf16>
    %cst_57 = arith.constant dense<0.000000e+00> : vector<16x8xf32>
    %78 = tpu.matmul %34, %77, %cst_57 {dimension_numbers = #tpu.dot_dimension_numbers<[1], [0], [0], [1], [0, 0, 1, 1], [], []>} : vector<16x32xbf16>, vector<32x8xbf16>, vector<16x8xf32> -> vector<16x8xf32>
    %c0_58 = arith.constant 0 : index
    %c1_59 = arith.constant 1 : index
    %c0_60 = arith.constant 0 : index
    %c0_61 = arith.constant 0 : index
    %79 = vector.load %arg8[%c0_58, %c1_59, %c0_60, %c0_61] : memref<2x4x1x8xf32, #tpu.memory_space<vmem>>, vector<1x1x1x8xf32>
    %80 = vector.shape_cast %79 : vector<1x1x1x8xf32> to vector<1x8xf32>
    %81 = vector.broadcast %80 : vector<1x8xf32> to vector<16x8xf32>
    %82 = arith.addf %78, %81 : vector<16x8xf32>
    %c0_62 = arith.constant 0 : index
    %c1_63 = arith.constant 1 : index
    %c0_64 = arith.constant 0 : index
    %c0_65 = arith.constant 0 : index
    %83 = vector.load %arg9[%c0_62, %c1_63, %c0_64, %c0_65] : memref<2x4x32x8xbf16, #tpu.memory_space<vmem>>, vector<1x1x32x8xbf16>
    %84 = vector.shape_cast %83 : vector<1x1x32x8xbf16> to vector<32x8xbf16>
    %cst_66 = arith.constant dense<0.000000e+00> : vector<16x8xf32>
    %85 = tpu.matmul %34, %84, %cst_66 {dimension_numbers = #tpu.dot_dimension_numbers<[1], [0], [0], [1], [0, 0, 1, 1], [], []>} : vector<16x32xbf16>, vector<32x8xbf16>, vector<16x8xf32> -> vector<16x8xf32>
    %c0_67 = arith.constant 0 : index
    %c1_68 = arith.constant 1 : index
    %c0_69 = arith.constant 0 : index
    %c0_70 = arith.constant 0 : index
    %86 = vector.load %arg10[%c0_67, %c1_68, %c0_69, %c0_70] : memref<2x4x1x8xf32, #tpu.memory_space<vmem>>, vector<1x1x1x8xf32>
    %87 = vector.shape_cast %86 : vector<1x1x1x8xf32> to vector<1x8xf32>
    %88 = vector.broadcast %87 : vector<1x8xf32> to vector<16x8xf32>
    %89 = arith.addf %85, %88 : vector<16x8xf32>
    %c0_71 = arith.constant 0 : index
    %c1_72 = arith.constant 1 : index
    %c0_73 = arith.constant 0 : index
    %c0_74 = arith.constant 0 : index
    %90 = vector.load %arg11[%c0_71, %c1_72, %c0_73, %c0_74] : memref<2x4x32x8xbf16, #tpu.memory_space<vmem>>, vector<1x1x32x8xbf16>
    %91 = vector.shape_cast %90 : vector<1x1x32x8xbf16> to vector<32x8xbf16>
    %cst_75 = arith.constant dense<0.000000e+00> : vector<16x8xf32>
    %92 = tpu.matmul %34, %91, %cst_75 {dimension_numbers = #tpu.dot_dimension_numbers<[1], [0], [0], [1], [0, 0, 1, 1], [], []>} : vector<16x32xbf16>, vector<32x8xbf16>, vector<16x8xf32> -> vector<16x8xf32>
    %c0_76 = arith.constant 0 : index
    %c1_77 = arith.constant 1 : index
    %c0_78 = arith.constant 0 : index
    %c0_79 = arith.constant 0 : index
    %93 = vector.load %arg12[%c0_76, %c1_77, %c0_78, %c0_79] : memref<2x4x1x8xf32, #tpu.memory_space<vmem>>, vector<1x1x1x8xf32>
    %94 = vector.shape_cast %93 : vector<1x1x1x8xf32> to vector<1x8xf32>
    %95 = vector.broadcast %94 : vector<1x8xf32> to vector<16x8xf32>
    %96 = arith.addf %92, %95 : vector<16x8xf32>
    %97 = arith.truncf %82 : vector<16x8xf32> to vector<16x8xbf16>
    %98 = arith.truncf %89 : vector<16x8xf32> to vector<16x8xbf16>
    %cst_80 = arith.constant dense<0.000000e+00> : vector<16x16xf32>
    %99 = tpu.matmul %97, %98, %cst_80 {dimension_numbers = #tpu.dot_dimension_numbers<[1], [1], [0], [0], [0, 0, 1, 0], [], []>} : vector<16x8xbf16>, vector<16x8xbf16>, vector<16x16xf32> -> vector<16x16xf32>
    %cst_81 = arith.constant dense<0xFF800000> : vector<16xf32>
    %100 = vector.multi_reduction <maximumf>, %99, %cst_81 [1] : vector<16x16xf32> to vector<16xf32>
    %101 = vector.shape_cast %100 : vector<16xf32> to vector<16x1xf32>
    %102 = vector.broadcast %101 : vector<16x1xf32> to vector<16x16xf32>
    %103 = arith.subf %99, %102 : vector<16x16xf32>
    %104 = math.exp %103 : vector<16x16xf32>
    %cst_82 = arith.constant dense<0.000000e+00> : vector<16xf32>
    %105 = vector.multi_reduction <add>, %104, %cst_82 [1] : vector<16x16xf32> to vector<16xf32>
    %106 = vector.shape_cast %105 : vector<16xf32> to vector<16x1xf32>
    %107 = tpu.reciprocal %106 {approx = true} : vector<16x1xf32> -> vector<16x1xf32>
    %108 = vector.broadcast %107 : vector<16x1xf32> to vector<16x16xf32>
    %109 = arith.mulf %104, %108 : vector<16x16xf32>
    %110 = arith.truncf %109 : vector<16x16xf32> to vector<16x16xbf16>
    %111 = arith.truncf %96 : vector<16x8xf32> to vector<16x8xbf16>
    %cst_83 = arith.constant dense<0.000000e+00> : vector<16x8xf32>
    %112 = tpu.matmul %110, %111, %cst_83 {dimension_numbers = #tpu.dot_dimension_numbers<[1], [0], [0], [1], [0, 0, 1, 1], [], []>} : vector<16x16xbf16>, vector<16x8xbf16>, vector<16x8xf32> -> vector<16x8xf32>
    %113 = arith.truncf %112 : vector<16x8xf32> to vector<16x8xbf16>
    %c0_84 = arith.constant 0 : index
    %c1_85 = arith.constant 1 : index
    %c0_86 = arith.constant 0 : index
    %c0_87 = arith.constant 0 : index
    %114 = vector.load %arg13[%c0_84, %c1_85, %c0_86, %c0_87] : memref<2x4x8x32xbf16, #tpu.memory_space<vmem>>, vector<1x1x8x32xbf16>
    %115 = vector.shape_cast %114 : vector<1x1x8x32xbf16> to vector<8x32xbf16>
    %cst_88 = arith.constant dense<0.000000e+00> : vector<16x32xf32>
    %116 = tpu.matmul %113, %115, %cst_88 {dimension_numbers = #tpu.dot_dimension_numbers<[1], [0], [0], [1], [0, 0, 1, 1], [], []>} : vector<16x8xbf16>, vector<8x32xbf16>, vector<16x32xf32> -> vector<16x32xf32>
    %117 = arith.addf %75, %116 : vector<16x32xf32>
    %c0_89 = arith.constant 0 : index
    %c2 = arith.constant 2 : index
    %c0_90 = arith.constant 0 : index
    %c0_91 = arith.constant 0 : index
    %118 = vector.load %arg7[%c0_89, %c2, %c0_90, %c0_91] : memref<2x4x32x8xbf16, #tpu.memory_space<vmem>>, vector<1x1x32x8xbf16>
    %119 = vector.shape_cast %118 : vector<1x1x32x8xbf16> to vector<32x8xbf16>
    %cst_92 = arith.constant dense<0.000000e+00> : vector<16x8xf32>
    %120 = tpu.matmul %34, %119, %cst_92 {dimension_numbers = #tpu.dot_dimension_numbers<[1], [0], [0], [1], [0, 0, 1, 1], [], []>} : vector<16x32xbf16>, vector<32x8xbf16>, vector<16x8xf32> -> vector<16x8xf32>
    %c0_93 = arith.constant 0 : index
    %c2_94 = arith.constant 2 : index
    %c0_95 = arith.constant 0 : index
    %c0_96 = arith.constant 0 : index
    %121 = vector.load %arg8[%c0_93, %c2_94, %c0_95, %c0_96] : memref<2x4x1x8xf32, #tpu.memory_space<vmem>>, vector<1x1x1x8xf32>
    %122 = vector.shape_cast %121 : vector<1x1x1x8xf32> to vector<1x8xf32>
    %123 = vector.broadcast %122 : vector<1x8xf32> to vector<16x8xf32>
    %124 = arith.addf %120, %123 : vector<16x8xf32>
    %c0_97 = arith.constant 0 : index
    %c2_98 = arith.constant 2 : index
    %c0_99 = arith.constant 0 : index
    %c0_100 = arith.constant 0 : index
    %125 = vector.load %arg9[%c0_97, %c2_98, %c0_99, %c0_100] : memref<2x4x32x8xbf16, #tpu.memory_space<vmem>>, vector<1x1x32x8xbf16>
    %126 = vector.shape_cast %125 : vector<1x1x32x8xbf16> to vector<32x8xbf16>
    %cst_101 = arith.constant dense<0.000000e+00> : vector<16x8xf32>
    %127 = tpu.matmul %34, %126, %cst_101 {dimension_numbers = #tpu.dot_dimension_numbers<[1], [0], [0], [1], [0, 0, 1, 1], [], []>} : vector<16x32xbf16>, vector<32x8xbf16>, vector<16x8xf32> -> vector<16x8xf32>
    %c0_102 = arith.constant 0 : index
    %c2_103 = arith.constant 2 : index
    %c0_104 = arith.constant 0 : index
    %c0_105 = arith.constant 0 : index
    %128 = vector.load %arg10[%c0_102, %c2_103, %c0_104, %c0_105] : memref<2x4x1x8xf32, #tpu.memory_space<vmem>>, vector<1x1x1x8xf32>
    %129 = vector.shape_cast %128 : vector<1x1x1x8xf32> to vector<1x8xf32>
    %130 = vector.broadcast %129 : vector<1x8xf32> to vector<16x8xf32>
    %131 = arith.addf %127, %130 : vector<16x8xf32>
    %c0_106 = arith.constant 0 : index
    %c2_107 = arith.constant 2 : index
    %c0_108 = arith.constant 0 : index
    %c0_109 = arith.constant 0 : index
    %132 = vector.load %arg11[%c0_106, %c2_107, %c0_108, %c0_109] : memref<2x4x32x8xbf16, #tpu.memory_space<vmem>>, vector<1x1x32x8xbf16>
    %133 = vector.shape_cast %132 : vector<1x1x32x8xbf16> to vector<32x8xbf16>
    %cst_110 = arith.constant dense<0.000000e+00> : vector<16x8xf32>
    %134 = tpu.matmul %34, %133, %cst_110 {dimension_numbers = #tpu.dot_dimension_numbers<[1], [0], [0], [1], [0, 0, 1, 1], [], []>} : vector<16x32xbf16>, vector<32x8xbf16>, vector<16x8xf32> -> vector<16x8xf32>
    %c0_111 = arith.constant 0 : index
    %c2_112 = arith.constant 2 : index
    %c0_113 = arith.constant 0 : index
    %c0_114 = arith.constant 0 : index
    %135 = vector.load %arg12[%c0_111, %c2_112, %c0_113, %c0_114] : memref<2x4x1x8xf32, #tpu.memory_space<vmem>>, vector<1x1x1x8xf32>
    %136 = vector.shape_cast %135 : vector<1x1x1x8xf32> to vector<1x8xf32>
    %137 = vector.broadcast %136 : vector<1x8xf32> to vector<16x8xf32>
    %138 = arith.addf %134, %137 : vector<16x8xf32>
    %139 = arith.truncf %124 : vector<16x8xf32> to vector<16x8xbf16>
    %140 = arith.truncf %131 : vector<16x8xf32> to vector<16x8xbf16>
    %cst_115 = arith.constant dense<0.000000e+00> : vector<16x16xf32>
    %141 = tpu.matmul %139, %140, %cst_115 {dimension_numbers = #tpu.dot_dimension_numbers<[1], [1], [0], [0], [0, 0, 1, 0], [], []>} : vector<16x8xbf16>, vector<16x8xbf16>, vector<16x16xf32> -> vector<16x16xf32>
    %cst_116 = arith.constant dense<0xFF800000> : vector<16xf32>
    %142 = vector.multi_reduction <maximumf>, %141, %cst_116 [1] : vector<16x16xf32> to vector<16xf32>
    %143 = vector.shape_cast %142 : vector<16xf32> to vector<16x1xf32>
    %144 = vector.broadcast %143 : vector<16x1xf32> to vector<16x16xf32>
    %145 = arith.subf %141, %144 : vector<16x16xf32>
    %146 = math.exp %145 : vector<16x16xf32>
    %cst_117 = arith.constant dense<0.000000e+00> : vector<16xf32>
    %147 = vector.multi_reduction <add>, %146, %cst_117 [1] : vector<16x16xf32> to vector<16xf32>
    %148 = vector.shape_cast %147 : vector<16xf32> to vector<16x1xf32>
    %149 = tpu.reciprocal %148 {approx = true} : vector<16x1xf32> -> vector<16x1xf32>
    %150 = vector.broadcast %149 : vector<16x1xf32> to vector<16x16xf32>
    %151 = arith.mulf %146, %150 : vector<16x16xf32>
    %152 = arith.truncf %151 : vector<16x16xf32> to vector<16x16xbf16>
    %153 = arith.truncf %138 : vector<16x8xf32> to vector<16x8xbf16>
    %cst_118 = arith.constant dense<0.000000e+00> : vector<16x8xf32>
    %154 = tpu.matmul %152, %153, %cst_118 {dimension_numbers = #tpu.dot_dimension_numbers<[1], [0], [0], [1], [0, 0, 1, 1], [], []>} : vector<16x16xbf16>, vector<16x8xbf16>, vector<16x8xf32> -> vector<16x8xf32>
    %155 = arith.truncf %154 : vector<16x8xf32> to vector<16x8xbf16>
    %c0_119 = arith.constant 0 : index
    %c2_120 = arith.constant 2 : index
    %c0_121 = arith.constant 0 : index
    %c0_122 = arith.constant 0 : index
    %156 = vector.load %arg13[%c0_119, %c2_120, %c0_121, %c0_122] : memref<2x4x8x32xbf16, #tpu.memory_space<vmem>>, vector<1x1x8x32xbf16>
    %157 = vector.shape_cast %156 : vector<1x1x8x32xbf16> to vector<8x32xbf16>
    %cst_123 = arith.constant dense<0.000000e+00> : vector<16x32xf32>
    %158 = tpu.matmul %155, %157, %cst_123 {dimension_numbers = #tpu.dot_dimension_numbers<[1], [0], [0], [1], [0, 0, 1, 1], [], []>} : vector<16x8xbf16>, vector<8x32xbf16>, vector<16x32xf32> -> vector<16x32xf32>
    %159 = arith.addf %117, %158 : vector<16x32xf32>
    %c0_124 = arith.constant 0 : index
    %c3 = arith.constant 3 : index
    %c0_125 = arith.constant 0 : index
    %c0_126 = arith.constant 0 : index
    %160 = vector.load %arg7[%c0_124, %c3, %c0_125, %c0_126] : memref<2x4x32x8xbf16, #tpu.memory_space<vmem>>, vector<1x1x32x8xbf16>
    %161 = vector.shape_cast %160 : vector<1x1x32x8xbf16> to vector<32x8xbf16>
    %cst_127 = arith.constant dense<0.000000e+00> : vector<16x8xf32>
    %162 = tpu.matmul %34, %161, %cst_127 {dimension_numbers = #tpu.dot_dimension_numbers<[1], [0], [0], [1], [0, 0, 1, 1], [], []>} : vector<16x32xbf16>, vector<32x8xbf16>, vector<16x8xf32> -> vector<16x8xf32>
    %c0_128 = arith.constant 0 : index
    %c3_129 = arith.constant 3 : index
    %c0_130 = arith.constant 0 : index
    %c0_131 = arith.constant 0 : index
    %163 = vector.load %arg8[%c0_128, %c3_129, %c0_130, %c0_131] : memref<2x4x1x8xf32, #tpu.memory_space<vmem>>, vector<1x1x1x8xf32>
    %164 = vector.shape_cast %163 : vector<1x1x1x8xf32> to vector<1x8xf32>
    %165 = vector.broadcast %164 : vector<1x8xf32> to vector<16x8xf32>
    %166 = arith.addf %162, %165 : vector<16x8xf32>
    %c0_132 = arith.constant 0 : index
    %c3_133 = arith.constant 3 : index
    %c0_134 = arith.constant 0 : index
    %c0_135 = arith.constant 0 : index
    %167 = vector.load %arg9[%c0_132, %c3_133, %c0_134, %c0_135] : memref<2x4x32x8xbf16, #tpu.memory_space<vmem>>, vector<1x1x32x8xbf16>
    %168 = vector.shape_cast %167 : vector<1x1x32x8xbf16> to vector<32x8xbf16>
    %cst_136 = arith.constant dense<0.000000e+00> : vector<16x8xf32>
    %169 = tpu.matmul %34, %168, %cst_136 {dimension_numbers = #tpu.dot_dimension_numbers<[1], [0], [0], [1], [0, 0, 1, 1], [], []>} : vector<16x32xbf16>, vector<32x8xbf16>, vector<16x8xf32> -> vector<16x8xf32>
    %c0_137 = arith.constant 0 : index
    %c3_138 = arith.constant 3 : index
    %c0_139 = arith.constant 0 : index
    %c0_140 = arith.constant 0 : index
    %170 = vector.load %arg10[%c0_137, %c3_138, %c0_139, %c0_140] : memref<2x4x1x8xf32, #tpu.memory_space<vmem>>, vector<1x1x1x8xf32>
    %171 = vector.shape_cast %170 : vector<1x1x1x8xf32> to vector<1x8xf32>
    %172 = vector.broadcast %171 : vector<1x8xf32> to vector<16x8xf32>
    %173 = arith.addf %169, %172 : vector<16x8xf32>
    %c0_141 = arith.constant 0 : index
    %c3_142 = arith.constant 3 : index
    %c0_143 = arith.constant 0 : index
    %c0_144 = arith.constant 0 : index
    %174 = vector.load %arg11[%c0_141, %c3_142, %c0_143, %c0_144] : memref<2x4x32x8xbf16, #tpu.memory_space<vmem>>, vector<1x1x32x8xbf16>
    %175 = vector.shape_cast %174 : vector<1x1x32x8xbf16> to vector<32x8xbf16>
    %cst_145 = arith.constant dense<0.000000e+00> : vector<16x8xf32>
    %176 = tpu.matmul %34, %175, %cst_145 {dimension_numbers = #tpu.dot_dimension_numbers<[1], [0], [0], [1], [0, 0, 1, 1], [], []>} : vector<16x32xbf16>, vector<32x8xbf16>, vector<16x8xf32> -> vector<16x8xf32>
    %c0_146 = arith.constant 0 : index
    %c3_147 = arith.constant 3 : index
    %c0_148 = arith.constant 0 : index
    %c0_149 = arith.constant 0 : index
    %177 = vector.load %arg12[%c0_146, %c3_147, %c0_148, %c0_149] : memref<2x4x1x8xf32, #tpu.memory_space<vmem>>, vector<1x1x1x8xf32>
    %178 = vector.shape_cast %177 : vector<1x1x1x8xf32> to vector<1x8xf32>
    %179 = vector.broadcast %178 : vector<1x8xf32> to vector<16x8xf32>
    %180 = arith.addf %176, %179 : vector<16x8xf32>
    %181 = arith.truncf %166 : vector<16x8xf32> to vector<16x8xbf16>
    %182 = arith.truncf %173 : vector<16x8xf32> to vector<16x8xbf16>
    %cst_150 = arith.constant dense<0.000000e+00> : vector<16x16xf32>
    %183 = tpu.matmul %181, %182, %cst_150 {dimension_numbers = #tpu.dot_dimension_numbers<[1], [1], [0], [0], [0, 0, 1, 0], [], []>} : vector<16x8xbf16>, vector<16x8xbf16>, vector<16x16xf32> -> vector<16x16xf32>
    %cst_151 = arith.constant dense<0xFF800000> : vector<16xf32>
    %184 = vector.multi_reduction <maximumf>, %183, %cst_151 [1] : vector<16x16xf32> to vector<16xf32>
    %185 = vector.shape_cast %184 : vector<16xf32> to vector<16x1xf32>
    %186 = vector.broadcast %185 : vector<16x1xf32> to vector<16x16xf32>
    %187 = arith.subf %183, %186 : vector<16x16xf32>
    %188 = math.exp %187 : vector<16x16xf32>
    %cst_152 = arith.constant dense<0.000000e+00> : vector<16xf32>
    %189 = vector.multi_reduction <add>, %188, %cst_152 [1] : vector<16x16xf32> to vector<16xf32>
    %190 = vector.shape_cast %189 : vector<16xf32> to vector<16x1xf32>
    %191 = tpu.reciprocal %190 {approx = true} : vector<16x1xf32> -> vector<16x1xf32>
    %192 = vector.broadcast %191 : vector<16x1xf32> to vector<16x16xf32>
    %193 = arith.mulf %188, %192 : vector<16x16xf32>
    %194 = arith.truncf %193 : vector<16x16xf32> to vector<16x16xbf16>
    %195 = arith.truncf %180 : vector<16x8xf32> to vector<16x8xbf16>
    %cst_153 = arith.constant dense<0.000000e+00> : vector<16x8xf32>
    %196 = tpu.matmul %194, %195, %cst_153 {dimension_numbers = #tpu.dot_dimension_numbers<[1], [0], [0], [1], [0, 0, 1, 1], [], []>} : vector<16x16xbf16>, vector<16x8xbf16>, vector<16x8xf32> -> vector<16x8xf32>
    %197 = arith.truncf %196 : vector<16x8xf32> to vector<16x8xbf16>
    %c0_154 = arith.constant 0 : index
    %c3_155 = arith.constant 3 : index
    %c0_156 = arith.constant 0 : index
    %c0_157 = arith.constant 0 : index
    %198 = vector.load %arg13[%c0_154, %c3_155, %c0_156, %c0_157] : memref<2x4x8x32xbf16, #tpu.memory_space<vmem>>, vector<1x1x8x32xbf16>
    %199 = vector.shape_cast %198 : vector<1x1x8x32xbf16> to vector<8x32xbf16>
    %cst_158 = arith.constant dense<0.000000e+00> : vector<16x32xf32>
    %200 = tpu.matmul %197, %199, %cst_158 {dimension_numbers = #tpu.dot_dimension_numbers<[1], [0], [0], [1], [0, 0, 1, 1], [], []>} : vector<16x8xbf16>, vector<8x32xbf16>, vector<16x32xf32> -> vector<16x32xf32>
    %201 = arith.addf %159, %200 : vector<16x32xf32>
    %202 = arith.addf %7, %201 : vector<16x32xf32>
    %c0_159 = arith.constant 0 : index
    %c0_160 = arith.constant 0 : index
    %c0_161 = arith.constant 0 : index
    %203 = vector.load %arg14[%c0_159, %c0_160, %c0_161] : memref<2x1x32xf32, #tpu.memory_space<vmem>>, vector<1x1x32xf32>
    %204 = vector.shape_cast %203 : vector<1x1x32xf32> to vector<1x32xf32>
    %205 = vector.broadcast %204 : vector<1x32xf32> to vector<16x32xf32>
    %206 = arith.addf %202, %205 : vector<16x32xf32>
    %c0_162 = arith.constant 0 : index
    %c0_163 = arith.constant 0 : index
    %c0_164 = arith.constant 0 : index
    %207 = vector.load %arg15[%c0_162, %c0_163, %c0_164] : memref<2x1x32xf32, #tpu.memory_space<vmem>>, vector<1x1x32xf32>
    %208 = vector.shape_cast %207 : vector<1x1x32xf32> to vector<1x32xf32>
    %c0_165 = arith.constant 0 : index
    %c0_166 = arith.constant 0 : index
    %c0_167 = arith.constant 0 : index
    %209 = vector.load %arg16[%c0_165, %c0_166, %c0_167] : memref<2x1x32xf32, #tpu.memory_space<vmem>>, vector<1x1x32xf32>
    %210 = vector.shape_cast %209 : vector<1x1x32xf32> to vector<1x32xf32>
    %cst_168 = arith.constant dense<0.000000e+00> : vector<16xf32>
    %211 = vector.multi_reduction <add>, %206, %cst_168 [1] : vector<16x32xf32> to vector<16xf32>
    %212 = vector.shape_cast %211 : vector<16xf32> to vector<16x1xf32>
    %cst_169 = arith.constant 3.200000e+01 : f32
    %213 = vector.broadcast %cst_169 : f32 to vector<16x1xf32>
    %214 = arith.divf %212, %213 : vector<16x1xf32>
    %215 = vector.broadcast %214 : vector<16x1xf32> to vector<16x32xf32>
    %216 = arith.subf %206, %215 : vector<16x32xf32>
    %217 = arith.mulf %216, %216 : vector<16x32xf32>
    %cst_170 = arith.constant dense<0.000000e+00> : vector<16xf32>
    %218 = vector.multi_reduction <add>, %217, %cst_170 [1] : vector<16x32xf32> to vector<16xf32>
    %219 = vector.shape_cast %218 : vector<16xf32> to vector<16x1xf32>
    %cst_171 = arith.constant 3.200000e+01 : f32
    %220 = vector.broadcast %cst_171 : f32 to vector<16x1xf32>
    %221 = arith.divf %219, %220 : vector<16x1xf32>
    %222 = vector.broadcast %214 : vector<16x1xf32> to vector<16x32xf32>
    %223 = arith.subf %206, %222 : vector<16x32xf32>
    %cst_172 = arith.constant 9.99999997E-7 : f32
    %224 = vector.broadcast %cst_172 : f32 to vector<16x1xf32>
    %225 = arith.addf %221, %224 : vector<16x1xf32>
    %226 = math.rsqrt %225 : vector<16x1xf32>
    %227 = vector.broadcast %226 : vector<16x1xf32> to vector<16x32xf32>
    %228 = arith.mulf %223, %227 : vector<16x32xf32>
    %229 = vector.broadcast %208 : vector<1x32xf32> to vector<16x32xf32>
    %230 = arith.mulf %228, %229 : vector<16x32xf32>
    %231 = vector.broadcast %210 : vector<1x32xf32> to vector<16x32xf32>
    %232 = arith.addf %230, %231 : vector<16x32xf32>
    %233 = arith.truncf %232 : vector<16x32xf32> to vector<16x32xbf16>
    %c0_173 = arith.constant 0 : index
    %c0_174 = arith.constant 0 : index
    %c0_175 = arith.constant 0 : index
    %234 = vector.load %arg17[%c0_173, %c0_174, %c0_175] : memref<2x32x64xbf16, #tpu.memory_space<vmem>>, vector<1x32x64xbf16>
    %235 = vector.shape_cast %234 : vector<1x32x64xbf16> to vector<32x64xbf16>
    %cst_176 = arith.constant dense<0.000000e+00> : vector<16x64xf32>
    %236 = tpu.matmul %233, %235, %cst_176 {dimension_numbers = #tpu.dot_dimension_numbers<[1], [0], [0], [1], [0, 0, 1, 1], [], []>} : vector<16x32xbf16>, vector<32x64xbf16>, vector<16x64xf32> -> vector<16x64xf32>
    %c0_177 = arith.constant 0 : index
    %c0_178 = arith.constant 0 : index
    %c0_179 = arith.constant 0 : index
    %237 = vector.load %arg18[%c0_177, %c0_178, %c0_179] : memref<2x1x64xf32, #tpu.memory_space<vmem>>, vector<1x1x64xf32>
    %238 = vector.shape_cast %237 : vector<1x1x64xf32> to vector<1x64xf32>
    %239 = vector.broadcast %238 : vector<1x64xf32> to vector<16x64xf32>
    %240 = arith.addf %236, %239 : vector<16x64xf32>
    %cst_180 = arith.constant 5.000000e-01 : f32
    %241 = vector.broadcast %cst_180 : f32 to vector<16x64xf32>
    %242 = arith.mulf %241, %240 : vector<16x64xf32>
    %cst_181 = arith.constant 4.471500e-02 : f32
    %243 = vector.broadcast %cst_181 : f32 to vector<16x64xf32>
    %244 = arith.mulf %243, %240 : vector<16x64xf32>
    %245 = arith.mulf %244, %240 : vector<16x64xf32>
    %246 = arith.mulf %245, %240 : vector<16x64xf32>
    %247 = arith.addf %240, %246 : vector<16x64xf32>
    %cst_182 = arith.constant 0.797884583 : f32
    %248 = vector.broadcast %cst_182 : f32 to vector<16x64xf32>
    %249 = arith.mulf %248, %247 : vector<16x64xf32>
    %250 = math.tanh %249 : vector<16x64xf32>
    %cst_183 = arith.constant 1.000000e+00 : f32
    %251 = vector.broadcast %cst_183 : f32 to vector<16x64xf32>
    %252 = arith.addf %251, %250 : vector<16x64xf32>
    %253 = arith.mulf %242, %252 : vector<16x64xf32>
    %254 = arith.truncf %253 : vector<16x64xf32> to vector<16x64xbf16>
    %c0_184 = arith.constant 0 : index
    %c0_185 = arith.constant 0 : index
    %c0_186 = arith.constant 0 : index
    %255 = vector.load %arg19[%c0_184, %c0_185, %c0_186] : memref<2x64x32xbf16, #tpu.memory_space<vmem>>, vector<1x64x32xbf16>
    %256 = vector.shape_cast %255 : vector<1x64x32xbf16> to vector<64x32xbf16>
    %cst_187 = arith.constant dense<0.000000e+00> : vector<16x32xf32>
    %257 = tpu.matmul %254, %256, %cst_187 {dimension_numbers = #tpu.dot_dimension_numbers<[1], [0], [0], [1], [0, 0, 1, 1], [], []>} : vector<16x64xbf16>, vector<64x32xbf16>, vector<16x32xf32> -> vector<16x32xf32>
    %c0_188 = arith.constant 0 : index
    %c0_189 = arith.constant 0 : index
    %c0_190 = arith.constant 0 : index
    %258 = vector.load %arg20[%c0_188, %c0_189, %c0_190] : memref<2x1x32xf32, #tpu.memory_space<vmem>>, vector<1x1x32xf32>
    %259 = vector.shape_cast %258 : vector<1x1x32xf32> to vector<1x32xf32>
    %260 = vector.broadcast %259 : vector<1x32xf32> to vector<16x32xf32>
    %261 = arith.addf %257, %260 : vector<16x32xf32>
    %262 = arith.addf %206, %261 : vector<16x32xf32>
    %c1_191 = arith.constant 1 : index
    %c0_192 = arith.constant 0 : index
    %c0_193 = arith.constant 0 : index
    %263 = vector.load %arg5[%c1_191, %c0_192, %c0_193] : memref<2x1x32xf32, #tpu.memory_space<vmem>>, vector<1x1x32xf32>
    %264 = vector.shape_cast %263 : vector<1x1x32xf32> to vector<1x32xf32>
    %c1_194 = arith.constant 1 : index
    %c0_195 = arith.constant 0 : index
    %c0_196 = arith.constant 0 : index
    %265 = vector.load %arg6[%c1_194, %c0_195, %c0_196] : memref<2x1x32xf32, #tpu.memory_space<vmem>>, vector<1x1x32xf32>
    %266 = vector.shape_cast %265 : vector<1x1x32xf32> to vector<1x32xf32>
    %cst_197 = arith.constant dense<0.000000e+00> : vector<16xf32>
    %267 = vector.multi_reduction <add>, %262, %cst_197 [1] : vector<16x32xf32> to vector<16xf32>
    %268 = vector.shape_cast %267 : vector<16xf32> to vector<16x1xf32>
    %cst_198 = arith.constant 3.200000e+01 : f32
    %269 = vector.broadcast %cst_198 : f32 to vector<16x1xf32>
    %270 = arith.divf %268, %269 : vector<16x1xf32>
    %271 = vector.broadcast %270 : vector<16x1xf32> to vector<16x32xf32>
    %272 = arith.subf %262, %271 : vector<16x32xf32>
    %273 = arith.mulf %272, %272 : vector<16x32xf32>
    %cst_199 = arith.constant dense<0.000000e+00> : vector<16xf32>
    %274 = vector.multi_reduction <add>, %273, %cst_199 [1] : vector<16x32xf32> to vector<16xf32>
    %275 = vector.shape_cast %274 : vector<16xf32> to vector<16x1xf32>
    %cst_200 = arith.constant 3.200000e+01 : f32
    %276 = vector.broadcast %cst_200 : f32 to vector<16x1xf32>
    %277 = arith.divf %275, %276 : vector<16x1xf32>
    %278 = vector.broadcast %270 : vector<16x1xf32> to vector<16x32xf32>
    %279 = arith.subf %262, %278 : vector<16x32xf32>
    %cst_201 = arith.constant 9.99999997E-7 : f32
    %280 = vector.broadcast %cst_201 : f32 to vector<16x1xf32>
    %281 = arith.addf %277, %280 : vector<16x1xf32>
    %282 = math.rsqrt %281 : vector<16x1xf32>
    %283 = vector.broadcast %282 : vector<16x1xf32> to vector<16x32xf32>
    %284 = arith.mulf %279, %283 : vector<16x32xf32>
    %285 = vector.broadcast %264 : vector<1x32xf32> to vector<16x32xf32>
    %286 = arith.mulf %284, %285 : vector<16x32xf32>
    %287 = vector.broadcast %266 : vector<1x32xf32> to vector<16x32xf32>
    %288 = arith.addf %286, %287 : vector<16x32xf32>
    %289 = arith.truncf %288 : vector<16x32xf32> to vector<16x32xbf16>
    %c1_202 = arith.constant 1 : index
    %c0_203 = arith.constant 0 : index
    %c0_204 = arith.constant 0 : index
    %c0_205 = arith.constant 0 : index
    %290 = vector.load %arg7[%c1_202, %c0_203, %c0_204, %c0_205] : memref<2x4x32x8xbf16, #tpu.memory_space<vmem>>, vector<1x1x32x8xbf16>
    %291 = vector.shape_cast %290 : vector<1x1x32x8xbf16> to vector<32x8xbf16>
    %cst_206 = arith.constant dense<0.000000e+00> : vector<16x8xf32>
    %292 = tpu.matmul %289, %291, %cst_206 {dimension_numbers = #tpu.dot_dimension_numbers<[1], [0], [0], [1], [0, 0, 1, 1], [], []>} : vector<16x32xbf16>, vector<32x8xbf16>, vector<16x8xf32> -> vector<16x8xf32>
    %c1_207 = arith.constant 1 : index
    %c0_208 = arith.constant 0 : index
    %c0_209 = arith.constant 0 : index
    %c0_210 = arith.constant 0 : index
    %293 = vector.load %arg8[%c1_207, %c0_208, %c0_209, %c0_210] : memref<2x4x1x8xf32, #tpu.memory_space<vmem>>, vector<1x1x1x8xf32>
    %294 = vector.shape_cast %293 : vector<1x1x1x8xf32> to vector<1x8xf32>
    %295 = vector.broadcast %294 : vector<1x8xf32> to vector<16x8xf32>
    %296 = arith.addf %292, %295 : vector<16x8xf32>
    %c1_211 = arith.constant 1 : index
    %c0_212 = arith.constant 0 : index
    %c0_213 = arith.constant 0 : index
    %c0_214 = arith.constant 0 : index
    %297 = vector.load %arg9[%c1_211, %c0_212, %c0_213, %c0_214] : memref<2x4x32x8xbf16, #tpu.memory_space<vmem>>, vector<1x1x32x8xbf16>
    %298 = vector.shape_cast %297 : vector<1x1x32x8xbf16> to vector<32x8xbf16>
    %cst_215 = arith.constant dense<0.000000e+00> : vector<16x8xf32>
    %299 = tpu.matmul %289, %298, %cst_215 {dimension_numbers = #tpu.dot_dimension_numbers<[1], [0], [0], [1], [0, 0, 1, 1], [], []>} : vector<16x32xbf16>, vector<32x8xbf16>, vector<16x8xf32> -> vector<16x8xf32>
    %c1_216 = arith.constant 1 : index
    %c0_217 = arith.constant 0 : index
    %c0_218 = arith.constant 0 : index
    %c0_219 = arith.constant 0 : index
    %300 = vector.load %arg10[%c1_216, %c0_217, %c0_218, %c0_219] : memref<2x4x1x8xf32, #tpu.memory_space<vmem>>, vector<1x1x1x8xf32>
    %301 = vector.shape_cast %300 : vector<1x1x1x8xf32> to vector<1x8xf32>
    %302 = vector.broadcast %301 : vector<1x8xf32> to vector<16x8xf32>
    %303 = arith.addf %299, %302 : vector<16x8xf32>
    %c1_220 = arith.constant 1 : index
    %c0_221 = arith.constant 0 : index
    %c0_222 = arith.constant 0 : index
    %c0_223 = arith.constant 0 : index
    %304 = vector.load %arg11[%c1_220, %c0_221, %c0_222, %c0_223] : memref<2x4x32x8xbf16, #tpu.memory_space<vmem>>, vector<1x1x32x8xbf16>
    %305 = vector.shape_cast %304 : vector<1x1x32x8xbf16> to vector<32x8xbf16>
    %cst_224 = arith.constant dense<0.000000e+00> : vector<16x8xf32>
    %306 = tpu.matmul %289, %305, %cst_224 {dimension_numbers = #tpu.dot_dimension_numbers<[1], [0], [0], [1], [0, 0, 1, 1], [], []>} : vector<16x32xbf16>, vector<32x8xbf16>, vector<16x8xf32> -> vector<16x8xf32>
    %c1_225 = arith.constant 1 : index
    %c0_226 = arith.constant 0 : index
    %c0_227 = arith.constant 0 : index
    %c0_228 = arith.constant 0 : index
    %307 = vector.load %arg12[%c1_225, %c0_226, %c0_227, %c0_228] : memref<2x4x1x8xf32, #tpu.memory_space<vmem>>, vector<1x1x1x8xf32>
    %308 = vector.shape_cast %307 : vector<1x1x1x8xf32> to vector<1x8xf32>
    %309 = vector.broadcast %308 : vector<1x8xf32> to vector<16x8xf32>
    %310 = arith.addf %306, %309 : vector<16x8xf32>
    %311 = arith.truncf %296 : vector<16x8xf32> to vector<16x8xbf16>
    %312 = arith.truncf %303 : vector<16x8xf32> to vector<16x8xbf16>
    %cst_229 = arith.constant dense<0.000000e+00> : vector<16x16xf32>
    %313 = tpu.matmul %311, %312, %cst_229 {dimension_numbers = #tpu.dot_dimension_numbers<[1], [1], [0], [0], [0, 0, 1, 0], [], []>} : vector<16x8xbf16>, vector<16x8xbf16>, vector<16x16xf32> -> vector<16x16xf32>
    %cst_230 = arith.constant dense<0xFF800000> : vector<16xf32>
    %314 = vector.multi_reduction <maximumf>, %313, %cst_230 [1] : vector<16x16xf32> to vector<16xf32>
    %315 = vector.shape_cast %314 : vector<16xf32> to vector<16x1xf32>
    %316 = vector.broadcast %315 : vector<16x1xf32> to vector<16x16xf32>
    %317 = arith.subf %313, %316 : vector<16x16xf32>
    %318 = math.exp %317 : vector<16x16xf32>
    %cst_231 = arith.constant dense<0.000000e+00> : vector<16xf32>
    %319 = vector.multi_reduction <add>, %318, %cst_231 [1] : vector<16x16xf32> to vector<16xf32>
    %320 = vector.shape_cast %319 : vector<16xf32> to vector<16x1xf32>
    %321 = tpu.reciprocal %320 {approx = true} : vector<16x1xf32> -> vector<16x1xf32>
    %322 = vector.broadcast %321 : vector<16x1xf32> to vector<16x16xf32>
    %323 = arith.mulf %318, %322 : vector<16x16xf32>
    %324 = arith.truncf %323 : vector<16x16xf32> to vector<16x16xbf16>
    %325 = arith.truncf %310 : vector<16x8xf32> to vector<16x8xbf16>
    %cst_232 = arith.constant dense<0.000000e+00> : vector<16x8xf32>
    %326 = tpu.matmul %324, %325, %cst_232 {dimension_numbers = #tpu.dot_dimension_numbers<[1], [0], [0], [1], [0, 0, 1, 1], [], []>} : vector<16x16xbf16>, vector<16x8xbf16>, vector<16x8xf32> -> vector<16x8xf32>
    %327 = arith.truncf %326 : vector<16x8xf32> to vector<16x8xbf16>
    %c1_233 = arith.constant 1 : index
    %c0_234 = arith.constant 0 : index
    %c0_235 = arith.constant 0 : index
    %c0_236 = arith.constant 0 : index
    %328 = vector.load %arg13[%c1_233, %c0_234, %c0_235, %c0_236] : memref<2x4x8x32xbf16, #tpu.memory_space<vmem>>, vector<1x1x8x32xbf16>
    %329 = vector.shape_cast %328 : vector<1x1x8x32xbf16> to vector<8x32xbf16>
    %cst_237 = arith.constant dense<0.000000e+00> : vector<16x32xf32>
    %330 = tpu.matmul %327, %329, %cst_237 {dimension_numbers = #tpu.dot_dimension_numbers<[1], [0], [0], [1], [0, 0, 1, 1], [], []>} : vector<16x8xbf16>, vector<8x32xbf16>, vector<16x32xf32> -> vector<16x32xf32>
    %c1_238 = arith.constant 1 : index
    %c1_239 = arith.constant 1 : index
    %c0_240 = arith.constant 0 : index
    %c0_241 = arith.constant 0 : index
    %331 = vector.load %arg7[%c1_238, %c1_239, %c0_240, %c0_241] : memref<2x4x32x8xbf16, #tpu.memory_space<vmem>>, vector<1x1x32x8xbf16>
    %332 = vector.shape_cast %331 : vector<1x1x32x8xbf16> to vector<32x8xbf16>
    %cst_242 = arith.constant dense<0.000000e+00> : vector<16x8xf32>
    %333 = tpu.matmul %289, %332, %cst_242 {dimension_numbers = #tpu.dot_dimension_numbers<[1], [0], [0], [1], [0, 0, 1, 1], [], []>} : vector<16x32xbf16>, vector<32x8xbf16>, vector<16x8xf32> -> vector<16x8xf32>
    %c1_243 = arith.constant 1 : index
    %c1_244 = arith.constant 1 : index
    %c0_245 = arith.constant 0 : index
    %c0_246 = arith.constant 0 : index
    %334 = vector.load %arg8[%c1_243, %c1_244, %c0_245, %c0_246] : memref<2x4x1x8xf32, #tpu.memory_space<vmem>>, vector<1x1x1x8xf32>
    %335 = vector.shape_cast %334 : vector<1x1x1x8xf32> to vector<1x8xf32>
    %336 = vector.broadcast %335 : vector<1x8xf32> to vector<16x8xf32>
    %337 = arith.addf %333, %336 : vector<16x8xf32>
    %c1_247 = arith.constant 1 : index
    %c1_248 = arith.constant 1 : index
    %c0_249 = arith.constant 0 : index
    %c0_250 = arith.constant 0 : index
    %338 = vector.load %arg9[%c1_247, %c1_248, %c0_249, %c0_250] : memref<2x4x32x8xbf16, #tpu.memory_space<vmem>>, vector<1x1x32x8xbf16>
    %339 = vector.shape_cast %338 : vector<1x1x32x8xbf16> to vector<32x8xbf16>
    %cst_251 = arith.constant dense<0.000000e+00> : vector<16x8xf32>
    %340 = tpu.matmul %289, %339, %cst_251 {dimension_numbers = #tpu.dot_dimension_numbers<[1], [0], [0], [1], [0, 0, 1, 1], [], []>} : vector<16x32xbf16>, vector<32x8xbf16>, vector<16x8xf32> -> vector<16x8xf32>
    %c1_252 = arith.constant 1 : index
    %c1_253 = arith.constant 1 : index
    %c0_254 = arith.constant 0 : index
    %c0_255 = arith.constant 0 : index
    %341 = vector.load %arg10[%c1_252, %c1_253, %c0_254, %c0_255] : memref<2x4x1x8xf32, #tpu.memory_space<vmem>>, vector<1x1x1x8xf32>
    %342 = vector.shape_cast %341 : vector<1x1x1x8xf32> to vector<1x8xf32>
    %343 = vector.broadcast %342 : vector<1x8xf32> to vector<16x8xf32>
    %344 = arith.addf %340, %343 : vector<16x8xf32>
    %c1_256 = arith.constant 1 : index
    %c1_257 = arith.constant 1 : index
    %c0_258 = arith.constant 0 : index
    %c0_259 = arith.constant 0 : index
    %345 = vector.load %arg11[%c1_256, %c1_257, %c0_258, %c0_259] : memref<2x4x32x8xbf16, #tpu.memory_space<vmem>>, vector<1x1x32x8xbf16>
    %346 = vector.shape_cast %345 : vector<1x1x32x8xbf16> to vector<32x8xbf16>
    %cst_260 = arith.constant dense<0.000000e+00> : vector<16x8xf32>
    %347 = tpu.matmul %289, %346, %cst_260 {dimension_numbers = #tpu.dot_dimension_numbers<[1], [0], [0], [1], [0, 0, 1, 1], [], []>} : vector<16x32xbf16>, vector<32x8xbf16>, vector<16x8xf32> -> vector<16x8xf32>
    %c1_261 = arith.constant 1 : index
    %c1_262 = arith.constant 1 : index
    %c0_263 = arith.constant 0 : index
    %c0_264 = arith.constant 0 : index
    %348 = vector.load %arg12[%c1_261, %c1_262, %c0_263, %c0_264] : memref<2x4x1x8xf32, #tpu.memory_space<vmem>>, vector<1x1x1x8xf32>
    %349 = vector.shape_cast %348 : vector<1x1x1x8xf32> to vector<1x8xf32>
    %350 = vector.broadcast %349 : vector<1x8xf32> to vector<16x8xf32>
    %351 = arith.addf %347, %350 : vector<16x8xf32>
    %352 = arith.truncf %337 : vector<16x8xf32> to vector<16x8xbf16>
    %353 = arith.truncf %344 : vector<16x8xf32> to vector<16x8xbf16>
    %cst_265 = arith.constant dense<0.000000e+00> : vector<16x16xf32>
    %354 = tpu.matmul %352, %353, %cst_265 {dimension_numbers = #tpu.dot_dimension_numbers<[1], [1], [0], [0], [0, 0, 1, 0], [], []>} : vector<16x8xbf16>, vector<16x8xbf16>, vector<16x16xf32> -> vector<16x16xf32>
    %cst_266 = arith.constant dense<0xFF800000> : vector<16xf32>
    %355 = vector.multi_reduction <maximumf>, %354, %cst_266 [1] : vector<16x16xf32> to vector<16xf32>
    %356 = vector.shape_cast %355 : vector<16xf32> to vector<16x1xf32>
    %357 = vector.broadcast %356 : vector<16x1xf32> to vector<16x16xf32>
    %358 = arith.subf %354, %357 : vector<16x16xf32>
    %359 = math.exp %358 : vector<16x16xf32>
    %cst_267 = arith.constant dense<0.000000e+00> : vector<16xf32>
    %360 = vector.multi_reduction <add>, %359, %cst_267 [1] : vector<16x16xf32> to vector<16xf32>
    %361 = vector.shape_cast %360 : vector<16xf32> to vector<16x1xf32>
    %362 = tpu.reciprocal %361 {approx = true} : vector<16x1xf32> -> vector<16x1xf32>
    %363 = vector.broadcast %362 : vector<16x1xf32> to vector<16x16xf32>
    %364 = arith.mulf %359, %363 : vector<16x16xf32>
    %365 = arith.truncf %364 : vector<16x16xf32> to vector<16x16xbf16>
    %366 = arith.truncf %351 : vector<16x8xf32> to vector<16x8xbf16>
    %cst_268 = arith.constant dense<0.000000e+00> : vector<16x8xf32>
    %367 = tpu.matmul %365, %366, %cst_268 {dimension_numbers = #tpu.dot_dimension_numbers<[1], [0], [0], [1], [0, 0, 1, 1], [], []>} : vector<16x16xbf16>, vector<16x8xbf16>, vector<16x8xf32> -> vector<16x8xf32>
    %368 = arith.truncf %367 : vector<16x8xf32> to vector<16x8xbf16>
    %c1_269 = arith.constant 1 : index
    %c1_270 = arith.constant 1 : index
    %c0_271 = arith.constant 0 : index
    %c0_272 = arith.constant 0 : index
    %369 = vector.load %arg13[%c1_269, %c1_270, %c0_271, %c0_272] : memref<2x4x8x32xbf16, #tpu.memory_space<vmem>>, vector<1x1x8x32xbf16>
    %370 = vector.shape_cast %369 : vector<1x1x8x32xbf16> to vector<8x32xbf16>
    %cst_273 = arith.constant dense<0.000000e+00> : vector<16x32xf32>
    %371 = tpu.matmul %368, %370, %cst_273 {dimension_numbers = #tpu.dot_dimension_numbers<[1], [0], [0], [1], [0, 0, 1, 1], [], []>} : vector<16x8xbf16>, vector<8x32xbf16>, vector<16x32xf32> -> vector<16x32xf32>
    %372 = arith.addf %330, %371 : vector<16x32xf32>
    %c1_274 = arith.constant 1 : index
    %c2_275 = arith.constant 2 : index
    %c0_276 = arith.constant 0 : index
    %c0_277 = arith.constant 0 : index
    %373 = vector.load %arg7[%c1_274, %c2_275, %c0_276, %c0_277] : memref<2x4x32x8xbf16, #tpu.memory_space<vmem>>, vector<1x1x32x8xbf16>
    %374 = vector.shape_cast %373 : vector<1x1x32x8xbf16> to vector<32x8xbf16>
    %cst_278 = arith.constant dense<0.000000e+00> : vector<16x8xf32>
    %375 = tpu.matmul %289, %374, %cst_278 {dimension_numbers = #tpu.dot_dimension_numbers<[1], [0], [0], [1], [0, 0, 1, 1], [], []>} : vector<16x32xbf16>, vector<32x8xbf16>, vector<16x8xf32> -> vector<16x8xf32>
    %c1_279 = arith.constant 1 : index
    %c2_280 = arith.constant 2 : index
    %c0_281 = arith.constant 0 : index
    %c0_282 = arith.constant 0 : index
    %376 = vector.load %arg8[%c1_279, %c2_280, %c0_281, %c0_282] : memref<2x4x1x8xf32, #tpu.memory_space<vmem>>, vector<1x1x1x8xf32>
    %377 = vector.shape_cast %376 : vector<1x1x1x8xf32> to vector<1x8xf32>
    %378 = vector.broadcast %377 : vector<1x8xf32> to vector<16x8xf32>
    %379 = arith.addf %375, %378 : vector<16x8xf32>
    %c1_283 = arith.constant 1 : index
    %c2_284 = arith.constant 2 : index
    %c0_285 = arith.constant 0 : index
    %c0_286 = arith.constant 0 : index
    %380 = vector.load %arg9[%c1_283, %c2_284, %c0_285, %c0_286] : memref<2x4x32x8xbf16, #tpu.memory_space<vmem>>, vector<1x1x32x8xbf16>
    %381 = vector.shape_cast %380 : vector<1x1x32x8xbf16> to vector<32x8xbf16>
    %cst_287 = arith.constant dense<0.000000e+00> : vector<16x8xf32>
    %382 = tpu.matmul %289, %381, %cst_287 {dimension_numbers = #tpu.dot_dimension_numbers<[1], [0], [0], [1], [0, 0, 1, 1], [], []>} : vector<16x32xbf16>, vector<32x8xbf16>, vector<16x8xf32> -> vector<16x8xf32>
    %c1_288 = arith.constant 1 : index
    %c2_289 = arith.constant 2 : index
    %c0_290 = arith.constant 0 : index
    %c0_291 = arith.constant 0 : index
    %383 = vector.load %arg10[%c1_288, %c2_289, %c0_290, %c0_291] : memref<2x4x1x8xf32, #tpu.memory_space<vmem>>, vector<1x1x1x8xf32>
    %384 = vector.shape_cast %383 : vector<1x1x1x8xf32> to vector<1x8xf32>
    %385 = vector.broadcast %384 : vector<1x8xf32> to vector<16x8xf32>
    %386 = arith.addf %382, %385 : vector<16x8xf32>
    %c1_292 = arith.constant 1 : index
    %c2_293 = arith.constant 2 : index
    %c0_294 = arith.constant 0 : index
    %c0_295 = arith.constant 0 : index
    %387 = vector.load %arg11[%c1_292, %c2_293, %c0_294, %c0_295] : memref<2x4x32x8xbf16, #tpu.memory_space<vmem>>, vector<1x1x32x8xbf16>
    %388 = vector.shape_cast %387 : vector<1x1x32x8xbf16> to vector<32x8xbf16>
    %cst_296 = arith.constant dense<0.000000e+00> : vector<16x8xf32>
    %389 = tpu.matmul %289, %388, %cst_296 {dimension_numbers = #tpu.dot_dimension_numbers<[1], [0], [0], [1], [0, 0, 1, 1], [], []>} : vector<16x32xbf16>, vector<32x8xbf16>, vector<16x8xf32> -> vector<16x8xf32>
    %c1_297 = arith.constant 1 : index
    %c2_298 = arith.constant 2 : index
    %c0_299 = arith.constant 0 : index
    %c0_300 = arith.constant 0 : index
    %390 = vector.load %arg12[%c1_297, %c2_298, %c0_299, %c0_300] : memref<2x4x1x8xf32, #tpu.memory_space<vmem>>, vector<1x1x1x8xf32>
    %391 = vector.shape_cast %390 : vector<1x1x1x8xf32> to vector<1x8xf32>
    %392 = vector.broadcast %391 : vector<1x8xf32> to vector<16x8xf32>
    %393 = arith.addf %389, %392 : vector<16x8xf32>
    %394 = arith.truncf %379 : vector<16x8xf32> to vector<16x8xbf16>
    %395 = arith.truncf %386 : vector<16x8xf32> to vector<16x8xbf16>
    %cst_301 = arith.constant dense<0.000000e+00> : vector<16x16xf32>
    %396 = tpu.matmul %394, %395, %cst_301 {dimension_numbers = #tpu.dot_dimension_numbers<[1], [1], [0], [0], [0, 0, 1, 0], [], []>} : vector<16x8xbf16>, vector<16x8xbf16>, vector<16x16xf32> -> vector<16x16xf32>
    %cst_302 = arith.constant dense<0xFF800000> : vector<16xf32>
    %397 = vector.multi_reduction <maximumf>, %396, %cst_302 [1] : vector<16x16xf32> to vector<16xf32>
    %398 = vector.shape_cast %397 : vector<16xf32> to vector<16x1xf32>
    %399 = vector.broadcast %398 : vector<16x1xf32> to vector<16x16xf32>
    %400 = arith.subf %396, %399 : vector<16x16xf32>
    %401 = math.exp %400 : vector<16x16xf32>
    %cst_303 = arith.constant dense<0.000000e+00> : vector<16xf32>
    %402 = vector.multi_reduction <add>, %401, %cst_303 [1] : vector<16x16xf32> to vector<16xf32>
    %403 = vector.shape_cast %402 : vector<16xf32> to vector<16x1xf32>
    %404 = tpu.reciprocal %403 {approx = true} : vector<16x1xf32> -> vector<16x1xf32>
    %405 = vector.broadcast %404 : vector<16x1xf32> to vector<16x16xf32>
    %406 = arith.mulf %401, %405 : vector<16x16xf32>
    %407 = arith.truncf %406 : vector<16x16xf32> to vector<16x16xbf16>
    %408 = arith.truncf %393 : vector<16x8xf32> to vector<16x8xbf16>
    %cst_304 = arith.constant dense<0.000000e+00> : vector<16x8xf32>
    %409 = tpu.matmul %407, %408, %cst_304 {dimension_numbers = #tpu.dot_dimension_numbers<[1], [0], [0], [1], [0, 0, 1, 1], [], []>} : vector<16x16xbf16>, vector<16x8xbf16>, vector<16x8xf32> -> vector<16x8xf32>
    %410 = arith.truncf %409 : vector<16x8xf32> to vector<16x8xbf16>
    %c1_305 = arith.constant 1 : index
    %c2_306 = arith.constant 2 : index
    %c0_307 = arith.constant 0 : index
    %c0_308 = arith.constant 0 : index
    %411 = vector.load %arg13[%c1_305, %c2_306, %c0_307, %c0_308] : memref<2x4x8x32xbf16, #tpu.memory_space<vmem>>, vector<1x1x8x32xbf16>
    %412 = vector.shape_cast %411 : vector<1x1x8x32xbf16> to vector<8x32xbf16>
    %cst_309 = arith.constant dense<0.000000e+00> : vector<16x32xf32>
    %413 = tpu.matmul %410, %412, %cst_309 {dimension_numbers = #tpu.dot_dimension_numbers<[1], [0], [0], [1], [0, 0, 1, 1], [], []>} : vector<16x8xbf16>, vector<8x32xbf16>, vector<16x32xf32> -> vector<16x32xf32>
    %414 = arith.addf %372, %413 : vector<16x32xf32>
    %c1_310 = arith.constant 1 : index
    %c3_311 = arith.constant 3 : index
    %c0_312 = arith.constant 0 : index
    %c0_313 = arith.constant 0 : index
    %415 = vector.load %arg7[%c1_310, %c3_311, %c0_312, %c0_313] : memref<2x4x32x8xbf16, #tpu.memory_space<vmem>>, vector<1x1x32x8xbf16>
    %416 = vector.shape_cast %415 : vector<1x1x32x8xbf16> to vector<32x8xbf16>
    %cst_314 = arith.constant dense<0.000000e+00> : vector<16x8xf32>
    %417 = tpu.matmul %289, %416, %cst_314 {dimension_numbers = #tpu.dot_dimension_numbers<[1], [0], [0], [1], [0, 0, 1, 1], [], []>} : vector<16x32xbf16>, vector<32x8xbf16>, vector<16x8xf32> -> vector<16x8xf32>
    %c1_315 = arith.constant 1 : index
    %c3_316 = arith.constant 3 : index
    %c0_317 = arith.constant 0 : index
    %c0_318 = arith.constant 0 : index
    %418 = vector.load %arg8[%c1_315, %c3_316, %c0_317, %c0_318] : memref<2x4x1x8xf32, #tpu.memory_space<vmem>>, vector<1x1x1x8xf32>
    %419 = vector.shape_cast %418 : vector<1x1x1x8xf32> to vector<1x8xf32>
    %420 = vector.broadcast %419 : vector<1x8xf32> to vector<16x8xf32>
    %421 = arith.addf %417, %420 : vector<16x8xf32>
    %c1_319 = arith.constant 1 : index
    %c3_320 = arith.constant 3 : index
    %c0_321 = arith.constant 0 : index
    %c0_322 = arith.constant 0 : index
    %422 = vector.load %arg9[%c1_319, %c3_320, %c0_321, %c0_322] : memref<2x4x32x8xbf16, #tpu.memory_space<vmem>>, vector<1x1x32x8xbf16>
    %423 = vector.shape_cast %422 : vector<1x1x32x8xbf16> to vector<32x8xbf16>
    %cst_323 = arith.constant dense<0.000000e+00> : vector<16x8xf32>
    %424 = tpu.matmul %289, %423, %cst_323 {dimension_numbers = #tpu.dot_dimension_numbers<[1], [0], [0], [1], [0, 0, 1, 1], [], []>} : vector<16x32xbf16>, vector<32x8xbf16>, vector<16x8xf32> -> vector<16x8xf32>
    %c1_324 = arith.constant 1 : index
    %c3_325 = arith.constant 3 : index
    %c0_326 = arith.constant 0 : index
    %c0_327 = arith.constant 0 : index
    %425 = vector.load %arg10[%c1_324, %c3_325, %c0_326, %c0_327] : memref<2x4x1x8xf32, #tpu.memory_space<vmem>>, vector<1x1x1x8xf32>
    %426 = vector.shape_cast %425 : vector<1x1x1x8xf32> to vector<1x8xf32>
    %427 = vector.broadcast %426 : vector<1x8xf32> to vector<16x8xf32>
    %428 = arith.addf %424, %427 : vector<16x8xf32>
    %c1_328 = arith.constant 1 : index
    %c3_329 = arith.constant 3 : index
    %c0_330 = arith.constant 0 : index
    %c0_331 = arith.constant 0 : index
    %429 = vector.load %arg11[%c1_328, %c3_329, %c0_330, %c0_331] : memref<2x4x32x8xbf16, #tpu.memory_space<vmem>>, vector<1x1x32x8xbf16>
    %430 = vector.shape_cast %429 : vector<1x1x32x8xbf16> to vector<32x8xbf16>
    %cst_332 = arith.constant dense<0.000000e+00> : vector<16x8xf32>
    %431 = tpu.matmul %289, %430, %cst_332 {dimension_numbers = #tpu.dot_dimension_numbers<[1], [0], [0], [1], [0, 0, 1, 1], [], []>} : vector<16x32xbf16>, vector<32x8xbf16>, vector<16x8xf32> -> vector<16x8xf32>
    %c1_333 = arith.constant 1 : index
    %c3_334 = arith.constant 3 : index
    %c0_335 = arith.constant 0 : index
    %c0_336 = arith.constant 0 : index
    %432 = vector.load %arg12[%c1_333, %c3_334, %c0_335, %c0_336] : memref<2x4x1x8xf32, #tpu.memory_space<vmem>>, vector<1x1x1x8xf32>
    %433 = vector.shape_cast %432 : vector<1x1x1x8xf32> to vector<1x8xf32>
    %434 = vector.broadcast %433 : vector<1x8xf32> to vector<16x8xf32>
    %435 = arith.addf %431, %434 : vector<16x8xf32>
    %436 = arith.truncf %421 : vector<16x8xf32> to vector<16x8xbf16>
    %437 = arith.truncf %428 : vector<16x8xf32> to vector<16x8xbf16>
    %cst_337 = arith.constant dense<0.000000e+00> : vector<16x16xf32>
    %438 = tpu.matmul %436, %437, %cst_337 {dimension_numbers = #tpu.dot_dimension_numbers<[1], [1], [0], [0], [0, 0, 1, 0], [], []>} : vector<16x8xbf16>, vector<16x8xbf16>, vector<16x16xf32> -> vector<16x16xf32>
    %cst_338 = arith.constant dense<0xFF800000> : vector<16xf32>
    %439 = vector.multi_reduction <maximumf>, %438, %cst_338 [1] : vector<16x16xf32> to vector<16xf32>
    %440 = vector.shape_cast %439 : vector<16xf32> to vector<16x1xf32>
    %441 = vector.broadcast %440 : vector<16x1xf32> to vector<16x16xf32>
    %442 = arith.subf %438, %441 : vector<16x16xf32>
    %443 = math.exp %442 : vector<16x16xf32>
    %cst_339 = arith.constant dense<0.000000e+00> : vector<16xf32>
    %444 = vector.multi_reduction <add>, %443, %cst_339 [1] : vector<16x16xf32> to vector<16xf32>
    %445 = vector.shape_cast %444 : vector<16xf32> to vector<16x1xf32>
    %446 = tpu.reciprocal %445 {approx = true} : vector<16x1xf32> -> vector<16x1xf32>
    %447 = vector.broadcast %446 : vector<16x1xf32> to vector<16x16xf32>
    %448 = arith.mulf %443, %447 : vector<16x16xf32>
    %449 = arith.truncf %448 : vector<16x16xf32> to vector<16x16xbf16>
    %450 = arith.truncf %435 : vector<16x8xf32> to vector<16x8xbf16>
    %cst_340 = arith.constant dense<0.000000e+00> : vector<16x8xf32>
    %451 = tpu.matmul %449, %450, %cst_340 {dimension_numbers = #tpu.dot_dimension_numbers<[1], [0], [0], [1], [0, 0, 1, 1], [], []>} : vector<16x16xbf16>, vector<16x8xbf16>, vector<16x8xf32> -> vector<16x8xf32>
    %452 = arith.truncf %451 : vector<16x8xf32> to vector<16x8xbf16>
    %c1_341 = arith.constant 1 : index
    %c3_342 = arith.constant 3 : index
    %c0_343 = arith.constant 0 : index
    %c0_344 = arith.constant 0 : index
    %453 = vector.load %arg13[%c1_341, %c3_342, %c0_343, %c0_344] : memref<2x4x8x32xbf16, #tpu.memory_space<vmem>>, vector<1x1x8x32xbf16>
    %454 = vector.shape_cast %453 : vector<1x1x8x32xbf16> to vector<8x32xbf16>
    %cst_345 = arith.constant dense<0.000000e+00> : vector<16x32xf32>
    %455 = tpu.matmul %452, %454, %cst_345 {dimension_numbers = #tpu.dot_dimension_numbers<[1], [0], [0], [1], [0, 0, 1, 1], [], []>} : vector<16x8xbf16>, vector<8x32xbf16>, vector<16x32xf32> -> vector<16x32xf32>
    %456 = arith.addf %414, %455 : vector<16x32xf32>
    %457 = arith.addf %262, %456 : vector<16x32xf32>
    %c1_346 = arith.constant 1 : index
    %c0_347 = arith.constant 0 : index
    %c0_348 = arith.constant 0 : index
    %458 = vector.load %arg14[%c1_346, %c0_347, %c0_348] : memref<2x1x32xf32, #tpu.memory_space<vmem>>, vector<1x1x32xf32>
    %459 = vector.shape_cast %458 : vector<1x1x32xf32> to vector<1x32xf32>
    %460 = vector.broadcast %459 : vector<1x32xf32> to vector<16x32xf32>
    %461 = arith.addf %457, %460 : vector<16x32xf32>
    %c1_349 = arith.constant 1 : index
    %c0_350 = arith.constant 0 : index
    %c0_351 = arith.constant 0 : index
    %462 = vector.load %arg15[%c1_349, %c0_350, %c0_351] : memref<2x1x32xf32, #tpu.memory_space<vmem>>, vector<1x1x32xf32>
    %463 = vector.shape_cast %462 : vector<1x1x32xf32> to vector<1x32xf32>
    %c1_352 = arith.constant 1 : index
    %c0_353 = arith.constant 0 : index
    %c0_354 = arith.constant 0 : index
    %464 = vector.load %arg16[%c1_352, %c0_353, %c0_354] : memref<2x1x32xf32, #tpu.memory_space<vmem>>, vector<1x1x32xf32>
    %465 = vector.shape_cast %464 : vector<1x1x32xf32> to vector<1x32xf32>
    %cst_355 = arith.constant dense<0.000000e+00> : vector<16xf32>
    %466 = vector.multi_reduction <add>, %461, %cst_355 [1] : vector<16x32xf32> to vector<16xf32>
    %467 = vector.shape_cast %466 : vector<16xf32> to vector<16x1xf32>
    %cst_356 = arith.constant 3.200000e+01 : f32
    %468 = vector.broadcast %cst_356 : f32 to vector<16x1xf32>
    %469 = arith.divf %467, %468 : vector<16x1xf32>
    %470 = vector.broadcast %469 : vector<16x1xf32> to vector<16x32xf32>
    %471 = arith.subf %461, %470 : vector<16x32xf32>
    %472 = arith.mulf %471, %471 : vector<16x32xf32>
    %cst_357 = arith.constant dense<0.000000e+00> : vector<16xf32>
    %473 = vector.multi_reduction <add>, %472, %cst_357 [1] : vector<16x32xf32> to vector<16xf32>
    %474 = vector.shape_cast %473 : vector<16xf32> to vector<16x1xf32>
    %cst_358 = arith.constant 3.200000e+01 : f32
    %475 = vector.broadcast %cst_358 : f32 to vector<16x1xf32>
    %476 = arith.divf %474, %475 : vector<16x1xf32>
    %477 = vector.broadcast %469 : vector<16x1xf32> to vector<16x32xf32>
    %478 = arith.subf %461, %477 : vector<16x32xf32>
    %cst_359 = arith.constant 9.99999997E-7 : f32
    %479 = vector.broadcast %cst_359 : f32 to vector<16x1xf32>
    %480 = arith.addf %476, %479 : vector<16x1xf32>
    %481 = math.rsqrt %480 : vector<16x1xf32>
    %482 = vector.broadcast %481 : vector<16x1xf32> to vector<16x32xf32>
    %483 = arith.mulf %478, %482 : vector<16x32xf32>
    %484 = vector.broadcast %463 : vector<1x32xf32> to vector<16x32xf32>
    %485 = arith.mulf %483, %484 : vector<16x32xf32>
    %486 = vector.broadcast %465 : vector<1x32xf32> to vector<16x32xf32>
    %487 = arith.addf %485, %486 : vector<16x32xf32>
    %488 = arith.truncf %487 : vector<16x32xf32> to vector<16x32xbf16>
    %c1_360 = arith.constant 1 : index
    %c0_361 = arith.constant 0 : index
    %c0_362 = arith.constant 0 : index
    %489 = vector.load %arg17[%c1_360, %c0_361, %c0_362] : memref<2x32x64xbf16, #tpu.memory_space<vmem>>, vector<1x32x64xbf16>
    %490 = vector.shape_cast %489 : vector<1x32x64xbf16> to vector<32x64xbf16>
    %cst_363 = arith.constant dense<0.000000e+00> : vector<16x64xf32>
    %491 = tpu.matmul %488, %490, %cst_363 {dimension_numbers = #tpu.dot_dimension_numbers<[1], [0], [0], [1], [0, 0, 1, 1], [], []>} : vector<16x32xbf16>, vector<32x64xbf16>, vector<16x64xf32> -> vector<16x64xf32>
    %c1_364 = arith.constant 1 : index
    %c0_365 = arith.constant 0 : index
    %c0_366 = arith.constant 0 : index
    %492 = vector.load %arg18[%c1_364, %c0_365, %c0_366] : memref<2x1x64xf32, #tpu.memory_space<vmem>>, vector<1x1x64xf32>
    %493 = vector.shape_cast %492 : vector<1x1x64xf32> to vector<1x64xf32>
    %494 = vector.broadcast %493 : vector<1x64xf32> to vector<16x64xf32>
    %495 = arith.addf %491, %494 : vector<16x64xf32>
    %cst_367 = arith.constant 5.000000e-01 : f32
    %496 = vector.broadcast %cst_367 : f32 to vector<16x64xf32>
    %497 = arith.mulf %496, %495 : vector<16x64xf32>
    %cst_368 = arith.constant 4.471500e-02 : f32
    %498 = vector.broadcast %cst_368 : f32 to vector<16x64xf32>
    %499 = arith.mulf %498, %495 : vector<16x64xf32>
    %500 = arith.mulf %499, %495 : vector<16x64xf32>
    %501 = arith.mulf %500, %495 : vector<16x64xf32>
    %502 = arith.addf %495, %501 : vector<16x64xf32>
    %cst_369 = arith.constant 0.797884583 : f32
    %503 = vector.broadcast %cst_369 : f32 to vector<16x64xf32>
    %504 = arith.mulf %503, %502 : vector<16x64xf32>
    %505 = math.tanh %504 : vector<16x64xf32>
    %cst_370 = arith.constant 1.000000e+00 : f32
    %506 = vector.broadcast %cst_370 : f32 to vector<16x64xf32>
    %507 = arith.addf %506, %505 : vector<16x64xf32>
    %508 = arith.mulf %497, %507 : vector<16x64xf32>
    %509 = arith.truncf %508 : vector<16x64xf32> to vector<16x64xbf16>
    %c1_371 = arith.constant 1 : index
    %c0_372 = arith.constant 0 : index
    %c0_373 = arith.constant 0 : index
    %510 = vector.load %arg19[%c1_371, %c0_372, %c0_373] : memref<2x64x32xbf16, #tpu.memory_space<vmem>>, vector<1x64x32xbf16>
    %511 = vector.shape_cast %510 : vector<1x64x32xbf16> to vector<64x32xbf16>
    %cst_374 = arith.constant dense<0.000000e+00> : vector<16x32xf32>
    %512 = tpu.matmul %509, %511, %cst_374 {dimension_numbers = #tpu.dot_dimension_numbers<[1], [0], [0], [1], [0, 0, 1, 1], [], []>} : vector<16x64xbf16>, vector<64x32xbf16>, vector<16x32xf32> -> vector<16x32xf32>
    %c1_375 = arith.constant 1 : index
    %c0_376 = arith.constant 0 : index
    %c0_377 = arith.constant 0 : index
    %513 = vector.load %arg20[%c1_375, %c0_376, %c0_377] : memref<2x1x32xf32, #tpu.memory_space<vmem>>, vector<1x1x32xf32>
    %514 = vector.shape_cast %513 : vector<1x1x32xf32> to vector<1x32xf32>
    %515 = vector.broadcast %514 : vector<1x32xf32> to vector<16x32xf32>
    %516 = arith.addf %512, %515 : vector<16x32xf32>
    %517 = arith.addf %461, %516 : vector<16x32xf32>
    %c0_378 = arith.constant 0 : index
    %c0_379 = arith.constant 0 : index
    %518 = vector.load %arg21[%c0_378, %c0_379] : memref<1x32xf32, #tpu.memory_space<vmem>>, vector<1x32xf32>
    %c0_380 = arith.constant 0 : index
    %c0_381 = arith.constant 0 : index
    %519 = vector.load %arg22[%c0_380, %c0_381] : memref<1x32xf32, #tpu.memory_space<vmem>>, vector<1x32xf32>
    %cst_382 = arith.constant dense<0.000000e+00> : vector<16xf32>
    %520 = vector.multi_reduction <add>, %517, %cst_382 [1] : vector<16x32xf32> to vector<16xf32>
    %521 = vector.shape_cast %520 : vector<16xf32> to vector<16x1xf32>
    %cst_383 = arith.constant 3.200000e+01 : f32
    %522 = vector.broadcast %cst_383 : f32 to vector<16x1xf32>
    %523 = arith.divf %521, %522 : vector<16x1xf32>
    %524 = vector.broadcast %523 : vector<16x1xf32> to vector<16x32xf32>
    %525 = arith.subf %517, %524 : vector<16x32xf32>
    %526 = arith.mulf %525, %525 : vector<16x32xf32>
    %cst_384 = arith.constant dense<0.000000e+00> : vector<16xf32>
    %527 = vector.multi_reduction <add>, %526, %cst_384 [1] : vector<16x32xf32> to vector<16xf32>
    %528 = vector.shape_cast %527 : vector<16xf32> to vector<16x1xf32>
    %cst_385 = arith.constant 3.200000e+01 : f32
    %529 = vector.broadcast %cst_385 : f32 to vector<16x1xf32>
    %530 = arith.divf %528, %529 : vector<16x1xf32>
    %531 = vector.broadcast %523 : vector<16x1xf32> to vector<16x32xf32>
    %532 = arith.subf %517, %531 : vector<16x32xf32>
    %cst_386 = arith.constant 9.99999997E-7 : f32
    %533 = vector.broadcast %cst_386 : f32 to vector<16x1xf32>
    %534 = arith.addf %530, %533 : vector<16x1xf32>
    %535 = math.rsqrt %534 : vector<16x1xf32>
    %536 = vector.broadcast %535 : vector<16x1xf32> to vector<16x32xf32>
    %537 = arith.mulf %532, %536 : vector<16x32xf32>
    %538 = vector.broadcast %518 : vector<1x32xf32> to vector<16x32xf32>
    %539 = arith.mulf %537, %538 : vector<16x32xf32>
    %540 = vector.broadcast %519 : vector<1x32xf32> to vector<16x32xf32>
    %541 = arith.addf %539, %540 : vector<16x32xf32>
    %c0_387 = arith.constant 0 : index
    %c0_388 = arith.constant 0 : index
    %542 = vector.load %arg23[%c0_387, %c0_388] : memref<16x32xf32, #tpu.memory_space<vmem>>, vector<16x32xf32>
    tpu.vector_store %arg23[%c0_387, %c0_388], %541 {strides = array<i32>} : memref<16x32xf32, #tpu.memory_space<vmem>>, vector<16x32xf32>,
    return
  }
  func.func @transform_0(%arg0: i32) -> (i32, i32) {
    %c0_i32 = arith.constant 0 : i32
    %c0_i32_0 = arith.constant 0 : i32
    return %arg0, %c0_i32 : i32, i32
  }
  func.func @transform_1(%arg0: i32) -> (i32, i32) {
    %c0_i32 = arith.constant 0 : i32
    %c0_i32_0 = arith.constant 0 : i32
    %c0_i32_1 = arith.constant 0 : i32
    return %c0_i32, %c0_i32_0 : i32, i32
  }
  func.func @transform_2(%arg0: i32) -> (i32, i32) {
    %c0_i32 = arith.constant 0 : i32
    %c0_i32_0 = arith.constant 0 : i32
    %c0_i32_1 = arith.constant 0 : i32
    return %c0_i32, %c0_i32_0 : i32, i32
  }
  func.func @transform_3(%arg0: i32) -> (i32, i32) {
    %c0_i32 = arith.constant 0 : i32
    %c0_i32_0 = arith.constant 0 : i32
    %c0_i32_1 = arith.constant 0 : i32
    return %c0_i32, %c0_i32_0 : i32, i32
  }
  func.func @transform_4(%arg0: i32) -> (i32, i32, i32) {
    %c0_i32 = arith.constant 0 : i32
    %c0_i32_0 = arith.constant 0 : i32
    %c0_i32_1 = arith.constant 0 : i32
    %c0_i32_2 = arith.constant 0 : i32
    return %c0_i32, %c0_i32_0, %c0_i32_1 : i32, i32, i32
  }
  func.func @transform_5(%arg0: i32) -> (i32, i32, i32) {
    %c0_i32 = arith.constant 0 : i32
    %c0_i32_0 = arith.constant 0 : i32
    %c0_i32_1 = arith.constant 0 : i32
    %c0_i32_2 = arith.constant 0 : i32
    return %c0_i32, %c0_i32_0, %c0_i32_1 : i32, i32, i32
  }
  func.func @transform_6(%arg0: i32) -> (i32, i32, i32, i32) {
    %c0_i32 = arith.constant 0 : i32
    %c0_i32_0 = arith.constant 0 : i32
    %c0_i32_1 = arith.constant 0 : i32
    %c0_i32_2 = arith.constant 0 : i32
    %c0_i32_3 = arith.constant 0 : i32
    return %c0_i32, %c0_i32_0, %c0_i32_1, %c0_i32_2 : i32, i32, i32, i32
  }
  func.func @transform_7(%arg0: i32) -> (i32, i32, i32, i32) {
    %c0_i32 = arith.constant 0 : i32
    %c0_i32_0 = arith.constant 0 : i32
    %c0_i32_1 = arith.constant 0 : i32
    %c0_i32_2 = arith.constant 0 : i32
    %c0_i32_3 = arith.constant 0 : i32
    return %c0_i32, %c0_i32_0, %c0_i32_1, %c0_i32_2 : i32, i32, i32, i32
  }
  func.func @transform_8(%arg0: i32) -> (i32, i32, i32, i32) {
    %c0_i32 = arith.constant 0 : i32
    %c0_i32_0 = arith.constant 0 : i32
    %c0_i32_1 = arith.constant 0 : i32
    %c0_i32_2 = arith.constant 0 : i32
    %c0_i32_3 = arith.constant 0 : i32
    return %c0_i32, %c0_i32_0, %c0_i32_1, %c0_i32_2 : i32, i32, i32, i32
  }
  func.func @transform_9(%arg0: i32) -> (i32, i32, i32, i32) {
    %c0_i32 = arith.constant 0 : i32
    %c0_i32_0 = arith.constant 0 : i32
    %c0_i32_1 = arith.constant 0 : i32
    %c0_i32_2 = arith.constant 0 : i32
    %c0_i32_3 = arith.constant 0 : i32
    return %c0_i32, %c0_i32_0, %c0_i32_1, %c0_i32_2 : i32, i32, i32, i32
  }
  func.func @transform_10(%arg0: i32) -> (i32, i32, i32, i32) {
    %c0_i32 = arith.constant 0 : i32
    %c0_i32_0 = arith.constant 0 : i32
    %c0_i32_1 = arith.constant 0 : i32
    %c0_i32_2 = arith.constant 0 : i32
    %c0_i32_3 = arith.constant 0 : i32
    return %c0_i32, %c0_i32_0, %c0_i32_1, %c0_i32_2 : i32, i32, i32, i32
  }
  func.func @transform_11(%arg0: i32) -> (i32, i32, i32, i32) {
    %c0_i32 = arith.constant 0 : i32
    %c0_i32_0 = arith.constant 0 : i32
    %c0_i32_1 = arith.constant 0 : i32
    %c0_i32_2 = arith.constant 0 : i32
    %c0_i32_3 = arith.constant 0 : i32
    return %c0_i32, %c0_i32_0, %c0_i32_1, %c0_i32_2 : i32, i32, i32, i32
  }
  func.func @transform_12(%arg0: i32) -> (i32, i32, i32, i32) {
    %c0_i32 = arith.constant 0 : i32
    %c0_i32_0 = arith.constant 0 : i32
    %c0_i32_1 = arith.constant 0 : i32
    %c0_i32_2 = arith.constant 0 : i32
    %c0_i32_3 = arith.constant 0 : i32
    return %c0_i32, %c0_i32_0, %c0_i32_1, %c0_i32_2 : i32, i32, i32, i32
  }
  func.func @transform_13(%arg0: i32) -> (i32, i32, i32) {
    %c0_i32 = arith.constant 0 : i32
    %c0_i32_0 = arith.constant 0 : i32
    %c0_i32_1 = arith.constant 0 : i32
    %c0_i32_2 = arith.constant 0 : i32
    return %c0_i32, %c0_i32_0, %c0_i32_1 : i32, i32, i32
  }
  func.func @transform_14(%arg0: i32) -> (i32, i32, i32) {
    %c0_i32 = arith.constant 0 : i32
    %c0_i32_0 = arith.constant 0 : i32
    %c0_i32_1 = arith.constant 0 : i32
    %c0_i32_2 = arith.constant 0 : i32
    return %c0_i32, %c0_i32_0, %c0_i32_1 : i32, i32, i32
  }
  func.func @transform_15(%arg0: i32) -> (i32, i32, i32) {
    %c0_i32 = arith.constant 0 : i32
    %c0_i32_0 = arith.constant 0 : i32
    %c0_i32_1 = arith.constant 0 : i32
    %c0_i32_2 = arith.constant 0 : i32
    return %c0_i32, %c0_i32_0, %c0_i32_1 : i32, i32, i32
  }
  func.func @transform_16(%arg0: i32) -> (i32, i32, i32) {
    %c0_i32 = arith.constant 0 : i32
    %c0_i32_0 = arith.constant 0 : i32
    %c0_i32_1 = arith.constant 0 : i32
    %c0_i32_2 = arith.constant 0 : i32
    return %c0_i32, %c0_i32_0, %c0_i32_1 : i32, i32, i32
  }
  func.func @transform_17(%arg0: i32) -> (i32, i32, i32) {
    %c0_i32 = arith.constant 0 : i32
    %c0_i32_0 = arith.constant 0 : i32
    %c0_i32_1 = arith.constant 0 : i32
    %c0_i32_2 = arith.constant 0 : i32
    return %c0_i32, %c0_i32_0, %c0_i32_1 : i32, i32, i32
  }
  func.func @transform_18(%arg0: i32) -> (i32, i32, i32) {
    %c0_i32 = arith.constant 0 : i32
    %c0_i32_0 = arith.constant 0 : i32
    %c0_i32_1 = arith.constant 0 : i32
    %c0_i32_2 = arith.constant 0 : i32
    return %c0_i32, %c0_i32_0, %c0_i32_1 : i32, i32, i32
  }
  func.func @transform_19(%arg0: i32) -> (i32, i32, i32) {
    %c0_i32 = arith.constant 0 : i32
    %c0_i32_0 = arith.constant 0 : i32
    %c0_i32_1 = arith.constant 0 : i32
    %c0_i32_2 = arith.constant 0 : i32
    return %c0_i32, %c0_i32_0, %c0_i32_1 : i32, i32, i32
  }
  func.func @transform_20(%arg0: i32) -> (i32, i32) {
    %c0_i32 = arith.constant 0 : i32
    %c0_i32_0 = arith.constant 0 : i32
    %c0_i32_1 = arith.constant 0 : i32
    return %c0_i32, %c0_i32_0 : i32, i32
  }
  func.func @transform_21(%arg0: i32) -> (i32, i32) {
    %c0_i32 = arith.constant 0 : i32
    %c0_i32_0 = arith.constant 0 : i32
    %c0_i32_1 = arith.constant 0 : i32
    return %c0_i32, %c0_i32_0 : i32, i32
  }
  func.func @transform_22(%arg0: i32) -> (i32, i32) {
    %c0_i32 = arith.constant 0 : i32
    %c0_i32_0 = arith.constant 0 : i32
    return %arg0, %c0_i32 : i32, i32
  }
}

</mosaic_0001>

<bundles_post_ra>
// kernel: siglip_vision_forward.1
= control target key start
LH: loop header
LB: loop body
LE: loop exit
PB: predicated region body
PF: predicated region fallthrough
CT: control target
= control target key end

     0   :  { %s6579_s0 = inlined_call_operand.vmem [shape: bf16[32,192], index: 0, kind: input, shape index: {}]   ;;  %s6580_s1 = inlined_call_operand.vmem [shape: bf16[192,32], index: 1, kind: input, shape index: {}]   ;;  %s6581_s2 = inlined_call_operand.vmem [shape: f32[1,32], index: 2, kind: input, shape index: {}]   ;;  %s6582_s3 = inlined_call_operand.vmem [shape: f32[16,32], index: 3, kind: input, shape index: {}]   ;;  %s6583_s4 = inlined_call_operand.vmem [shape: f32[2,1,32], index: 4, kind: input, shape index: {}]   ;;  %s6584_s5 = inlined_call_operand.vmem [shape: f32[2,1,32], index: 5, kind: input, shape index: {}]   ;;  %s6585_s6 = inlined_call_operand.vmem [shape: bf16[2,4,32,8], index: 6, kind: input, shape index: {}]   ;;  %s6586_s7 = inlined_call_operand.vmem [shape: f32[2,4,1,8], index: 7, kind: input, shape index: {}]   ;;  %s6587_s8 = inlined_call_operand.vmem [shape: bf16[2,4,32,8], index: 8, kind: input, shape index: {}]   ;;  %s6588_s9 = inlined_call_operand.vmem [shape: f32[2,4,1,8], index: 9, kind: input, shape index: {}]   ;;  %s6589_s10 = inlined_call_operand.vmem [shape: bf16[2,4,32,8], index: 10, kind: input, shape index: {}]   ;;  %s6590_s11 = inlined_call_operand.vmem [shape: f32[2,4,1,8], index: 11, kind: input, shape index: {}]   ;;  %s6591_s12 = inlined_call_operand.vmem [shape: bf16[2,4,8,32], index: 12, kind: input, shape index: {}]   ;;  %s6592_s13 = inlined_call_operand.vmem [shape: f32[2,1,32], index: 13, kind: input, shape index: {}]   ;;  %s6593_s14 = inlined_call_operand.vmem [shape: f32[2,1,32], index: 14, kind: input, shape index: {}]   ;;  %s6594_s15 = inlined_call_operand.vmem [shape: f32[2,1,32], index: 15, kind: input, shape index: {}]   ;;  %s6595_s16 = inlined_call_operand.vmem [shape: bf16[2,32,64], index: 16, kind: input, shape index: {}]   ;;  %s6596_s17 = inlined_call_operand.vmem [shape: f32[2,1,64], index: 17, kind: input, shape index: {}]   ;;  %s6597_s18 = inlined_call_operand.vmem [shape: bf16[2,64,32], index: 18, kind: input, shape index: {}]   ;;  %s6598_s19 = inlined_call_operand.vmem [shape: f32[2,1,32], index: 19, kind: input, shape index: {}]   ;;  %s6599_s20 = inlined_call_operand.vmem [shape: f32[1,32], index: 20, kind: input, shape index: {}]   ;;  %s6600_s21 = inlined_call_operand.vmem [shape: f32[1,32], index: 21, kind: input, shape index: {}]   ;;  %s6601_s22 = inlined_call_operand.hbm [shape: f32[32,32], index: 22, kind: output, shape index: {}]  }
   0x1   :  { %6615 = sst [smem:[#allocation11_spill]] %s6579_s0 }
   0x2   :  { %6616 = sst [smem:[#allocation12_spill]] %s6580_s1 }
   0x3   :  { %6617 = sst [smem:[#allocation13_spill]] %s6581_s2 }
   0x4   :  { %6618 = sst [smem:[#allocation14_spill]] %s6582_s3 }
   0x5   :  { %6619 = sst [smem:[#allocation15_spill]] %s6583_s4 }
   0x6   :  { %6620 = sst [smem:[#allocation16_spill]] %s6584_s5 }
   0x7   :  { %6621 = sst [smem:[#allocation17_spill]] %s6585_s6 }
   0x8   :  { %6622 = sst [smem:[#allocation18_spill]] %s6586_s7 }
   0x9   :  { %6623 = sst [smem:[#allocation19_spill]] %s6587_s8 }
   0xa   :  { %6624 = sst [smem:[#allocation20_spill]] %s6588_s9 }
   0xb   :  { %6625 = sst [smem:[#allocation21_spill]] %s6589_s10 }
   0xc   :  { %6626 = sst [smem:[#allocation22_spill]] %s6601_s22 }
   0xd   :  { %27 = vsyncpa [#allocation3], 0 }
   0xe   :  { %29 = vsyncpa [#allocation3 + $0x1], 0  ;;  %s5679_s3 = smov 0   ;;  %s5681_s28 = smov 0  }
   0xf   :  { %s5683_s29 = smov 0   ;;  %s5685_s30 = smov 0  }
  0x10 LB: > { %6627 = sst [smem:[#allocation5_spill]] %s5544_s3  ;;  %s5700_s4 = sadd.s32 4294967295, %s5556_s30   ;;  %s5556_s30 = sphi %s5685_s30, %s6650_s30   ;;  %s5552_s29 = sphi %s5683_s29, %s6652_s29   ;;  %s5548_s28 = sphi %s5681_s28, %s6654_s28   ;;  %s5544_s3 = sphi %s5679_s3, %s6653_s3  }
  0x11   : > { %6628 = sst [smem:[#allocation6_spill]] %s5552_s29  ;;  %s4459_s0 = sadd.s32 4294967294, %s5556_s30  }
  0x12   : > { %6629 = sst [smem:[#allocation7_spill]] %s5556_s30  ;;  %s5704_s23 = sadd.s32 1, %s5556_s30  }
  0x13   : > { %6630 = sst [smem:[#allocation8_spill]] %s5704_s23  ;;  %s509_s1 = sadd.s32 1, %s5552_s29 }
  0x14   : > { %s506_s5 = ssub.s32 %s5556_s30, %s5704_s23  ;;  %p519_p0 = scmp.ne.s32.totalorder %s5552_s29, %s5548_s28 }
  0x15   : > { %p507_p1 = scmp.eq.s32.totalorder %s506_s5, 0  ;;  %p520_p2 = scmp.eq.s32.totalorder %s5700_s4, 1 }
  0x16   : > { %p525_p3 = scmp.ne.s32.totalorder %s5548_s28, %s5544_s3  ;;  %p526_p4 = scmp.eq.s32.totalorder %s4459_s0, 1 }
  0x17   : > { %s5715_s24 = scalar_select %p507_p1, %s5552_s29, %s509_s1  }
  0x18   : > { %p5717_p5 = por %p520_p2, %p519_p0  ;;  %p5721_p6 = por %p526_p4, %p525_p3 }
  0x19   : > { %6631 = sst [smem:[#allocation9_spill]] %s5715_s24  ;;  %p4462_p7 = scmp.ge.s32.totalorder %s5556_s30, 1 }
  0x1a   : > { %s6633_s25 = scalar_select %p5721_p6, 1, 0 }
  0x1b   : > { %p617_p8 = scmp.lt.s32.totalorder %s5556_s30, 3 }
  0x1c   : > { %6634 = sst [smem:[#allocation10_spill]] %s6633_s25 }
  0x1d   : > { %p618_p9 = pnand %p4462_p7, %p617_p8 }
  0x1e   : > { %s6635_s27 = sld [smem:[#allocation12_spill]] (!%p618_p9)  ;;  %s4464_s0 = sshll.u32 (!%p618_p9), %s5700_s4, 1 }
  0x1f   : > { %621 = sbr.rel (%p618_p9) target bundleno = 10124 (0x278c), region = 108  ;;  %p681_p10 = scmp.lt.s32.totalorder (!%p618_p9), %s4464_s0, 3 }
  0x20   : > { %s6636_s30 = sld [smem:[#allocation11_spill]] (!%p618_p9)  ;;  %s4772_s23 = sshll.u32 (!%p618_p9), %s5700_s4, 8 }
  0x21   : > { %s6637_s22 = sld [smem:[#allocation13_spill]] (!%p618_p9) }
  0x22   : > { %s6639_s24 = sld [smem:[#allocation17_spill]] (!%p618_p9) }
  0x23   : > { %s6640_s25 = sld [smem:[#allocation15_spill]] (!%p618_p9) }
  0x24   : > { %v5329_v0 = vld [vmem:[%s6635_s27 + $0x38] sm:$0xff]   ;;  %v5558_v1 = vmov 0   ;;  %v5330_v2 = vld [vmem:[%s6635_s27 + $0x30] sm:$0xff]   ;;  %s6656_s0 = smov (!%p681_p10, %s4464_s0), 3  ;;  %v5331_v3 = vld [vmem:[%s6635_s27 + $0x28] sm:$0xff]   ;;  %vm803_vm0 = vcmask 523264  }
  0x25   : > { %807 = vmatprep.subr.bf16.mxu0 %v5558_v1  ;;  %s4771_s26 = sshll.u32 %s6656_s0, 3  ;;  %v5332_v4 = vld [vmem:[%s6635_s27 + $0x20] sm:$0xff]   ;;  %v5333_v5 = vld [vmem:[%s6635_s27 + $0x18] sm:$0xff]   ;;  %v5334_v7 = vld [vmem:[%s6635_s27 + $0x10] sm:$0xff]   ;;  %vm854_vm1 = vcmask 261120   ;;  %v5559_v39 = vmov 0.0  }
  0x26   : > { %808 = vmatpush1.bf16.msra.mxu0 %v5329_v0  ;;  %s685_s1 = scalar_lea.vmem %s6636_s30, %s4771_s26  ;;  %v5335_v8 = vld [vmem:[%s6635_s27 + $0x8] sm:$0xff]   ;;  %v5336_v9 = vld [vmem:[%s6635_s27] sm:$0xff]   ;;  %v5337_v10 = vld [vmem:[%s6635_s27 + $0x58] sm:$0xff]   ;;  %s6638_s26 = sld [smem:[#allocation14_spill]]  ;;  %4909 = vmatprep.subr.bf16.mxu1 %v5559_v39  ;;  %vm5560_vm2 = vmmov 0   ;;  %vm1096_vm3 = vcmask 64512  }
  0x27   : > { %809 = vmatprep.subr.bf16.mxu0 %v5558_v1  ;;  %v5343_v6 = vld [vmem:[%s685_s1 + $0x4] ss:$8 sps:$4 sm:$0xff]   ;;  %v5338_v11 = vld [vmem:[%s6635_s27 + $0x50] sm:$0xff]   ;;  %v5341_v14 = vld [vmem:[%s685_s1] ss:$8 sps:$4 sm:$0xff]   ;;  %4913 = vmatprep.mubr.msk.bf16.mxu1 %vm5560_vm2, %v5559_v39  ;;  %s6641_s5 = sld [smem:[#allocation16_spill]] }
  0x28   : > { %4482 = vmatprep.mubr.msk.bf16.mxu0 %vm803_vm0, %v5343_v6  ;;  %v5339_v12 = vld [vmem:[%s6635_s27 + $0x48] sm:$0xff]   ;;  %v5340_v13 = vld [vmem:[%s6635_s27 + $0x40] sm:$0xff]   ;;  %s6642_s8 = sld [smem:[#allocation19_spill]]  ;;  %vm1144_vm4 = vcmask 130048   ;;  %vm1536_vm5 = vcmask 1043456   ;;  %s677_s30 = sand.u32 1, %s5548_s28  }
  0x29   : > { %v4467_v15 = vld [vmem:[%s6637_s22] ss:$0 sm:$0xff]  ;;  %v5344_v38 = vld [vmem:[%s6639_s24 + $0x8] sm:$0xff]   ;;  %s6643_s10 = sld [smem:[#allocation21_spill]]  ;;  %s4463_s2 = sshll.u32 %s677_s30, 4 }
  0x2a   : > { %810 = vmatpush1.bf16.msra.mxu0 %v5330_v2  ;;  %4910 = vmatpush3.bf16.msra.mxu1 %v5344_v38  ;;  %v5345_v40 = vld [vmem:[%s6639_s24] sm:$0xff]   ;;  %s6644_s9 = sld [smem:[#allocation20_spill]]  ;;  %s679_s3 = scalar_lea.vmem [#allocation2], %s4463_s2 }
  0x2b   : > { %811 = vmatprep.subr.bf16.mxu0 %v5558_v1  ;;  %4911 = vmatprep.subr.bf16.mxu1 %v5559_v39  ;;  %v4483_v49 = vld [vmem:[%s6640_s25] ss:$0 sm:$0xff]  ;;  %s6645_s7 = sld [smem:[#allocation18_spill]]  ;;  %s6539_s1 = scalar_lea.sflag [#allocation3], %s677_s30 }
  0x2c   : > { %v848_v17 = vld [vmem:[%s6638_s26] sm:$0xff]  ;;  %v849_v22 = vld [vmem:[%s6638_s26 + $0x8] sm:$0xff]  ;;  %s6646_s0 = sld [smem:[#allocation22_spill]]  ;;  %s5561_s2 = smov [#allocation2]  }
  0x2d   : > { %v4484_v53 = vld [vmem:[%s6641_s5] ss:$0 sm:$0xff]  ;;  %s5500_s29 = sshll.u32 %s5561_s2, 4  ;;  %s5501_s29 = int_to_ptr.vmem [resolvable:$false] %s5500_s29 }
  0x2e   : > { %812 = vmatpush1.bf16.msra.mxu0 %v5331_v3  ;;  %4912 = vmatpush3.bf16.msra.mxu1 %v5345_v40  ;;  %v5346_v57 = vld [vmem:[%s6642_s8 + $0x8] sm:$0xff]   ;;  %v5347_v59 = vld [vmem:[%s6642_s8] sm:$0xff]  }
  0x2f   : > { %813 = vmatprep.subr.bf16.mxu0 %v5558_v1  ;;  %4917 = vmatprep.subr.bf16.mxu1 %v5559_v39  ;;  %v5348_v60 = vld [vmem:[%s6643_s10 + $0x8] sm:$0xff]   ;;  %v5349_v61 = vld [vmem:[%s6643_s10] sm:$0xff]  }
  0x30   : > { %v4489_v3 = vld [vmem:[%s6644_s9] ss:$0 sm:$0xff] }
  0x32   : > { %814 = vmatpush1.bf16.msra.mxu0 %v5332_v4 }
  0x33   : > { %815 = vmatprep.subr.bf16.mxu0 %v5558_v1 }
  0x36   : > { %816 = vmatpush1.bf16.msra.mxu0 %v5333_v5 }
  0x37   : > { %817 = vmatprep.subr.bf16.mxu0 %v5558_v1 }
  0x3a   : > { %818 = vmatpush1.bf16.msra.mxu0 %v5334_v7 }
  0x3b   : > { %819 = vmatprep.subr.bf16.mxu0 %v5558_v1 }
  0x3e   : > { %820 = vmatpush1.bf16.msra.mxu0 %v5335_v8 }
  0x3f   : > { %821 = vmatprep.subr.bf16.mxu0 %v5558_v1 }
  0x42   : > { %822 = vmatpush1.bf16.msra.mxu0 %v5336_v9 }
  0x43   : > { %831 = vmatprep.subr.bf16.mxu0 %v5558_v1 }
  0x46   : > { %832 = vmatpush2.bf16.msra.mxu0 %v5337_v10 }
  0x47   : > { %833 = vmatprep.subr.bf16.mxu0 %v5558_v1 }
  0x4a   : > { %834 = vmatpush2.bf16.msra.mxu0 %v5338_v11 }
  0x4b   : > { %835 = vmatprep.subr.bf16.mxu0 %v5558_v1 }
  0x4e   : > { %836 = vmatpush2.bf16.msra.mxu0 %v5339_v12  ;;  %v4485_v12 = vld [vmem:[%s6645_s7] ss:$0 sm:$0xff] }
  0x4f   : > { %837 = vmatprep.subr.bf16.mxu0 %v5558_v1 }
  0x52   : > { %838 = vmatpush2.bf16.msra.mxu0 %v5340_v13  ;;  %v4493_v13 = vld [vmem:[%s6590_s11] ss:$0 sm:$0xff] }
  0x53   : > { %4969 = vmatprep.subr.bf16.mxu0 %v5559_v39 }
  0x55   : > { %840 = vmatmul.mubr.bf16.vlgmr.msra.gmra.mxu0 %v5341_v14 }
  0x56   : > { %4971 = vmatprep.mubr.msk.bf16.mxu0 %vm5560_vm2, %v5559_v39 }
 0x115   : > { %v841_v16 = vpop.f32.mrf.mxu0 }
 0x116   : > { %v842_v18 = vadd.f32 %v4467_v15, %v841_v16 }
 0x117   : > { %v843_v19 = vpop.f32.mrf.mxu0 }
 0x118   : > { %v5774_v20 = vadd.f32 %v848_v17, %v842_v18 }
 0x119   : > { %v844_v21 = vpop.f32.mrf.mxu0 }
 0x11a   : > { %v845_v23 = vadd.f32 %v4467_v15, %v844_v21  ;;  %v855_v24 = vsel %vm854_vm1, %v5774_v20, 0.0 }
 0x11b   : > { %v846_v25 = vpop.f32.mrf.mxu0  ;;  %856 = vadd.xlane.f32.xlu0 %v855_v24 }
 0x11c   : > { %v5781_v26 = vadd.f32 %v849_v22, %v845_v23 }
 0x11e   : > { %v858_v27 = vsel %vm854_vm1, %v5781_v26, 0.0 }
 0x11f   : > { %859 = vadd.xlane.f32.xlu0 %v858_v27 }
 0x1a4   : > { %v857_v28 = vpop.xlane.xlu0 %856 }
 0x1a5   : > { %v862_v29 = vmul.f32 0.03125, %v857_v28 }
 0x1a7   : > { %v864_v30 = vsub.f32 %v5774_v20, %v862_v29 }
 0x1a8   : > { %v860_v31 = vpop.xlane.xlu0 %859 }
 0x1a9   : > { %v863_v32 = vmul.f32 0.03125, %v860_v31  ;;  %v866_v33 = vmul.f32 %v864_v30, %v864_v30 }
 0x1ab   : > { %v865_v34 = vsub.f32 %v5781_v26, %v863_v32  ;;  %v868_v35 = vsel %vm854_vm1, %v866_v33, 0.0 }
 0x1ac   : > { %869 = vadd.xlane.f32.xlu1 %v868_v35 }
 0x1ad   : > { %v867_v36 = vmul.f32 %v865_v34, %v865_v34 }
 0x1af   : > { %v871_v37 = vsel %vm854_vm1, %v867_v36, 0.0 }
 0x1b0   : > { %872 = vadd.xlane.f32.xlu1 %v871_v37 }
 0x235   : > { %v870_v41 = vpop.xlane.xlu1 %869 }
 0x236   : > { %v874_v42 = vmul.f32 0.03125, %v870_v41 }
 0x238   : > { %v876_v43 = vadd.f32 1e-06, %v874_v42 }
 0x239   : > { %v873_v44 = vpop.xlane.xlu1 %872 }
 0x23a   : > { %5404 = vrsqrt.f32 %v876_v43  ;;  %v875_v45 = vmul.f32 0.03125, %v873_v44 }
 0x23c   : > { %v877_v46 = vadd.f32 1e-06, %v875_v45 }
 0x23e   : > { %5406 = vrsqrt.f32 %v877_v46 }
 0x247   : > { %v5405_v47 = vpop.eup %5404 }
 0x248   : > { %v880_v48 = vmul.f32 %v5405_v47, %v864_v30 }
 0x24a   : > { %v888_v51 = vmul.f32 %v4483_v49, %v880_v48  ;;  %v5350_v48 = vld [vmem:[%s6639_s24 + $0x18] sm:$0xff]  }
 0x24b   : > { %v5407_v50 = vpop.eup %5406 }
 0x24c   : > { %v881_v52 = vmul.f32 %v5407_v50, %v865_v34  ;;  %v896_v55 = vadd.f32 %v4484_v53, %v888_v51  ;;  %v5351_v50 = vld [vmem:[%s6639_s24 + $0x10] sm:$0xff]   ;;  %v5352_v51 = vld [vmem:[%s6642_s8 + $0x18] sm:$0xff]  }
 0x24e   : > { %v889_v54 = vmul.f32 %v4483_v49, %v881_v52  ;;  %v5353_v52 = vld [vmem:[%s6642_s8 + $0x10] sm:$0xff]  }
 0x250   : > { %v897_v56 = vadd.f32 %v4484_v53, %v889_v54  ;;  %v5354_v53 = vld [vmem:[%s6643_s10 + $0x18] sm:$0xff]   ;;  %v5355_v54 = vld [vmem:[%s6643_s10 + $0x10] sm:$0xff]  }
 0x252   : > { %v5812_v58 = vpack.c.bf16 %v897_v56, %v896_v55 }
 0x254   : > { %4914 = vmatmul.mubr.msk.bf16.vlgmr.msra.gmra.mxu1 %vm854_vm1, %v5812_v58 }
 0x255   : > { %4918 = vmatpush3.bf16.msra.mxu1 %v5346_v57  ;;  %4921 = vmatprep.mubr.msk.bf16.mxu1 %vm5560_vm2, %v5559_v39 }
 0x256   : > { %4919 = vmatprep.subr.bf16.mxu1 %v5559_v39 }
 0x259   : > { %4920 = vmatpush3.bf16.msra.mxu1 %v5347_v59 }
 0x25a   : > { %4925 = vmatprep.subr.bf16.mxu1 %v5559_v39 }
 0x25c   : > { %4922 = vmatmul.mubr.msk.bf16.vlgmr.msra.gmra.mxu1 %vm854_vm1, %v5812_v58 }
 0x25d   : > { %4926 = vmatpush3.bf16.msra.mxu1 %v5348_v60  ;;  %4929 = vmatprep.mubr.msk.bf16.mxu1 %vm5560_vm2, %v5559_v39 }
 0x25e   : > { %4927 = vmatprep.subr.bf16.mxu1 %v5559_v39 }
 0x261   : > { %4928 = vmatpush3.bf16.msra.mxu1 %v5349_v61 }
 0x262   : > { %4933 = vmatprep.subr.bf16.mxu1 %v5559_v39 }
 0x264   : > { %4930 = vmatmul.mubr.msk.bf16.vlgmr.msra.gmra.mxu1 %vm854_vm1, %v5812_v58 }
 0x265   : > { %4935 = vmatprep.mubr.msk.bf16.mxu1 %vm5560_vm2, %v5559_v39 }
 0x314   : > { %v959_v62 = vpop.f32.mrf.mxu1 }
 0x315   : > { %v960_v17 = vadd.f32 %v4485_v12, %v959_v62 }
 0x316   : > { %v4915_v63 = vpop.f32.mrf.mxu1 }
 0x318   : > { %v962_v0 = vpop.f32.mrf.mxu1 }
 0x319   : > { %v963_v15 = vadd.f32 %v4485_v12, %v962_v0  ;;  %v4522_v12 = vld [vmem:[%s6590_s11 + $0x1] ss:$0 sm:$0xff] }
 0x31a   : > { %v4916_v1 = vpop.f32.mrf.mxu1 }
 0x31b   : > { %v1094_v22 = vpack.c.bf16 %v963_v15, %v960_v17 }
 0x31c   : > { %v1023_v2 = vpop.f32.mrf.mxu1 }
 0x31d   : > { %v1024_v6 = vadd.f32 %v4489_v3, %v1023_v2  ;;  %v4513_v2 = vld [vmem:[%s6644_s9 + $0x1] ss:$0 sm:$0xff] }
 0x31e   : > { %v4923_v4 = vpop.f32.mrf.mxu1 }
 0x320   : > { %v1026_v5 = vpop.f32.mrf.mxu1 }
 0x321   : > { %v1027_v7 = vadd.f32 %v4489_v3, %v1026_v5 }
 0x322   : > { %v4924_v8 = vpop.f32.mrf.mxu1 }
 0x323   : > { %v1095_v9 = vpack.c.bf16 %v1027_v7, %v1024_v6 }
 0x324   : > { %v1087_v10 = vpop.f32.mrf.mxu1 }
 0x325   : > { %v1101_v11 = vsel %vm1096_vm3, %v1095_v9, 0  ;;  %v1088_v18 = vadd.f32 %v4493_v13, %v1087_v10 }
 0x326   : > { %v4931_v14 = vpop.f32.mrf.mxu1  ;;  %4934 = vmatpush3.bf16.xpose.msra.mxu1 %v1101_v11  ;;  %v4504_v11 = vld [vmem:[%s6645_s7 + $0x1] ss:$0 sm:$0xff] }
 0x327   : > { %4939 = vmatprep.subr.bf16.mxu1 %v5559_v39 }
 0x328   : > { %v1090_v16 = vpop.f32.mrf.mxu1 }
 0x329   : > { %v1091_v19 = vadd.f32 %v4493_v13, %v1090_v16 }
 0x32a   : > { %v4932_v21 = vpop.f32.mrf.mxu1 }
 0x32b   : > { %v1168_v23 = vpack.c.bf16 %v1091_v19, %v1088_v18 }
 0x32d   : > { %4936 = vmatmul.mubr.msk.bf16.vlgmr.msra.gmra.mxu1 %vm1096_vm3, %v1094_v22 }
 0x32e   : > { %4940 = vmatpush3.bf16.msra.mxu1 %v1168_v23  ;;  %4941 = vmatprep.mubr.msk.bf16.mxu1 %vm5560_vm2, %v5559_v39 }
 0x32f   : > { %4945 = vmatprep.subr.bf16.mxu1 %v5559_v39 }
 0x3ed   : > { %v1137_v24 = vpop.f32.mrf.mxu1 }
 0x3ee   : > { %v1145_v25 = vsel %vm1144_vm4, %v1137_v24, -inf }
 0x3ef   : > { %1146 = vmax.xlane.f32.xlu0 %v1145_v25  ;;  %v4937_v27 = vpop.f32.mrf.mxu1 }
 0x3f1   : > { %v1140_v28 = vpop.f32.mrf.mxu1 }
 0x3f2   : > { %v1148_v29 = vsel %vm1144_vm4, %v1140_v28, -inf }
 0x3f3   : > { %1149 = vmax.xlane.f32.xlu1 %v1148_v29  ;;  %v4938_v30 = vpop.f32.mrf.mxu1 }
 0x478   : > { %v1147_v31 = vpop.xlane.xlu0 %1146 }
 0x479   : > { %v1151_v32 = vsub.f32 %v1137_v24, %v1147_v31 }
 0x47b   : > { %v1153_v33 = vmul.f32 1.442695, %v1151_v32 }
 0x47c   : > { %v1150_v34 = vpop.xlane.xlu1 %1149 }
 0x47d   : > { %5408 = vpow2.f32 %v1153_v33  ;;  %v1152_v35 = vsub.f32 %v1140_v28, %v1150_v34 }
 0x47f   : > { %v1155_v36 = vmul.f32 1.442695, %v1152_v35 }
 0x481   : > { %5410 = vpow2.f32 %v1155_v36 }
 0x48a   : > { %v5409_v37 = vpop.eup %5408 }
 0x48b   : > { %v1157_v38 = vsel %vm1144_vm4, %v5409_v37, 0.0 }
 0x48c   : > { %1158 = vadd.xlane.f32.xlu0 %v1157_v38 }
 0x48e   : > { %v5411_v40 = vpop.eup %5410 }
 0x48f   : > { %v1160_v41 = vsel %vm1144_vm4, %v5411_v40, 0.0 }
 0x490   : > { %1161 = vadd.xlane.f32.xlu1 %v1160_v41 }
 0x515   : > { %v1159_v42 = vpop.xlane.xlu0 %1158 }
 0x516   : > { %5412 = vrcp.f32 %v1159_v42 }
 0x519   : > { %v1162_v43 = vpop.xlane.xlu1 %1161 }
 0x51a   : > { %5414 = vrcp.f32 %v1162_v43 }
 0x523   : > { %v5413_v44 = vpop.eup %5412 }
 0x524   : > { %v1165_v46 = vmul.f32 %v5413_v44, %v5409_v37 }
 0x527   : > { %v5415_v45 = vpop.eup %5414 }
 0x528   : > { %v1166_v47 = vmul.f32 %v5415_v45, %v5411_v40  ;;  %v1214_v45 = vld [vmem:[%s6591_s12] sm:$0xf] }
 0x52a   : > { %v1167_v49 = vpack.c.bf16 %v1166_v47, %v1165_v46 }
 0x52c   : > { %4942 = vmatmul.mubr.msk.bf16.vlgmr.msra.gmra.mxu1 %vm1144_vm4, %v1167_v49  ;;  %v1585_v49 = vsel %vm1536_vm5, %v1214_v45, 0 }
 0x52d   : > { %4946 = vmatpush3.bf16.msra.mxu1 %v5350_v48  ;;  %4949 = vmatprep.mubr.msk.bf16.mxu1 %vm5560_vm2, %v5559_v39 }
 0x52e   : > { %4947 = vmatprep.subr.bf16.mxu1 %v5559_v39 }
 0x531   : > { %4948 = vmatpush3.bf16.msra.mxu1 %v5351_v50  ;;  %v5356_v50 = vld [vmem:[%s6642_s8 + $0x28] sm:$0xff]  }
 0x532   : > { %4953 = vmatprep.subr.bf16.mxu1 %v5559_v39 }
 0x534   : > { %4950 = vmatmul.mubr.msk.bf16.vlgmr.msra.gmra.mxu1 %vm854_vm1, %v5812_v58 }
 0x535   : > { %4954 = vmatpush3.bf16.msra.mxu1 %v5352_v51  ;;  %4957 = vmatprep.mubr.msk.bf16.mxu1 %vm5560_vm2, %v5559_v39  ;;  %v5357_v51 = vld [vmem:[%s6642_s8 + $0x20] sm:$0xff]  }
 0x536   : > { %4955 = vmatprep.subr.bf16.mxu1 %v5559_v39 }
 0x539   : > { %4956 = vmatpush3.bf16.msra.mxu1 %v5353_v52  ;;  %v4528_v52 = vld [vmem:[%s6591_s12 + $0x4] sm:$0xf] }
 0x53a   : > { %4961 = vmatprep.subr.bf16.mxu1 %v5559_v39 }
 0x53c   : > { %4958 = vmatmul.mubr.msk.bf16.vlgmr.msra.gmra.mxu1 %vm854_vm1, %v5812_v58 }
 0x53d   : > { %4962 = vmatpush3.bf16.msra.mxu1 %v5354_v53  ;;  %4965 = vmatprep.mubr.msk.bf16.mxu1 %vm5560_vm2, %v5559_v39  ;;  %v1538_v53 = vsel %vm1536_vm5, %v4528_v52, 0 }
 0x53e   : > { %4963 = vmatprep.subr.bf16.mxu1 %v5559_v39 }
 0x541   : > { %4964 = vmatpush3.bf16.msra.mxu1 %v5355_v54 }
 0x542   : > { %4975 = vmatprep.subr.bf16.mxu1 %v5559_v39 }
 0x544   : > { %4966 = vmatmul.mubr.msk.bf16.vlgmr.msra.gmra.mxu1 %vm854_vm1, %v5812_v58 }
 0x545   : > { %4977 = vmatprep.mubr.msk.bf16.mxu1 %vm5560_vm2, %v5559_v39 }
 0x5ec   : > { %v5897_v55 = vpop.f32.mrf.mxu1 }
 0x5ee   : > { %v4943_v56 = vpop.f32.mrf.mxu1 }
 0x5f0   : > { %v5899_v57 = vpop.f32.mrf.mxu1 }
 0x5f1   : > { %v1213_v59 = vpack.c.bf16 %v5899_v57, %v5897_v55  ;;  %v5358_v57 = vld [vmem:[%s6639_s24 + $0x28] sm:$0xff]  }
 0x5f2   : > { %v4944_v60 = vpop.f32.mrf.mxu1 }
 0x5f4   : > { %v1274_v61 = vpop.f32.mrf.mxu1 }
 0x5f5   : > { %v1275_v16 = vadd.f32 %v4504_v11, %v1274_v61 }
 0x5f6   : > { %v4951_v62 = vpop.f32.mrf.mxu1 }
 0x5f7   : > { %v5359_v62 = vld [vmem:[%s6639_s24 + $0x20] sm:$0xff]  }
 0x5f8   : > { %v1277_v63 = vpop.f32.mrf.mxu1 }
 0x5f9   : > { %v1278_v14 = vadd.f32 %v4504_v11, %v1277_v63 }
 0x5fa   : > { %v4952_v0 = vpop.f32.mrf.mxu1 }
 0x5fb   : > { %v1413_v21 = vpack.c.bf16 %v1278_v14, %v1275_v16 }
 0x5fc   : > { %v1340_v1 = vpop.f32.mrf.mxu1 }
 0x5fd   : > { %v1341_v5 = vadd.f32 %v4513_v2, %v1340_v1  ;;  %v5360_v1 = vld [vmem:[%s6643_s10 + $0x28] sm:$0xff]  }
 0x5fe   : > { %v4959_v3 = vpop.f32.mrf.mxu1 }
 0x600   : > { %v1343_v4 = vpop.f32.mrf.mxu1 }
 0x601   : > { %v1344_v6 = vadd.f32 %v4513_v2, %v1343_v4  ;;  %v5361_v4 = vld [vmem:[%s6643_s10 + $0x20] sm:$0xff]  }
 0x602   : > { %v4960_v7 = vpop.f32.mrf.mxu1 }
 0x603   : > { %v1414_v8 = vpack.c.bf16 %v1344_v6, %v1341_v5  ;;  %v4545_v5 = vld [vmem:[%s6644_s9 + $0x2] ss:$0 sm:$0xff] }
 0x604   : > { %v1406_v9 = vpop.f32.mrf.mxu1 }
 0x605   : > { %v1419_v10 = vsel %vm1096_vm3, %v1414_v8, 0  ;;  %v1407_v17 = vadd.f32 %v4522_v12, %v1406_v9 }
 0x606   : > { %v4967_v13 = vpop.f32.mrf.mxu1  ;;  %4970 = vmatpush3.bf16.xpose.msra.mxu0 %v1419_v10 }
 0x607   : > { %4981 = vmatprep.subr.bf16.mxu0 %v5559_v39 }
 0x608   : > { %v1409_v15 = vpop.f32.mrf.mxu1 }
 0x609   : > { %v1410_v18 = vadd.f32 %v4522_v12, %v1409_v15 }
 0x60a   : > { %v4968_v19 = vpop.f32.mrf.mxu1 }
 0x60b   : > { %v1485_v22 = vpack.c.bf16 %v1410_v18, %v1407_v17  ;;  %v4536_v18 = vld [vmem:[%s6645_s7 + $0x2] ss:$0 sm:$0xff] }
 0x60d   : > { %4972 = vmatmul.mubr.msk.bf16.vlgmr.msra.gmra.mxu0 %vm1096_vm3, %v1413_v21  ;;  %4976 = vmatpush3.bf16.msra.mxu1 %v1485_v22 }
 0x60e   : > { %4987 = vmatprep.subr.bf16.mxu1 %v5559_v39  ;;  %4983 = vmatprep.mubr.msk.bf16.mxu0 %vm5560_vm2, %v5559_v39 }
 0x60f   : > { %4982 = vmatpush3.bf16.msra.mxu0 %v1538_v53 }
 0x610   : > { %4993 = vmatprep.subr.bf16.mxu0 %v5559_v39 }
 0x6cd   : > { %v1455_v23 = vpop.f32.mrf.mxu0 }
 0x6ce   : > { %v1462_v24 = vsel %vm1144_vm4, %v1455_v23, -inf }
 0x6cf   : > { %1463 = vmax.xlane.f32.xlu0 %v1462_v24  ;;  %v4973_v25 = vpop.f32.mrf.mxu0 }
 0x6d1   : > { %v1458_v27 = vpop.f32.mrf.mxu0 }
 0x6d2   : > { %v1465_v28 = vsel %vm1144_vm4, %v1458_v27, -inf }
 0x6d3   : > { %1466 = vmax.xlane.f32.xlu1 %v1465_v28  ;;  %v4974_v29 = vpop.f32.mrf.mxu0  ;;  %v4554_v28 = vld [vmem:[%s6590_s11 + $0x2] ss:$0 sm:$0xff] }
 0x758   : > { %v1464_v30 = vpop.xlane.xlu0 %1463 }
 0x759   : > { %v1468_v31 = vsub.f32 %v1455_v23, %v1464_v30 }
 0x75b   : > { %v1470_v32 = vmul.f32 1.442695, %v1468_v31 }
 0x75c   : > { %v1467_v33 = vpop.xlane.xlu1 %1466 }
 0x75d   : > { %5416 = vpow2.f32 %v1470_v32  ;;  %v1469_v34 = vsub.f32 %v1458_v27, %v1467_v33 }
 0x75f   : > { %v1472_v35 = vmul.f32 1.442695, %v1469_v34 }
 0x761   : > { %5418 = vpow2.f32 %v1472_v35 }
 0x76a   : > { %v5417_v36 = vpop.eup %5416 }
 0x76b   : > { %v1474_v37 = vsel %vm1144_vm4, %v5417_v36, 0.0 }
 0x76c   : > { %1475 = vadd.xlane.f32.xlu0 %v1474_v37 }
 0x76e   : > { %v5419_v38 = vpop.eup %5418 }
 0x76f   : > { %v1477_v40 = vsel %vm1144_vm4, %v5419_v38, 0.0 }
 0x770   : > { %1478 = vadd.xlane.f32.xlu1 %v1477_v40 }
 0x7f5   : > { %v1476_v41 = vpop.xlane.xlu0 %1475 }
 0x7f6   : > { %5420 = vrcp.f32 %v1476_v41 }
 0x7f9   : > { %v1479_v42 = vpop.xlane.xlu1 %1478 }
 0x7fa   : > { %5422 = vrcp.f32 %v1479_v42 }
 0x803   : > { %v5421_v43 = vpop.eup %5420 }
 0x804   : > { %v1482_v46 = vmul.f32 %v5421_v43, %v5417_v36 }
 0x807   : > { %v5423_v44 = vpop.eup %5422 }
 0x808   : > { %v1483_v47 = vmul.f32 %v5423_v44, %v5419_v38 }
 0x80a   : > { %v1484_v48 = vpack.c.bf16 %v1483_v47, %v1482_v46 }
 0x80c   : > { %4978 = vmatmul.mubr.msk.bf16.vlgmr.msra.gmra.mxu1 %vm1144_vm4, %v1484_v48 }
 0x80d   : > { %4988 = vmatpush3.bf16.msra.mxu1 %v1585_v49  ;;  %4989 = vmatprep.mubr.msk.bf16.mxu1 %vm5560_vm2, %v5559_v39 }
 0x80e   : > { %5001 = vmatprep.subr.bf16.mxu1 %v5559_v39 }
 0x814   : > { %4990 = vmatmul.mubr.msk.bf16.vlgmr.msra.gmra.mxu1 %vm1096_vm3, %v1213_v59 }
 0x815   : > { %5002 = vmatpush3.bf16.msra.mxu1 %v5356_v50  ;;  %5005 = vmatprep.mubr.msk.bf16.mxu1 %vm5560_vm2, %v5559_v39 }
 0x816   : > { %5003 = vmatprep.subr.bf16.mxu1 %v5559_v39 }
 0x819   : > { %5004 = vmatpush3.bf16.msra.mxu1 %v5357_v51 }
 0x81a   : > { %5017 = vmatprep.subr.bf16.mxu1 %v5559_v39 }
 0x81c   : > { %5006 = vmatmul.mubr.msk.bf16.vlgmr.msra.gmra.mxu1 %vm854_vm1, %v5812_v58 }
 0x81d   : > { %5019 = vmatprep.mubr.msk.bf16.mxu1 %vm5560_vm2, %v5559_v39 }
 0x8cc   : > { %v1523_v54 = vpop.f32.mrf.mxu1 }
 0x8ce   : > { %v4979_v55 = vpop.f32.mrf.mxu1 }
 0x8d0   : > { %v1526_v56 = vpop.f32.mrf.mxu1 }
 0x8d1   : > { %v1530_v59 = vpack.c.bf16 %v1526_v56, %v1523_v54 }
 0x8d2   : > { %v4980_v60 = vpop.f32.mrf.mxu1 }
 0x8d3   : > { %4984 = vmatmul.mubr.msk.bf16.vlgmr.msra.gmra.mxu0 %vm1096_vm3, %v1530_v59  ;;  %v5362_v59 = vld [vmem:[%s6639_s24 + $0x38] sm:$0xff]  }
 0x8d4   : > { %v5957_v61 = vpop.f32.mrf.mxu1  ;;  %4994 = vmatpush3.bf16.msra.mxu0 %v5358_v57  ;;  %4997 = vmatprep.mubr.msk.bf16.mxu0 %vm5560_vm2, %v5559_v39 }
 0x8d5   : > { %4995 = vmatprep.subr.bf16.mxu0 %v5559_v39 }
 0x8d6   : > { %v4991_v63 = vpop.f32.mrf.mxu1 }
 0x8d7   : > { %v5364_v63 = vld [vmem:[%s6643_s10 + $0x38] sm:$0xff]  }
 0x8d8   : > { %v5965_v0 = vpop.f32.mrf.mxu1  ;;  %4996 = vmatpush3.bf16.msra.mxu0 %v5359_v62  ;;  %v5363_v62 = vld [vmem:[%s6639_s24 + $0x30] sm:$0xff]  }
 0x8d9   : > { %5009 = vmatprep.subr.bf16.mxu0 %v5559_v39 }
 0x8da   : > { %v4992_v2 = vpop.f32.mrf.mxu1 }
 0x8db   : > { %4998 = vmatmul.mubr.msk.bf16.vlgmr.msra.gmra.mxu0 %vm854_vm1, %v5812_v58  ;;  %v4560_v2 = vld [vmem:[%s6591_s12 + $0x8] sm:$0xf] }
 0x8dc   : > { %v1753_v3 = vpop.f32.mrf.mxu1  ;;  %5010 = vmatpush3.bf16.msra.mxu0 %v5360_v1  ;;  %5013 = vmatprep.mubr.msk.bf16.mxu0 %vm5560_vm2, %v5559_v39  ;;  %v5365_v1 = vld [vmem:[%s6643_s10 + $0x30] sm:$0xff]  }
 0x8dd   : > { %5011 = vmatprep.subr.bf16.mxu0 %v5559_v39  ;;  %v1754_v8 = vadd.f32 %v4545_v5, %v1753_v3  ;;  %v1950_v3 = vsel %vm1536_vm5, %v4560_v2, 0 }
 0x8de   : > { %v5007_v6 = vpop.f32.mrf.mxu1 }
 0x8e0   : > { %v1756_v7 = vpop.f32.mrf.mxu1  ;;  %5012 = vmatpush3.bf16.msra.mxu0 %v5361_v4 }
 0x8e1   : > { %v1757_v9 = vadd.f32 %v4545_v5, %v1756_v7  ;;  %5023 = vmatprep.subr.bf16.mxu0 %v5559_v39  ;;  %v5366_v7 = vld [vmem:[%s6642_s8 + $0x38] sm:$0xff]  }
 0x8e2   : > { %v5008_v10 = vpop.f32.mrf.mxu1 }
 0x8e3   : > { %v1827_v11 = vpack.c.bf16 %v1757_v9, %v1754_v8  ;;  %5014 = vmatmul.mubr.msk.bf16.vlgmr.msra.gmra.mxu0 %vm854_vm1, %v5812_v58 }
 0x8e4   : > { %5025 = vmatprep.mubr.msk.bf16.mxu0 %vm5560_vm2, %v5559_v39 }
 0x8e5   : > { %v1832_v12 = vsel %vm1096_vm3, %v1827_v11, 0  ;;  %v5367_v11 = vld [vmem:[%s6642_s8 + $0x30] sm:$0xff]  }
 0x8e6   : > { %5018 = vmatpush3.bf16.xpose.msra.mxu1 %v1832_v12  ;;  %v4567_v12 = vld [vmem:[%s6645_s7 + $0x3] ss:$0 sm:$0xff] }
 0x8e7   : > { %5029 = vmatprep.subr.bf16.mxu1 %v5559_v39 }
 0x993   : > { %v5989_v13 = vpop.f32.mrf.mxu0 }
 0x995   : > { %v4985_v14 = vpop.f32.mrf.mxu0 }
 0x997   : > { %v5991_v15 = vpop.f32.mrf.mxu0 }
 0x999   : > { %v4986_v16 = vpop.f32.mrf.mxu0 }
 0x99b   : > { %v1687_v17 = vpop.f32.mrf.mxu0 }
 0x99c   : > { %v1688_v22 = vadd.f32 %v4536_v18, %v1687_v17 }
 0x99d   : > { %v4999_v19 = vpop.f32.mrf.mxu0 }
 0x99f   : > { %v1690_v21 = vpop.f32.mrf.mxu0 }
 0x9a0   : > { %v1691_v23 = vadd.f32 %v4536_v18, %v1690_v21 }
 0x9a1   : > { %v5000_v24 = vpop.f32.mrf.mxu0 }
 0x9a2   : > { %v1826_v25 = vpack.c.bf16 %v1691_v23, %v1688_v22  ;;  %v4585_v23 = vld [vmem:[%s6590_s11 + $0x3] ss:$0 sm:$0xff] }
 0x9a3   : > { %v1819_v27 = vpop.f32.mrf.mxu0 }
 0x9a4   : > { %5020 = vmatmul.mubr.msk.bf16.vlgmr.msra.gmra.mxu1 %vm1096_vm3, %v1826_v25  ;;  %v1820_v31 = vadd.f32 %v4554_v28, %v1819_v27 }
 0x9a5   : > { %v5015_v29 = vpop.f32.mrf.mxu0  ;;  %5031 = vmatprep.mubr.msk.bf16.mxu1 %vm5560_vm2, %v5559_v39  ;;  %5030 = vmatpush3.bf16.msra.mxu1 %v1950_v3 }
 0x9a6   : > { %5043 = vmatprep.subr.bf16.mxu1 %v5559_v39 }
 0x9a7   : > { %v1822_v30 = vpop.f32.mrf.mxu0 }
 0x9a8   : > { %v1823_v32 = vadd.f32 %v4554_v28, %v1822_v30 }
 0x9a9   : > { %v5016_v33 = vpop.f32.mrf.mxu0 }
 0x9aa   : > { %v1898_v34 = vpack.c.bf16 %v1823_v32, %v1820_v31 }
 0x9ac   : > { %5024 = vmatpush3.bf16.msra.mxu0 %v1898_v34  ;;  %v1625_v34 = vadd.f32 %v5965_v0, %v5991_v15 }
 0x9ad   : > { %5035 = vmatprep.subr.bf16.mxu0 %v5559_v39 }
 0xa64   : > { %v1868_v35 = vpop.f32.mrf.mxu1 }
 0xa65   : > { %v1875_v36 = vsel %vm1144_vm4, %v1868_v35, -inf }
 0xa66   : > { %1876 = vmax.xlane.f32.xlu0 %v1875_v36  ;;  %v5021_v37 = vpop.f32.mrf.mxu1 }
 0xa68   : > { %v1871_v38 = vpop.f32.mrf.mxu1 }
 0xa69   : > { %v1878_v40 = vsel %vm1144_vm4, %v1871_v38, -inf }
 0xa6a   : > { %1879 = vmax.xlane.f32.xlu1 %v1878_v40  ;;  %v5022_v41 = vpop.f32.mrf.mxu1  ;;  %v4576_v40 = vld [vmem:[%s6644_s9 + $0x3] ss:$0 sm:$0xff] }
 0xaef   : > { %v1877_v42 = vpop.xlane.xlu0 %1876 }
 0xaf0   : > { %v1881_v43 = vsub.f32 %v1868_v35, %v1877_v42 }
 0xaf2   : > { %v1883_v44 = vmul.f32 1.442695, %v1881_v43 }
 0xaf3   : > { %v1880_v45 = vpop.xlane.xlu1 %1879 }
 0xaf4   : > { %5424 = vpow2.f32 %v1883_v44  ;;  %v1882_v46 = vsub.f32 %v1871_v38, %v1880_v45 }
 0xaf6   : > { %v1885_v47 = vmul.f32 1.442695, %v1882_v46 }
 0xaf8   : > { %5426 = vpow2.f32 %v1885_v47 }
 0xb01   : > { %v5425_v48 = vpop.eup %5424 }
 0xb02   : > { %v1887_v49 = vsel %vm1144_vm4, %v5425_v48, 0.0 }
 0xb03   : > { %1888 = vadd.xlane.f32.xlu0 %v1887_v49 }
 0xb05   : > { %v5427_v50 = vpop.eup %5426 }
 0xb06   : > { %v1890_v51 = vsel %vm1144_vm4, %v5427_v50, 0.0 }
 0xb07   : > { %1891 = vadd.xlane.f32.xlu1 %v1890_v51 }
 0xb8c   : > { %v1889_v52 = vpop.xlane.xlu0 %1888 }
 0xb8d   : > { %5428 = vrcp.f32 %v1889_v52 }
 0xb90   : > { %v1892_v53 = vpop.xlane.xlu1 %1891 }
 0xb91   : > { %5430 = vrcp.f32 %v1892_v53 }
 0xb9a   : > { %v5429_v54 = vpop.eup %5428 }
 0xb9b   : > { %v1895_v56 = vmul.f32 %v5429_v54, %v5425_v48 }
 0xb9e   : > { %v5431_v55 = vpop.eup %5430 }
 0xb9f   : > { %v1896_v57 = vmul.f32 %v5431_v55, %v5427_v50 }
 0xba1   : > { %v1897_v60 = vpack.c.bf16 %v1896_v57, %v1895_v56 }
 0xba3   : > { %5026 = vmatmul.mubr.msk.bf16.vlgmr.msra.gmra.mxu0 %vm1144_vm4, %v1897_v60 }
 0xba4   : > { %5036 = vmatpush3.bf16.msra.mxu0 %v5362_v59  ;;  %5039 = vmatprep.mubr.msk.bf16.mxu0 %vm5560_vm2, %v5559_v39 }
 0xba5   : > { %5037 = vmatprep.subr.bf16.mxu0 %v5559_v39 }
 0xba8   : > { %5038 = vmatpush3.bf16.msra.mxu0 %v5363_v62 }
 0xba9   : > { %5051 = vmatprep.subr.bf16.mxu0 %v5559_v39 }
 0xbab   : > { %5040 = vmatmul.mubr.msk.bf16.vlgmr.msra.gmra.mxu0 %vm854_vm1, %v5812_v58 }
 0xbac   : > { %5052 = vmatpush3.bf16.msra.mxu0 %v5364_v63  ;;  %5055 = vmatprep.mubr.msk.bf16.mxu0 %vm5560_vm2, %v5559_v39 }
 0xbad   : > { %5053 = vmatprep.subr.bf16.mxu0 %v5559_v39 }
 0xbb0   : > { %5054 = vmatpush3.bf16.msra.mxu0 %v5365_v1 }
 0xbb1   : > { %5065 = vmatprep.subr.bf16.mxu0 %v5559_v39 }
 0xbb3   : > { %5056 = vmatmul.mubr.msk.bf16.vlgmr.msra.gmra.mxu0 %vm854_vm1, %v5812_v58 }
 0xbb4   : > { %5067 = vmatprep.mubr.msk.bf16.mxu0 %vm5560_vm2, %v5559_v39 }
 0xc63   : > { %v1936_v4 = vpop.f32.mrf.mxu0 }
 0xc65   : > { %v5027_v5 = vpop.f32.mrf.mxu0 }
 0xc67   : > { %v1939_v6 = vpop.f32.mrf.mxu0 }
 0xc68   : > { %v1943_v8 = vpack.c.bf16 %v1939_v6, %v1936_v4  ;;  %v4591_v6 = vld [vmem:[%s6591_s12 + $0xc] sm:$0xf] }
 0xc69   : > { %v5028_v9 = vpop.f32.mrf.mxu0 }
 0xc6a   : > { %5032 = vmatmul.mubr.msk.bf16.vlgmr.msra.gmra.mxu1 %vm1096_vm3, %v1943_v8 }
 0xc6b   : > { %v2054_v10 = vpop.f32.mrf.mxu0  ;;  %5044 = vmatpush3.bf16.msra.mxu1 %v5366_v7  ;;  %5047 = vmatprep.mubr.msk.bf16.mxu1 %vm5560_vm2, %v5559_v39  ;;  %v2317_v7 = vsel %vm1536_vm5, %v4591_v6, 0 }
 0xc6c   : > { %5045 = vmatprep.subr.bf16.mxu1 %v5559_v39  ;;  %v2055_v17 = vadd.f32 %v4567_v12, %v2054_v10 }
 0xc6d   : > { %v5041_v14 = vpop.f32.mrf.mxu0 }
 0xc6f   : > { %v2057_v16 = vpop.f32.mrf.mxu0  ;;  %5046 = vmatpush3.bf16.msra.mxu1 %v5367_v11 }
 0xc70   : > { %v2058_v18 = vadd.f32 %v4567_v12, %v2057_v16  ;;  %5059 = vmatprep.subr.bf16.mxu1 %v5559_v39 }
 0xc71   : > { %v5042_v19 = vpop.f32.mrf.mxu0 }
 0xc72   : > { %v2193_v21 = vpack.c.bf16 %v2058_v18, %v2055_v17  ;;  %5048 = vmatmul.mubr.msk.bf16.vlgmr.msra.gmra.mxu1 %vm854_vm1, %v5812_v58  ;;  %v1622_v58 = vadd.f32 %v5957_v61, %v5989_v13  ;;  %v4593_v17 = vld [vmem:[%s6592_s13] ss:$0 sm:$0xff] }
 0xc73   : > { %v2186_v22 = vpop.f32.mrf.mxu0  ;;  %5061 = vmatprep.mubr.msk.bf16.mxu1 %vm5560_vm2, %v5559_v39 }
 0xc74   : > { %v2187_v27 = vadd.f32 %v4585_v23, %v2186_v22 }
 0xc75   : > { %v5057_v24 = vpop.f32.mrf.mxu0 }
 0xc77   : > { %v2189_v25 = vpop.f32.mrf.mxu0 }
 0xc78   : > { %v2190_v28 = vadd.f32 %v4585_v23, %v2189_v25 }
 0xc79   : > { %v5058_v29 = vpop.f32.mrf.mxu0 }
 0xc7a   : > { %v2265_v30 = vpack.c.bf16 %v2190_v28, %v2187_v27 }
 0xc7c   : > { %5066 = vmatpush3.bf16.msra.mxu0 %v2265_v30 }
 0xc7d   : > { %5077 = vmatprep.subr.bf16.mxu0 %v5559_v39 }
 0xd2a   : > { %v1986_v31 = vpop.f32.mrf.mxu1 }
 0xd2b   : > { %v6063_v32 = vadd.f32 %v1986_v31, %v1622_v58 }
 0xd2c   : > { %v5033_v33 = vpop.f32.mrf.mxu1 }
 0xd2e   : > { %v1989_v35 = vpop.f32.mrf.mxu1 }
 0xd2f   : > { %v6067_v36 = vadd.f32 %v1989_v35, %v1625_v34 }
 0xd30   : > { %v5034_v37 = vpop.f32.mrf.mxu1 }
 0xd31   : > { %v5368_v37 = vld [vmem:[%s6595_s16 + $0x8] sm:$0xff]  }
 0xd32   : > { %v2120_v38 = vpop.f32.mrf.mxu1 }
 0xd33   : > { %v2121_v43 = vadd.f32 %v4576_v40, %v2120_v38  ;;  %v5369_v38 = vld [vmem:[%s6595_s16] sm:$0xff]  }
 0xd34   : > { %v5049_v41 = vpop.f32.mrf.mxu1 }
 0xd36   : > { %v2123_v42 = vpop.f32.mrf.mxu1 }
 0xd37   : > { %v2124_v61 = vadd.f32 %v4576_v40, %v2123_v42 }
 0xd38   : > { %v5050_v13 = vpop.f32.mrf.mxu1 }
 0xd39   : > { %v2194_v44 = vpack.c.bf16 %v2124_v61, %v2121_v43 }
 0xd3b   : > { %v2199_v45 = vsel %vm1096_vm3, %v2194_v44, 0 }
 0xd3c   : > { %5060 = vmatpush3.bf16.xpose.msra.mxu1 %v2199_v45 }
 0xd3d   : > { %5071 = vmatprep.subr.bf16.mxu1 %v5559_v39 }
 0xd43   : > { %5062 = vmatmul.mubr.msk.bf16.vlgmr.msra.gmra.mxu1 %vm1096_vm3, %v2193_v21 }
 0xd44   : > { %5073 = vmatprep.mubr.msk.bf16.mxu1 %vm5560_vm2, %v5559_v39  ;;  %5072 = vmatpush3.bf16.msra.mxu1 %v2317_v7 }
 0xd45   : > { %5085 = vmatprep.subr.bf16.mxu1 %v5559_v39 }
 0xe03   : > { %v2235_v0 = vpop.f32.mrf.mxu1 }
 0xe04   : > { %v2242_v15 = vsel %vm1144_vm4, %v2235_v0, -inf }
 0xe05   : > { %2243 = vmax.xlane.f32.xlu0 %v2242_v15  ;;  %v5063_v46 = vpop.f32.mrf.mxu1 }
 0xe07   : > { %v2238_v47 = vpop.f32.mrf.mxu1 }
 0xe08   : > { %v2245_v48 = vsel %vm1144_vm4, %v2238_v47, -inf }
 0xe09   : > { %2246 = vmax.xlane.f32.xlu1 %v2245_v48  ;;  %v5064_v49 = vpop.f32.mrf.mxu1  ;;  %v4595_v48 = vld [vmem:[%s6594_s15] ss:$0 sm:$0xff] }
 0xe8e   : > { %v2244_v50 = vpop.xlane.xlu0 %2243 }
 0xe8f   : > { %v2248_v51 = vsub.f32 %v2235_v0, %v2244_v50  ;;  %v4594_v0 = vld [vmem:[%s6593_s14] ss:$0 sm:$0xff] }
 0xe91   : > { %v2250_v52 = vmul.f32 1.442695, %v2248_v51 }
 0xe92   : > { %v2247_v53 = vpop.xlane.xlu1 %2246 }
 0xe93   : > { %5432 = vpow2.f32 %v2250_v52  ;;  %v2249_v54 = vsub.f32 %v2238_v47, %v2247_v53  ;;  %v5370_v53 = vld [vmem:[%s6597_s18 + $0x18] sm:$0xff]  }
 0xe95   : > { %v2252_v55 = vmul.f32 1.442695, %v2249_v54  ;;  %v5371_v54 = vld [vmem:[%s6597_s18 + $0x10] sm:$0xff]  }
 0xe97   : > { %5434 = vpow2.f32 %v2252_v55  ;;  %v5372_v55 = vld [vmem:[%s6597_s18 + $0x8] sm:$0xff]  }
 0xea0   : > { %v5433_v56 = vpop.eup %5432 }
 0xea1   : > { %v2254_v57 = vsel %vm1144_vm4, %v5433_v56, 0.0 }
 0xea2   : > { %2255 = vadd.xlane.f32.xlu0 %v2254_v57  ;;  %v4596_v57 = vld [vmem:[%s6596_s17] ss:$0 sm:$0xff] }
 0xea4   : > { %v5435_v59 = vpop.eup %5434 }
 0xea5   : > { %v2257_v60 = vsel %vm1144_vm4, %v5435_v59, 0.0 }
 0xea6   : > { %2258 = vadd.xlane.f32.xlu1 %v2257_v60 }
 0xf2b   : > { %v2256_v62 = vpop.xlane.xlu0 %2255 }
 0xf2c   : > { %5436 = vrcp.f32 %v2256_v62 }
 0xf2f   : > { %v2259_v63 = vpop.xlane.xlu1 %2258 }
 0xf30   : > { %5438 = vrcp.f32 %v2259_v63 }
 0xf39   : > { %v5437_v1 = vpop.eup %5436 }
 0xf3a   : > { %v2262_v3 = vmul.f32 %v5437_v1, %v5433_v56  ;;  %v5373_v56 = vld [vmem:[%s6597_s18] sm:$0xff]  }
 0xf3d   : > { %v5439_v2 = vpop.eup %5438 }
 0xf3e   : > { %v2263_v4 = vmul.f32 %v5439_v2, %v5435_v59 }
 0xf40   : > { %v2264_v5 = vpack.c.bf16 %v2263_v4, %v2262_v3 }
 0xf42   : > { %5068 = vmatmul.mubr.msk.bf16.vlgmr.msra.gmra.mxu0 %vm1144_vm4, %v2264_v5 }
 0xf43   : > { %5081 = vmatprep.mubr.msk.bf16.mxu0 %vm5560_vm2, %v5559_v39  ;;  %5078 = vmatpush3.bf16.msra.mxu0 %v5368_v37 }
 0xf44   : > { %5079 = vmatprep.subr.bf16.mxu0 %v5559_v39 }
 0xf47   : > { %5080 = vmatpush3.bf16.msra.mxu0 %v5369_v38 }
 0xf48   : > { %5097 = vmatprep.subr.bf16.mxu0 %v5559_v39 }
0x1002   : > { %v2303_v8 = vpop.f32.mrf.mxu0 }
0x1004   : > { %v5069_v9 = vpop.f32.mrf.mxu0 }
0x1006   : > { %v2306_v10 = vpop.f32.mrf.mxu0 }
0x1007   : > { %v2310_v11 = vpack.c.bf16 %v2306_v10, %v2303_v8 }
0x1008   : > { %v5070_v12 = vpop.f32.mrf.mxu0 }
0x1009   : > { %5074 = vmatmul.mubr.msk.bf16.vlgmr.msra.gmra.mxu1 %vm1096_vm3, %v2310_v11 }
0x100a   : > { %5093 = vmatprep.mubr.msk.bf16.mxu1 %vm5560_vm2, %v5559_v39  ;;  %5086 = vmatpush3.bf16.msra.mxu1 %v5370_v53  ;;  %v4608_v53 = vld [vmem:[%s6640_s25 + $0x1] ss:$0 sm:$0xff] }
0x100b   : > { %5087 = vmatprep.subr.bf16.mxu1 %v5559_v39 }
0x100e   : > { %5088 = vmatpush3.bf16.msra.mxu1 %v5371_v54 }
0x100f   : > { %5089 = vmatprep.subr.bf16.mxu1 %v5559_v39 }
0x1012   : > { %5090 = vmatpush3.bf16.msra.mxu1 %v5372_v55 }
0x1013   : > { %5091 = vmatprep.subr.bf16.mxu1 %v5559_v39 }
0x1016   : > { %5092 = vmatpush3.bf16.msra.mxu1 %v5373_v56 }
0x1017   : > { %5113 = vmatprep.subr.bf16.mxu1 %v5559_v39 }
0x10c9   : > { %v2353_v14 = vpop.f32.mrf.mxu1 }
0x10ca   : > { %v2360_v16 = vadd.f32 %v2353_v14, %v6063_v32 }
0x10cb   : > { %v5075_v18 = vpop.f32.mrf.mxu1 }
0x10cc   : > { %v2362_v19 = vadd.f32 %v2360_v16, %v5774_v20 }
0x10cd   : > { %v2356_v21 = vpop.f32.mrf.mxu1 }
0x10ce   : > { %v6097_v22 = vadd.f32 %v4593_v17, %v2362_v19  ;;  %v2361_v23 = vadd.f32 %v2356_v21, %v6067_v36 }
0x10cf   : > { %v5076_v24 = vpop.f32.mrf.mxu1 }
0x10d0   : > { %v2363_v25 = vadd.f32 %v2361_v23, %v5781_v26  ;;  %v2375_v27 = vsel %vm854_vm1, %v6097_v22, 0.0 }
0x10d1   : > { %2376 = vadd.xlane.f32.xlu0 %v2375_v27  ;;  %v4600_v27 = vld [vmem:[%s6598_s19] ss:$0 sm:$0xff] }
0x10d2   : > { %v6103_v28 = vadd.f32 %v4593_v17, %v2363_v25 }
0x10d4   : > { %v2378_v29 = vsel %vm854_vm1, %v6103_v28, 0.0 }
0x10d5   : > { %2379 = vadd.xlane.f32.xlu1 %v2378_v29 }
0x115a   : > { %v2377_v30 = vpop.xlane.xlu0 %2376 }
0x115b   : > { %v2381_v20 = vmul.f32 0.03125, %v2377_v30 }
0x115d   : > { %v2383_v58 = vsub.f32 %v6097_v22, %v2381_v20 }
0x115e   : > { %v2380_v31 = vpop.xlane.xlu1 %2379 }
0x115f   : > { %v2382_v32 = vmul.f32 0.03125, %v2380_v31  ;;  %v2385_v33 = vmul.f32 %v2383_v58, %v2383_v58 }
0x1161   : > { %v2384_v34 = vsub.f32 %v6103_v28, %v2382_v32  ;;  %v2387_v26 = vsel %vm854_vm1, %v2385_v33, 0.0 }
0x1162   : > { %2388 = vadd.xlane.f32.xlu0 %v2387_v26 }
0x1163   : > { %v2386_v35 = vmul.f32 %v2384_v34, %v2384_v34 }
0x1165   : > { %v2390_v36 = vsel %vm854_vm1, %v2386_v35, 0.0 }
0x1166   : > { %2391 = vadd.xlane.f32.xlu1 %v2390_v36 }
0x11eb   : > { %v2389_v40 = vpop.xlane.xlu0 %2388 }
0x11ec   : > { %v2393_v41 = vmul.f32 0.03125, %v2389_v40 }
0x11ee   : > { %v2395_v42 = vadd.f32 1e-06, %v2393_v41 }
0x11ef   : > { %v2392_v43 = vpop.xlane.xlu1 %2391 }
0x11f0   : > { %5440 = vrsqrt.f32 %v2395_v42  ;;  %v2394_v61 = vmul.f32 0.03125, %v2392_v43 }
0x11f2   : > { %v2396_v13 = vadd.f32 1e-06, %v2394_v61 }
0x11f4   : > { %5442 = vrsqrt.f32 %v2396_v13  ;;  %v5374_v13 = vld [vmem:[%s6639_s24 + $0x48] sm:$0xff]  }
0x11fd   : > { %v5441_v44 = vpop.eup %5440 }
0x11fe   : > { %v2399_v45 = vmul.f32 %v5441_v44, %v2383_v58  ;;  %v5375_v44 = vld [vmem:[%s6643_s10 + $0x48] sm:$0xff]  }
0x1200   : > { %v2407_v47 = vmul.f32 %v4594_v0, %v2399_v45  ;;  %v5376_v45 = vld [vmem:[%s6639_s24 + $0x40] sm:$0xff]  }
0x1201   : > { %v5443_v15 = vpop.eup %5442 }
0x1202   : > { %v2400_v46 = vmul.f32 %v5443_v15, %v2384_v34  ;;  %v2415_v50 = vadd.f32 %v4595_v48, %v2407_v47 }
0x1204   : > { %v2408_v49 = vmul.f32 %v4594_v0, %v2400_v46  ;;  %v5377_v0 = vld [vmem:[%s6643_s10 + $0x40] sm:$0xff]  }
0x1206   : > { %v2416_v51 = vadd.f32 %v4595_v48, %v2408_v49 }
0x1208   : > { %v2417_v52 = vpack.c.bf16 %v2416_v51, %v2415_v50 }
0x120a   : > { %5082 = vmatmul.mubr.msk.bf16.vlgmr.msra.gmra.mxu0 %vm854_vm1, %v2417_v52 }
0x120b   : > { %5101 = vmatprep.mubr.msk.bf16.mxu0 %vm5560_vm2, %v5559_v39  ;;  %5098 = vmatpush3.bf16.msra.mxu0 %v5374_v13 }
0x120c   : > { %5099 = vmatprep.subr.bf16.mxu0 %v5559_v39 }
0x120f   : > { %5100 = vmatpush3.bf16.msra.mxu0 %v5376_v45 }
0x1210   : > { %5105 = vmatprep.subr.bf16.mxu0 %v5559_v39 }
0x12ca   : > { %v2478_v59 = vpop.f32.mrf.mxu0 }
0x12cb   : > { %v2479_v60 = vadd.f32 %v4596_v57, %v2478_v59 }
0x12cc   : > { %v5083_v62 = vpop.f32.mrf.mxu0 }
0x12cd   : > { %v2487_v63 = vmul.f32 0.044715, %v2479_v60  ;;  %v2485_v18 = vmul.f32 0.5, %v2479_v60 }
0x12ce   : > { %v2481_v1 = vpop.f32.mrf.mxu0 }
0x12cf   : > { %v2489_v2 = vmul.f32 %v2487_v63, %v2479_v60  ;;  %v2482_v3 = vadd.f32 %v4596_v57, %v2481_v1  ;;  %v4609_v57 = vld [vmem:[%s6641_s5 + $0x1] ss:$0 sm:$0xff]  ;;  %v5378_v63 = vld [vmem:[%s6642_s8 + $0x48] sm:$0xff]   ;;  %s4397_s5 = sshll.u32 %s679_s3, 4  ;;  %s6536_s5 = int_to_ptr.vmem [resolvable:$true] %s4397_s5 }
0x12d0   : > { %v5084_v4 = vpop.f32.mrf.mxu0  ;;  %s5496_s4 = scalar_lea.vmem %s6536_s5, 256  ;;  %p5503_p0 = scmp.lt.s32.totalorder %s6536_s5, %s5501_s29 }
0x12d1   : > { %v2491_v5 = vmul.f32 %v2489_v2, %v2479_v60  ;;  %v2488_v6 = vmul.f32 0.044715, %v2482_v3  ;;  %v2486_v19 = vmul.f32 0.5, %v2482_v3  ;;  %v5379_v2 = vld [vmem:[%s6642_s8 + $0x40] sm:$0xff]   ;;  %p5497_p11 = scmp.ne.s32.totalorder %s6536_s5, %s5496_s4 }
0x12d3   : > { %v2493_v7 = vadd.f32 %v2491_v5, %v2479_v60  ;;  %v2490_v8 = vmul.f32 %v2488_v6, %v2482_v3  ;;  %v4633_v5 = vld [vmem:[%s6590_s11 + $0x4] ss:$0 sm:$0xff]  ;;  %p5498_p12 = pnand %p5497_p11, %p5717_p5 }
0x12d5   : > { %v2495_v9 = vmul.f32 0.7978846, %v2493_v7  ;;  %v2492_v10 = vmul.f32 %v2490_v8, %v2482_v3  ;;  %p5499_p13 = pneg %p5498_p12 }
0x12d7   : > { %5444 = vtanh.f32 %v2495_v9  ;;  %v2494_v11 = vadd.f32 %v2492_v10, %v2482_v3 }
0x12d9   : > { %v2496_v12 = vmul.f32 0.7978846, %v2494_v11 }
0x12db   : > { %5446 = vtanh.f32 %v2496_v12 }
0x12e4   : > { %v5445_v14 = vpop.eup %5444 }
0x12e5   : > { %v2499_v16 = vadd.f32 1.0, %v5445_v14 }
0x12e7   : > { %v2501_v23 = vmul.f32 %v2499_v16, %v2485_v18  ;;  %v4624_v18 = vld [vmem:[%s6644_s9 + $0x4] ss:$0 sm:$0xff] }
0x12e8   : > { %v5447_v17 = vpop.eup %5446 }
0x12e9   : > { %v2500_v21 = vadd.f32 1.0, %v5447_v17 }
0x12eb   : > { %v2502_v24 = vmul.f32 %v2500_v21, %v2486_v19 }
0x12ed   : > { %v2503_v25 = vpack.c.bf16 %v2502_v24, %v2501_v23 }
0x12ef   : > { %5094 = vmatmul.mubr.msk.bf16.vlgmr.msra.gmra.mxu1 %vm803_vm0, %v2503_v25 }
0x12f0   : > { %5117 = vmatprep.mubr.msk.bf16.mxu1 %vm5560_vm2, %v5559_v39  ;;  %5114 = vmatpush3.bf16.msra.mxu1 %v5375_v44 }
0x12f1   : > { %5115 = vmatprep.subr.bf16.mxu1 %v5559_v39 }
0x12f4   : > { %5116 = vmatpush3.bf16.msra.mxu1 %v5377_v0 }
0x12f5   : > { %5127 = vmatprep.subr.bf16.mxu1 %v5559_v39 }
0x13af   : > { %v2580_v29 = vpop.f32.mrf.mxu1 }
0x13b0   : > { %v2581_v30 = vadd.f32 %v4600_v27, %v2580_v29 }
0x13b1   : > { %v5095_v20 = vpop.f32.mrf.mxu1 }
0x13b2   : > { %v6154_v58 = vadd.f32 %v2581_v30, %v6097_v22  ;;  %v4615_v30 = vld [vmem:[%s6645_s7 + $0x4] ss:$0 sm:$0xff] }
0x13b3   : > { %v2583_v31 = vpop.f32.mrf.mxu1 }
0x13b4   : > { %v2584_v32 = vadd.f32 %v4600_v27, %v2583_v31  ;;  %v2593_v33 = vsel %vm854_vm1, %v6154_v58, 0.0 }
0x13b5   : > { %2594 = vadd.xlane.f32.xlu0 %v2593_v33  ;;  %v5096_v34 = vpop.f32.mrf.mxu1 }
0x13b6   : > { %v6159_v26 = vadd.f32 %v2584_v32, %v6103_v28  ;;  %v5380_v32 = vld [vmem:[%s6639_s24 + $0x58] sm:$0xff]   ;;  %v5381_v34 = vld [vmem:[%s6639_s24 + $0x50] sm:$0xff]  }
0x13b8   : > { %v2596_v35 = vsel %vm854_vm1, %v6159_v26, 0.0 }
0x13b9   : > { %2597 = vadd.xlane.f32.xlu1 %v2596_v35  ;;  %v5382_v35 = vld [vmem:[%s6643_s10 + $0x58] sm:$0xff]  }
0x143e   : > { %v2595_v36 = vpop.xlane.xlu0 %2594 }
0x143f   : > { %v2599_v37 = vmul.f32 0.03125, %v2595_v36  ;;  %v5383_v36 = vld [vmem:[%s6643_s10 + $0x50] sm:$0xff]  }
0x1441   : > { %v2601_v38 = vsub.f32 %v6154_v58, %v2599_v37 }
0x1442   : > { %v2598_v22 = vpop.xlane.xlu1 %2597 }
0x1443   : > { %v2600_v40 = vmul.f32 0.03125, %v2598_v22  ;;  %v2603_v41 = vmul.f32 %v2601_v38, %v2601_v38 }
0x1445   : > { %v2602_v42 = vsub.f32 %v6159_v26, %v2600_v40  ;;  %v2605_v43 = vsel %vm854_vm1, %v2603_v41, 0.0 }
0x1446   : > { %2606 = vadd.xlane.f32.xlu0 %v2605_v43 }
0x1447   : > { %v2604_v61 = vmul.f32 %v2602_v42, %v2602_v42 }
0x1449   : > { %v2608_v28 = vsel %vm854_vm1, %v2604_v61, 0.0  ;;  %v4645_v61 = vld [vmem:[%s6645_s7 + $0x5] ss:$0 sm:$0xff] }
0x144a   : > { %2609 = vadd.xlane.f32.xlu1 %v2608_v28 }
0x14cf   : > { %v2607_v15 = vpop.xlane.xlu0 %2606 }
0x14d0   : > { %v2611_v46 = vmul.f32 0.03125, %v2607_v15 }
0x14d2   : > { %v2613_v47 = vadd.f32 1e-06, %v2611_v46 }
0x14d3   : > { %v2610_v48 = vpop.xlane.xlu1 %2609 }
0x14d4   : > { %5448 = vrsqrt.f32 %v2613_v47  ;;  %v2612_v49 = vmul.f32 0.03125, %v2610_v48  ;;  %v4663_v47 = vld [vmem:[%s6590_s11 + $0x5] ss:$0 sm:$0xff] }
0x14d6   : > { %v2614_v50 = vadd.f32 1e-06, %v2612_v49 }
0x14d8   : > { %5450 = vrsqrt.f32 %v2614_v50 }
0x14e1   : > { %v5449_v51 = vpop.eup %5448 }
0x14e2   : > { %v2617_v52 = vmul.f32 %v5449_v51, %v2601_v38 }
0x14e4   : > { %v2625_v55 = vmul.f32 %v4608_v53, %v2617_v52 }
0x14e5   : > { %v5451_v54 = vpop.eup %5450 }
0x14e6   : > { %v2618_v56 = vmul.f32 %v5451_v54, %v2602_v42  ;;  %v2633_v60 = vadd.f32 %v4609_v57, %v2625_v55 }
0x14e8   : > { %v2626_v59 = vmul.f32 %v4608_v53, %v2618_v56 }
0x14ea   : > { %v2634_v62 = vadd.f32 %v4609_v57, %v2626_v59 }
0x14ec   : > { %v6192_v1 = vpack.c.bf16 %v2634_v62, %v2633_v60 }
0x14ee   : > { %5102 = vmatmul.mubr.msk.bf16.vlgmr.msra.gmra.mxu0 %vm854_vm1, %v6192_v1  ;;  %5118 = vmatmul.mubr.msk.bf16.vlgmr.msra.gmra.mxu1 %vm854_vm1, %v6192_v1 }
0x14ef   : > { %5106 = vmatpush3.bf16.msra.mxu0 %v5378_v63  ;;  %5109 = vmatprep.mubr.msk.bf16.mxu0 %vm5560_vm2, %v5559_v39 }
0x14f0   : > { %5107 = vmatprep.subr.bf16.mxu0 %v5559_v39  ;;  %5129 = vmatprep.mubr.msk.bf16.mxu1 %vm5560_vm2, %v5559_v39 }
0x14f3   : > { %5108 = vmatpush3.bf16.msra.mxu0 %v5379_v2 }
0x14f4   : > { %5121 = vmatprep.subr.bf16.mxu0 %v5559_v39 }
0x14f6   : > { %5110 = vmatmul.mubr.msk.bf16.vlgmr.msra.gmra.mxu0 %vm854_vm1, %v6192_v1 }
0x14f7   : > { %5123 = vmatprep.mubr.msk.bf16.mxu0 %vm5560_vm2, %v5559_v39 }
0x15ae   : > { %v2698_v3 = vpop.f32.mrf.mxu0  ;;  %v2830_v4 = vpop.f32.mrf.mxu1 }
0x15af   : > { %v2831_v10 = vadd.f32 %v4633_v5, %v2830_v4  ;;  %v2699_v31 = vadd.f32 %v4615_v30, %v2698_v3 }
0x15b0   : > { %v5103_v6 = vpop.f32.mrf.mxu0  ;;  %v5119_v7 = vpop.f32.mrf.mxu1 }
0x15b2   : > { %v2701_v8 = vpop.f32.mrf.mxu0  ;;  %v2833_v9 = vpop.f32.mrf.mxu1 }
0x15b3   : > { %v2834_v11 = vadd.f32 %v4633_v5, %v2833_v9  ;;  %v2702_v20 = vadd.f32 %v4615_v30, %v2701_v8 }
0x15b4   : > { %v5104_v12 = vpop.f32.mrf.mxu0  ;;  %v5120_v14 = vpop.f32.mrf.mxu1 }
0x15b5   : > { %v2909_v16 = vpack.c.bf16 %v2834_v11, %v2831_v10  ;;  %v2837_v33 = vpack.c.bf16 %v2702_v20, %v2699_v31  ;;  %v5384_v10 = vld [vmem:[%s6642_s8 + $0x58] sm:$0xff]   ;;  %v5385_v12 = vld [vmem:[%s6642_s8 + $0x50] sm:$0xff]  }
0x15b6   : > { %v2764_v17 = vpop.f32.mrf.mxu0 }
0x15b7   : > { %5128 = vmatpush3.bf16.msra.mxu1 %v2909_v16  ;;  %v2765_v23 = vadd.f32 %v4624_v18, %v2764_v17 }
0x15b8   : > { %v5111_v19 = vpop.f32.mrf.mxu0  ;;  %5141 = vmatprep.subr.bf16.mxu1 %v5559_v39 }
0x15ba   : > { %v2767_v21 = vpop.f32.mrf.mxu0 }
0x15bb   : > { %v2768_v24 = vadd.f32 %v4624_v18, %v2767_v21 }
0x15bc   : > { %v5112_v25 = vpop.f32.mrf.mxu0 }
0x15bd   : > { %v2838_v27 = vpack.c.bf16 %v2768_v24, %v2765_v23  ;;  %v4654_v23 = vld [vmem:[%s6644_s9 + $0x5] ss:$0 sm:$0xff] }
0x15bf   : > { %v2843_v29 = vsel %vm1096_vm3, %v2838_v27, 0 }
0x15c0   : > { %5122 = vmatpush3.bf16.xpose.msra.mxu0 %v2843_v29 }
0x15c1   : > { %5133 = vmatprep.subr.bf16.mxu0 %v5559_v39 }
0x15c7   : > { %5124 = vmatmul.mubr.msk.bf16.vlgmr.msra.gmra.mxu0 %vm1096_vm3, %v2837_v33 }
0x15c8   : > { %5134 = vmatpush3.bf16.msra.mxu0 %v5380_v32  ;;  %5137 = vmatprep.mubr.msk.bf16.mxu0 %vm5560_vm2, %v5559_v39 }
0x15c9   : > { %5135 = vmatprep.subr.bf16.mxu0 %v5559_v39 }
0x15cc   : > { %5136 = vmatpush3.bf16.msra.mxu0 %v5381_v34 }
0x15cd   : > { %5149 = vmatprep.subr.bf16.mxu0 %v5559_v39 }
0x15cf   : > { %5138 = vmatmul.mubr.msk.bf16.vlgmr.msra.gmra.mxu0 %vm854_vm1, %v6192_v1 }
0x15d0   : > { %5150 = vmatpush3.bf16.msra.mxu0 %v5382_v35  ;;  %5153 = vmatprep.mubr.msk.bf16.mxu0 %vm5560_vm2, %v5559_v39 }
0x15d1   : > { %5151 = vmatprep.subr.bf16.mxu0 %v5559_v39 }
0x15d4   : > { %5152 = vmatpush3.bf16.msra.mxu0 %v5383_v36 }
0x15d5   : > { %5163 = vmatprep.subr.bf16.mxu0 %v5559_v39 }
0x15d7   : > { %5154 = vmatmul.mubr.msk.bf16.vlgmr.msra.gmra.mxu0 %vm854_vm1, %v6192_v1 }
0x15d8   : > { %5165 = vmatprep.mubr.msk.bf16.mxu0 %vm5560_vm2, %v5559_v39 }
0x1687   : > { %v2879_v37 = vpop.f32.mrf.mxu0 }
0x1688   : > { %v2886_v38 = vsel %vm1144_vm4, %v2879_v37, -inf }
0x1689   : > { %2887 = vmax.xlane.f32.xlu0 %v2886_v38  ;;  %v5125_v22 = vpop.f32.mrf.mxu0 }
0x168b   : > { %v2882_v40 = vpop.f32.mrf.mxu0 }
0x168c   : > { %v2889_v41 = vsel %vm1144_vm4, %v2882_v40, -inf }
0x168d   : > { %2890 = vmax.xlane.f32.xlu1 %v2889_v41  ;;  %v5126_v42 = vpop.f32.mrf.mxu0 }
0x168f   : > { %v3016_v43 = vpop.f32.mrf.mxu0 }
0x1690   : > { %v6255_v44 = vadd.f32 %v4645_v61, %v3016_v43 }
0x1691   : > { %v5139_v28 = vpop.f32.mrf.mxu0 }
0x1693   : > { %v3019_v13 = vpop.f32.mrf.mxu0 }
0x1694   : > { %v6257_v45 = vadd.f32 %v4645_v61, %v3019_v13 }
0x1695   : > { %v5140_v0 = vpop.f32.mrf.mxu0 }
0x1696   : > { %v3155_v15 = vpack.c.bf16 %v6257_v45, %v6255_v44 }
0x1697   : > { %v3148_v46 = vpop.f32.mrf.mxu0 }
0x1698   : > { %v3149_v50 = vadd.f32 %v4663_v47, %v3148_v46 }
0x1699   : > { %v5155_v48 = vpop.f32.mrf.mxu0 }
0x169b   : > { %v3151_v49 = vpop.f32.mrf.mxu0 }
0x169c   : > { %v3152_v51 = vadd.f32 %v4663_v47, %v3151_v49  ;;  %v4639_v47 = vld [vmem:[%s6591_s12 + $0x10] sm:$0xf] }
0x169d   : > { %v5156_v52 = vpop.f32.mrf.mxu0 }
0x169e   : > { %v3227_v53 = vpack.c.bf16 %v3152_v51, %v3149_v50  ;;  %v3326_v51 = vsel %vm1536_vm5, %v4639_v47, 0  ;;  %v5386_v52 = vld [vmem:[%s6642_s8 + $0x68] sm:$0xff]  }
0x16a0   : > { %5164 = vmatpush3.bf16.msra.mxu0 %v3227_v53  ;;  %v5387_v53 = vld [vmem:[%s6642_s8 + $0x60] sm:$0xff]  }
0x16a1   : > { %5175 = vmatprep.subr.bf16.mxu0 %v5559_v39 }
0x1712   : > { %v2888_v54 = vpop.xlane.xlu0 %2887 }
0x1713   : > { %v2892_v55 = vsub.f32 %v2879_v37, %v2888_v54  ;;  %v4669_v54 = vld [vmem:[%s6591_s12 + $0x14] sm:$0xf] }
0x1715   : > { %v2894_v56 = vmul.f32 1.442695, %v2892_v55  ;;  %v3279_v55 = vsel %vm1536_vm5, %v4669_v54, 0 }
0x1716   : > { %v2891_v57 = vpop.xlane.xlu1 %2890 }
0x1717   : > { %5452 = vpow2.f32 %v2894_v56  ;;  %v2893_v59 = vsub.f32 %v2882_v40, %v2891_v57 }
0x1719   : > { %v2896_v60 = vmul.f32 1.442695, %v2893_v59 }
0x171b   : > { %5454 = vpow2.f32 %v2896_v60  ;;  %v5388_v60 = vld [vmem:[%s6639_s24 + $0x68] sm:$0xff]  }
0x1724   : > { %v5453_v62 = vpop.eup %5452 }
0x1725   : > { %v2898_v63 = vsel %vm1144_vm4, %v5453_v62, 0.0 }
0x1726   : > { %2899 = vadd.xlane.f32.xlu0 %v2898_v63 }
0x1728   : > { %v5455_v2 = vpop.eup %5454 }
0x1729   : > { %v2901_v3 = vsel %vm1144_vm4, %v5455_v2, 0.0 }
0x172a   : > { %2902 = vadd.xlane.f32.xlu1 %v2901_v3  ;;  %v5389_v3 = vld [vmem:[%s6639_s24 + $0x60] sm:$0xff]  }
0x17af   : > { %v2900_v4 = vpop.xlane.xlu0 %2899 }
0x17b0   : > { %5456 = vrcp.f32 %v2900_v4 }
0x17b3   : > { %v2903_v5 = vpop.xlane.xlu1 %2902 }
0x17b4   : > { %5458 = vrcp.f32 %v2903_v5 }
0x17bd   : > { %v5457_v6 = vpop.eup %5456 }
0x17be   : > { %v2906_v8 = vmul.f32 %v5457_v6, %v5453_v62  ;;  %v5390_v6 = vld [vmem:[%s6643_s10 + $0x68] sm:$0xff]  }
0x17c1   : > { %v5459_v7 = vpop.eup %5458 }
0x17c2   : > { %v2907_v9 = vmul.f32 %v5459_v7, %v5455_v2 }
0x17c4   : > { %v2908_v11 = vpack.c.bf16 %v2907_v9, %v2906_v8  ;;  %v5391_v9 = vld [vmem:[%s6643_s10 + $0x60] sm:$0xff]  }
0x17c6   : > { %5130 = vmatmul.mubr.msk.bf16.vlgmr.msra.gmra.mxu1 %vm1144_vm4, %v2908_v11 }
0x17c7   : > { %5142 = vmatpush3.bf16.msra.mxu1 %v5384_v10  ;;  %5145 = vmatprep.mubr.msk.bf16.mxu1 %vm5560_vm2, %v5559_v39  ;;  %v4686_v10 = vld [vmem:[%s6644_s9 + $0x6] ss:$0 sm:$0xff] }
0x17c8   : > { %5143 = vmatprep.subr.bf16.mxu1 %v5559_v39 }
0x17cb   : > { %5144 = vmatpush3.bf16.msra.mxu1 %v5385_v12 }
0x17cc   : > { %5157 = vmatprep.subr.bf16.mxu1 %v5559_v39 }
0x17ce   : > { %5146 = vmatmul.mubr.msk.bf16.vlgmr.msra.gmra.mxu1 %vm854_vm1, %v6192_v1 }
0x17cf   : > { %5159 = vmatprep.mubr.msk.bf16.mxu1 %vm5560_vm2, %v5559_v39 }
0x1886   : > { %v2947_v14 = vpop.f32.mrf.mxu1 }
0x1888   : > { %v5131_v16 = vpop.f32.mrf.mxu1 }
0x188a   : > { %v2950_v17 = vpop.f32.mrf.mxu1 }
0x188b   : > { %v2954_v18 = vpack.c.bf16 %v2950_v17, %v2947_v14 }
0x188c   : > { %v5132_v19 = vpop.f32.mrf.mxu1 }
0x188e   : > { %v3082_v21 = vpop.f32.mrf.mxu1 }
0x188f   : > { %v3083_v27 = vadd.f32 %v4654_v23, %v3082_v21 }
0x1890   : > { %v5147_v24 = vpop.f32.mrf.mxu1 }
0x1892   : > { %v3085_v25 = vpop.f32.mrf.mxu1 }
0x1893   : > { %v3086_v29 = vadd.f32 %v4654_v23, %v3085_v25 }
0x1894   : > { %v5148_v30 = vpop.f32.mrf.mxu1 }
0x1895   : > { %v3156_v20 = vpack.c.bf16 %v3086_v29, %v3083_v27  ;;  %v4677_v29 = vld [vmem:[%s6645_s7 + $0x6] ss:$0 sm:$0xff] }
0x1897   : > { %v3161_v31 = vsel %vm1096_vm3, %v3156_v20, 0 }
0x1898   : > { %5158 = vmatpush3.bf16.xpose.msra.mxu1 %v3161_v31 }
0x1899   : > { %5169 = vmatprep.subr.bf16.mxu1 %v5559_v39 }
0x189f   : > { %5160 = vmatmul.mubr.msk.bf16.vlgmr.msra.gmra.mxu1 %vm1096_vm3, %v3155_v15 }
0x18a0   : > { %5171 = vmatprep.mubr.msk.bf16.mxu1 %vm5560_vm2, %v5559_v39  ;;  %5170 = vmatpush3.bf16.msra.mxu1 %v3279_v55 }
0x18a1   : > { %5181 = vmatprep.subr.bf16.mxu1 %v5559_v39 }
0x195f   : > { %v3197_v32 = vpop.f32.mrf.mxu1 }
0x1960   : > { %v3204_v33 = vsel %vm1144_vm4, %v3197_v32, -inf }
0x1961   : > { %3205 = vmax.xlane.f32.xlu0 %v3204_v33  ;;  %v5161_v34 = vpop.f32.mrf.mxu1 }
0x1963   : > { %v3200_v35 = vpop.f32.mrf.mxu1 }
0x1964   : > { %v3207_v36 = vsel %vm1144_vm4, %v3200_v35, -inf }
0x1965   : > { %3208 = vmax.xlane.f32.xlu1 %v3207_v36  ;;  %v5162_v37 = vpop.f32.mrf.mxu1  ;;  %v4695_v36 = vld [vmem:[%s6590_s11 + $0x6] ss:$0 sm:$0xff] }
0x19ea   : > { %v3206_v38 = vpop.xlane.xlu0 %3205 }
0x19eb   : > { %v3210_v22 = vsub.f32 %v3197_v32, %v3206_v38 }
0x19ed   : > { %v3212_v40 = vmul.f32 1.442695, %v3210_v22 }
0x19ee   : > { %v3209_v41 = vpop.xlane.xlu1 %3208 }
0x19ef   : > { %5460 = vpow2.f32 %v3212_v40  ;;  %v3211_v42 = vsub.f32 %v3200_v35, %v3209_v41 }
0x19f1   : > { %v3214_v43 = vmul.f32 1.442695, %v3211_v42 }
0x19f3   : > { %5462 = vpow2.f32 %v3214_v43 }
0x19fc   : > { %v5461_v61 = vpop.eup %5460 }
0x19fd   : > { %v3216_v28 = vsel %vm1144_vm4, %v5461_v61, 0.0 }
0x19fe   : > { %3217 = vadd.xlane.f32.xlu0 %v3216_v28 }
0x1a00   : > { %v5463_v13 = vpop.eup %5462 }
0x1a01   : > { %v3219_v44 = vsel %vm1144_vm4, %v5463_v13, 0.0 }
0x1a02   : > { %3220 = vadd.xlane.f32.xlu1 %v3219_v44 }
0x1a87   : > { %v3218_v45 = vpop.xlane.xlu0 %3217 }
0x1a88   : > { %5464 = vrcp.f32 %v3218_v45 }
0x1a8b   : > { %v3221_v0 = vpop.xlane.xlu1 %3220 }
0x1a8c   : > { %5466 = vrcp.f32 %v3221_v0 }
0x1a95   : > { %v5465_v15 = vpop.eup %5464 }
0x1a96   : > { %v3224_v48 = vmul.f32 %v5465_v15, %v5461_v61 }
0x1a99   : > { %v5467_v46 = vpop.eup %5466 }
0x1a9a   : > { %v3225_v49 = vmul.f32 %v5467_v46, %v5463_v13 }
0x1a9c   : > { %v3226_v50 = vpack.c.bf16 %v3225_v49, %v3224_v48 }
0x1a9e   : > { %5166 = vmatmul.mubr.msk.bf16.vlgmr.msra.gmra.mxu0 %vm1144_vm4, %v3226_v50 }
0x1a9f   : > { %5176 = vmatpush3.bf16.msra.mxu0 %v3326_v51  ;;  %5177 = vmatprep.mubr.msk.bf16.mxu0 %vm5560_vm2, %v5559_v39 }
0x1aa0   : > { %5189 = vmatprep.subr.bf16.mxu0 %v5559_v39 }
0x1aa6   : > { %5178 = vmatmul.mubr.msk.bf16.vlgmr.msra.gmra.mxu0 %vm1096_vm3, %v2954_v18 }
0x1aa7   : > { %5190 = vmatpush3.bf16.msra.mxu0 %v5386_v52  ;;  %5193 = vmatprep.mubr.msk.bf16.mxu0 %vm5560_vm2, %v5559_v39 }
0x1aa8   : > { %5191 = vmatprep.subr.bf16.mxu0 %v5559_v39 }
0x1aab   : > { %5192 = vmatpush3.bf16.msra.mxu0 %v5387_v53 }
0x1aac   : > { %5205 = vmatprep.subr.bf16.mxu0 %v5559_v39 }
0x1aae   : > { %5194 = vmatmul.mubr.msk.bf16.vlgmr.msra.gmra.mxu0 %vm854_vm1, %v6192_v1 }
0x1aaf   : > { %5207 = vmatprep.mubr.msk.bf16.mxu0 %vm5560_vm2, %v5559_v39 }
0x1b5e   : > { %v3265_v56 = vpop.f32.mrf.mxu0 }
0x1b60   : > { %v5167_v57 = vpop.f32.mrf.mxu0 }
0x1b62   : > { %v3268_v59 = vpop.f32.mrf.mxu0 }
0x1b63   : > { %v3272_v62 = vpack.c.bf16 %v3268_v59, %v3265_v56 }
0x1b64   : > { %v5168_v63 = vpop.f32.mrf.mxu0 }
0x1b65   : > { %5172 = vmatmul.mubr.msk.bf16.vlgmr.msra.gmra.mxu1 %vm1096_vm3, %v3272_v62  ;;  %v5392_v62 = vld [vmem:[%s6639_s24 + $0x78] sm:$0xff]  }
0x1b66   : > { %v6326_v2 = vpop.f32.mrf.mxu0  ;;  %5182 = vmatpush3.bf16.msra.mxu1 %v5388_v60  ;;  %5185 = vmatprep.mubr.msk.bf16.mxu1 %vm5560_vm2, %v5559_v39 }
0x1b67   : > { %5183 = vmatprep.subr.bf16.mxu1 %v5559_v39 }
0x1b68   : > { %v5179_v4 = vpop.f32.mrf.mxu0 }
0x1b69   : > { %v5394_v4 = vld [vmem:[%s6643_s10 + $0x78] sm:$0xff]  }
0x1b6a   : > { %v6334_v5 = vpop.f32.mrf.mxu0  ;;  %5184 = vmatpush3.bf16.msra.mxu1 %v5389_v3  ;;  %v5393_v3 = vld [vmem:[%s6639_s24 + $0x70] sm:$0xff]  }
0x1b6b   : > { %5197 = vmatprep.subr.bf16.mxu1 %v5559_v39 }
0x1b6c   : > { %v5180_v7 = vpop.f32.mrf.mxu0 }
0x1b6d   : > { %5186 = vmatmul.mubr.msk.bf16.vlgmr.msra.gmra.mxu1 %vm854_vm1, %v6192_v1  ;;  %v4701_v7 = vld [vmem:[%s6591_s12 + $0x18] sm:$0xf] }
0x1b6e   : > { %v3494_v8 = vpop.f32.mrf.mxu0  ;;  %5198 = vmatpush3.bf16.msra.mxu1 %v5390_v6  ;;  %5201 = vmatprep.mubr.msk.bf16.mxu1 %vm5560_vm2, %v5559_v39  ;;  %v5395_v6 = vld [vmem:[%s6643_s10 + $0x70] sm:$0xff]  }
0x1b6f   : > { %5199 = vmatprep.subr.bf16.mxu1 %v5559_v39  ;;  %v3495_v14 = vadd.f32 %v4686_v10, %v3494_v8  ;;  %v3691_v8 = vsel %vm1536_vm5, %v4701_v7, 0 }
0x1b70   : > { %v5195_v11 = vpop.f32.mrf.mxu0 }
0x1b72   : > { %v3497_v12 = vpop.f32.mrf.mxu0  ;;  %5200 = vmatpush3.bf16.msra.mxu1 %v5391_v9 }
0x1b73   : > { %v3498_v16 = vadd.f32 %v4686_v10, %v3497_v12  ;;  %5211 = vmatprep.subr.bf16.mxu1 %v5559_v39  ;;  %v5396_v12 = vld [vmem:[%s6642_s8 + $0x78] sm:$0xff]  }
0x1b74   : > { %v5196_v17 = vpop.f32.mrf.mxu0 }
0x1b75   : > { %v3568_v18 = vpack.c.bf16 %v3498_v16, %v3495_v14  ;;  %5202 = vmatmul.mubr.msk.bf16.vlgmr.msra.gmra.mxu1 %vm854_vm1, %v6192_v1 }
0x1b76   : > { %5213 = vmatprep.mubr.msk.bf16.mxu1 %vm5560_vm2, %v5559_v39 }
0x1b77   : > { %v3573_v19 = vsel %vm1096_vm3, %v3568_v18, 0  ;;  %v5397_v18 = vld [vmem:[%s6642_s8 + $0x70] sm:$0xff]   ;;  %s6534_s8 = scalar_lea.hbm %s6646_s0, %s4772_s23 }
0x1b78   : > { %5206 = vmatpush3.bf16.xpose.msra.mxu0 %v3573_v19  ;;  %v4708_v19 = vld [vmem:[%s6645_s7 + $0x7] ss:$0 sm:$0xff]  ;;  %s5502_s7 = scalar_lea.vmem %s5501_s29, 512 }
0x1b79   : > { %5217 = vmatprep.subr.bf16.mxu0 %v5559_v39  ;;  %p5504_p1 = scmp.lt.s32.totalorder %s5502_s7, %s5496_s4 }
0x1b7b   : > { %p5505_p2 = por %p5504_p1, %p5503_p0 }
0x1b7d   : > { %p5506_p3 = pnand %p5505_p2, %p5499_p13 }
0x1c25   : > { %v6358_v21 = vpop.f32.mrf.mxu1 }
0x1c27   : > { %v5173_v23 = vpop.f32.mrf.mxu1 }
0x1c29   : > { %v6360_v24 = vpop.f32.mrf.mxu1 }
0x1c2b   : > { %v5174_v25 = vpop.f32.mrf.mxu1 }
0x1c2d   : > { %v3428_v27 = vpop.f32.mrf.mxu1 }
0x1c2e   : > { %v3429_v31 = vadd.f32 %v4677_v29, %v3428_v27 }
0x1c2f   : > { %v5187_v30 = vpop.f32.mrf.mxu1 }
0x1c31   : > { %v3431_v20 = vpop.f32.mrf.mxu1 }
0x1c32   : > { %v3432_v32 = vadd.f32 %v4677_v29, %v3431_v20 }
0x1c33   : > { %v5188_v33 = vpop.f32.mrf.mxu1 }
0x1c34   : > { %v3567_v34 = vpack.c.bf16 %v3432_v32, %v3429_v31  ;;  %v4726_v32 = vld [vmem:[%s6590_s11 + $0x7] ss:$0 sm:$0xff] }
0x1c35   : > { %v3560_v35 = vpop.f32.mrf.mxu1 }
0x1c36   : > { %5208 = vmatmul.mubr.msk.bf16.vlgmr.msra.gmra.mxu0 %vm1096_vm3, %v3567_v34  ;;  %v3561_v22 = vadd.f32 %v4695_v36, %v3560_v35 }
0x1c37   : > { %v5203_v37 = vpop.f32.mrf.mxu1  ;;  %5219 = vmatprep.mubr.msk.bf16.mxu0 %vm5560_vm2, %v5559_v39  ;;  %5218 = vmatpush3.bf16.msra.mxu0 %v3691_v8 }
0x1c38   : > { %5231 = vmatprep.subr.bf16.mxu0 %v5559_v39 }
0x1c39   : > { %v3563_v38 = vpop.f32.mrf.mxu1 }
0x1c3a   : > { %v3564_v40 = vadd.f32 %v4695_v36, %v3563_v38 }
0x1c3b   : > { %v5204_v41 = vpop.f32.mrf.mxu1 }
0x1c3c   : > { %v3639_v42 = vpack.c.bf16 %v3564_v40, %v3561_v22 }
0x1c3e   : > { %5212 = vmatpush3.bf16.msra.mxu1 %v3639_v42  ;;  %v3366_v42 = vadd.f32 %v6334_v5, %v6360_v24 }
0x1c3f   : > { %5223 = vmatprep.subr.bf16.mxu1 %v5559_v39 }
0x1cf6   : > { %v3609_v43 = vpop.f32.mrf.mxu0 }
0x1cf7   : > { %v3616_v61 = vsel %vm1144_vm4, %v3609_v43, -inf }
0x1cf8   : > { %3617 = vmax.xlane.f32.xlu0 %v3616_v61  ;;  %v5209_v28 = vpop.f32.mrf.mxu0 }
0x1cfa   : > { %v3612_v13 = vpop.f32.mrf.mxu0 }
0x1cfb   : > { %v3619_v44 = vsel %vm1144_vm4, %v3612_v13, -inf }
0x1cfc   : > { %3620 = vmax.xlane.f32.xlu1 %v3619_v44  ;;  %v5210_v45 = vpop.f32.mrf.mxu0  ;;  %v4717_v44 = vld [vmem:[%s6644_s9 + $0x7] ss:$0 sm:$0xff] }
0x1d81   : > { %v3618_v0 = vpop.xlane.xlu0 %3617 }
0x1d82   : > { %v3622_v15 = vsub.f32 %v3609_v43, %v3618_v0 }
0x1d84   : > { %v3624_v46 = vmul.f32 1.442695, %v3622_v15 }
0x1d85   : > { %v3621_v47 = vpop.xlane.xlu1 %3620 }
0x1d86   : > { %5468 = vpow2.f32 %v3624_v46  ;;  %v3623_v48 = vsub.f32 %v3612_v13, %v3621_v47 }
0x1d88   : > { %v3626_v49 = vmul.f32 1.442695, %v3623_v48 }
0x1d8a   : > { %5470 = vpow2.f32 %v3626_v49 }
0x1d93   : > { %v5469_v50 = vpop.eup %5468 }
0x1d94   : > { %v3628_v51 = vsel %vm1144_vm4, %v5469_v50, 0.0 }
0x1d95   : > { %3629 = vadd.xlane.f32.xlu0 %v3628_v51 }
0x1d97   : > { %v5471_v52 = vpop.eup %5470 }
0x1d98   : > { %v3631_v53 = vsel %vm1144_vm4, %v5471_v52, 0.0 }
0x1d99   : > { %3632 = vadd.xlane.f32.xlu1 %v3631_v53 }
0x1e1e   : > { %v3630_v54 = vpop.xlane.xlu0 %3629 }
0x1e1f   : > { %5472 = vrcp.f32 %v3630_v54 }
0x1e22   : > { %v3633_v55 = vpop.xlane.xlu1 %3632 }
0x1e23   : > { %5474 = vrcp.f32 %v3633_v55 }
0x1e2c   : > { %v5473_v56 = vpop.eup %5472 }
0x1e2d   : > { %v3636_v59 = vmul.f32 %v5473_v56, %v5469_v50 }
0x1e30   : > { %v5475_v57 = vpop.eup %5474 }
0x1e31   : > { %v3637_v60 = vmul.f32 %v5475_v57, %v5471_v52 }
0x1e33   : > { %v3638_v63 = vpack.c.bf16 %v3637_v60, %v3636_v59 }
0x1e35   : > { %5214 = vmatmul.mubr.msk.bf16.vlgmr.msra.gmra.mxu1 %vm1144_vm4, %v3638_v63 }
0x1e36   : > { %5224 = vmatpush3.bf16.msra.mxu1 %v5392_v62  ;;  %5227 = vmatprep.mubr.msk.bf16.mxu1 %vm5560_vm2, %v5559_v39 }
0x1e37   : > { %5225 = vmatprep.subr.bf16.mxu1 %v5559_v39 }
0x1e3a   : > { %5226 = vmatpush3.bf16.msra.mxu1 %v5393_v3 }
0x1e3b   : > { %5239 = vmatprep.subr.bf16.mxu1 %v5559_v39 }
0x1e3d   : > { %5228 = vmatmul.mubr.msk.bf16.vlgmr.msra.gmra.mxu1 %vm854_vm1, %v6192_v1 }
0x1e3e   : > { %5240 = vmatpush3.bf16.msra.mxu1 %v5394_v4  ;;  %5243 = vmatprep.mubr.msk.bf16.mxu1 %vm5560_vm2, %v5559_v39 }
0x1e3f   : > { %5241 = vmatprep.subr.bf16.mxu1 %v5559_v39 }
0x1e42   : > { %5242 = vmatpush3.bf16.msra.mxu1 %v5395_v6 }
0x1e43   : > { %5253 = vmatprep.subr.bf16.mxu1 %v5559_v39 }
0x1e45   : > { %5244 = vmatmul.mubr.msk.bf16.vlgmr.msra.gmra.mxu1 %vm854_vm1, %v6192_v1 }
0x1e46   : > { %5255 = vmatprep.mubr.msk.bf16.mxu1 %vm5560_vm2, %v5559_v39 }
0x1ef5   : > { %v3677_v9 = vpop.f32.mrf.mxu1 }
0x1ef7   : > { %v5215_v10 = vpop.f32.mrf.mxu1 }
0x1ef9   : > { %v3680_v11 = vpop.f32.mrf.mxu1 }
0x1efa   : > { %v3684_v14 = vpack.c.bf16 %v3680_v11, %v3677_v9  ;;  %v4732_v11 = vld [vmem:[%s6591_s12 + $0x1c] sm:$0xf] }
0x1efb   : > { %v5216_v16 = vpop.f32.mrf.mxu1 }
0x1efc   : > { %5220 = vmatmul.mubr.msk.bf16.vlgmr.msra.gmra.mxu0 %vm1096_vm3, %v3684_v14 }
0x1efd   : > { %v3795_v17 = vpop.f32.mrf.mxu1  ;;  %5232 = vmatpush3.bf16.msra.mxu0 %v5396_v12  ;;  %5235 = vmatprep.mubr.msk.bf16.mxu0 %vm5560_vm2, %v5559_v39  ;;  %v4058_v12 = vsel %vm1536_vm5, %v4732_v11, 0 }
0x1efe   : > { %5233 = vmatprep.subr.bf16.mxu0 %v5559_v39  ;;  %v3796_v27 = vadd.f32 %v4708_v19, %v3795_v17 }
0x1eff   : > { %v5229_v23 = vpop.f32.mrf.mxu1 }
0x1f01   : > { %v3798_v25 = vpop.f32.mrf.mxu1  ;;  %5234 = vmatpush3.bf16.msra.mxu0 %v5397_v18 }
0x1f02   : > { %v3799_v29 = vadd.f32 %v4708_v19, %v3798_v25  ;;  %5247 = vmatprep.subr.bf16.mxu0 %v5559_v39 }
0x1f03   : > { %v5230_v30 = vpop.f32.mrf.mxu1 }
0x1f04   : > { %v3934_v20 = vpack.c.bf16 %v3799_v29, %v3796_v27  ;;  %5236 = vmatmul.mubr.msk.bf16.vlgmr.msra.gmra.mxu0 %vm854_vm1, %v6192_v1  ;;  %v3363_v1 = vadd.f32 %v6326_v2, %v6358_v21  ;;  %v4735_v27 = vld [vmem:[%s6592_s13 + $0x1] ss:$0 sm:$0xff] }
0x1f05   : > { %v3927_v31 = vpop.f32.mrf.mxu1  ;;  %5249 = vmatprep.mubr.msk.bf16.mxu0 %vm5560_vm2, %v5559_v39 }
0x1f06   : > { %v3928_v35 = vadd.f32 %v4726_v32, %v3927_v31 }
0x1f07   : > { %v5245_v33 = vpop.f32.mrf.mxu1 }
0x1f09   : > { %v3930_v34 = vpop.f32.mrf.mxu1 }
0x1f0a   : > { %v3931_v36 = vadd.f32 %v4726_v32, %v3930_v34 }
0x1f0b   : > { %v5246_v37 = vpop.f32.mrf.mxu1 }
0x1f0c   : > { %v4006_v38 = vpack.c.bf16 %v3931_v36, %v3928_v35 }
0x1f0e   : > { %5254 = vmatpush3.bf16.msra.mxu1 %v4006_v38 }
0x1f0f   : > { %5265 = vmatprep.subr.bf16.mxu1 %v5559_v39 }
0x1fbc   : > { %v3727_v22 = vpop.f32.mrf.mxu0 }
0x1fbd   : > { %v6432_v40 = vadd.f32 %v3727_v22, %v3363_v1 }
0x1fbe   : > { %v5221_v41 = vpop.f32.mrf.mxu0 }
0x1fc0   : > { %v3730_v43 = vpop.f32.mrf.mxu0 }
0x1fc1   : > { %v6436_v61 = vadd.f32 %v3730_v43, %v3366_v42 }
0x1fc2   : > { %v5222_v28 = vpop.f32.mrf.mxu0 }
0x1fc3   : > { %v5398_v28 = vld [vmem:[%s6595_s16 + $0x18] sm:$0xff]  }
0x1fc4   : > { %v3861_v13 = vpop.f32.mrf.mxu0 }
0x1fc5   : > { %v3862_v15 = vadd.f32 %v4717_v44, %v3861_v13  ;;  %v5399_v13 = vld [vmem:[%s6595_s16 + $0x10] sm:$0xff]  }
0x1fc6   : > { %v5237_v45 = vpop.f32.mrf.mxu0 }
0x1fc8   : > { %v3864_v0 = vpop.f32.mrf.mxu0 }
0x1fc9   : > { %v3865_v2 = vadd.f32 %v4717_v44, %v3864_v0 }
0x1fca   : > { %v5238_v21 = vpop.f32.mrf.mxu0 }
0x1fcb   : > { %v3935_v46 = vpack.c.bf16 %v3865_v2, %v3862_v15 }
0x1fcd   : > { %v3940_v47 = vsel %vm1096_vm3, %v3935_v46, 0 }
0x1fce   : > { %5248 = vmatpush3.bf16.xpose.msra.mxu0 %v3940_v47 }
0x1fcf   : > { %5259 = vmatprep.subr.bf16.mxu0 %v5559_v39 }
0x1fd5   : > { %5250 = vmatmul.mubr.msk.bf16.vlgmr.msra.gmra.mxu0 %vm1096_vm3, %v3934_v20 }
0x1fd6   : > { %5261 = vmatprep.mubr.msk.bf16.mxu0 %vm5560_vm2, %v5559_v39  ;;  %5260 = vmatpush3.bf16.msra.mxu0 %v4058_v12 }
0x1fd7   : > { %5273 = vmatprep.subr.bf16.mxu0 %v5559_v39 }
0x2095   : > { %v3976_v5 = vpop.f32.mrf.mxu0 }
0x2096   : > { %v3983_v24 = vsel %vm1144_vm4, %v3976_v5, -inf }
0x2097   : > { %3984 = vmax.xlane.f32.xlu0 %v3983_v24  ;;  %v5251_v48 = vpop.f32.mrf.mxu0 }
0x2099   : > { %v3979_v49 = vpop.f32.mrf.mxu0 }
0x209a   : > { %v3986_v50 = vsel %vm1144_vm4, %v3979_v49, -inf }
0x209b   : > { %3987 = vmax.xlane.f32.xlu1 %v3986_v50  ;;  %v5252_v51 = vpop.f32.mrf.mxu0  ;;  %v4739_v50 = vld [vmem:[%s6594_s15 + $0x1] ss:$0 sm:$0xff] }
0x2120   : > { %v3985_v52 = vpop.xlane.xlu0 %3984 }
0x2121   : > { %v3989_v53 = vsub.f32 %v3976_v5, %v3985_v52  ;;  %v4738_v5 = vld [vmem:[%s6593_s14 + $0x1] ss:$0 sm:$0xff] }
0x2123   : > { %v3991_v54 = vmul.f32 1.442695, %v3989_v53 }
0x2124   : > { %v3988_v55 = vpop.xlane.xlu1 %3987 }
0x2125   : > { %5476 = vpow2.f32 %v3991_v54  ;;  %v3990_v56 = vsub.f32 %v3979_v49, %v3988_v55  ;;  %v5400_v55 = vld [vmem:[%s6597_s18 + $0x38] sm:$0xff]  }
0x2127   : > { %v3993_v57 = vmul.f32 1.442695, %v3990_v56  ;;  %v5401_v56 = vld [vmem:[%s6597_s18 + $0x30] sm:$0xff]  }
0x2129   : > { %5478 = vpow2.f32 %v3993_v57  ;;  %v5402_v57 = vld [vmem:[%s6597_s18 + $0x28] sm:$0xff]  }
0x2132   : > { %v5477_v59 = vpop.eup %5476 }
0x2133   : > { %v3995_v60 = vsel %vm1144_vm4, %v5477_v59, 0.0 }
0x2134   : > { %3996 = vadd.xlane.f32.xlu0 %v3995_v60  ;;  %v4745_v60 = vld [vmem:[%s6596_s17 + $0x1] ss:$0 sm:$0xff] }
0x2136   : > { %v5479_v62 = vpop.eup %5478 }
0x2137   : > { %v3998_v63 = vsel %vm1144_vm4, %v5479_v62, 0.0 }
0x2138   : > { %3999 = vadd.xlane.f32.xlu1 %v3998_v63 }
0x21bd   : > { %v3997_v3 = vpop.xlane.xlu0 %3996 }
0x21be   : > { %5480 = vrcp.f32 %v3997_v3 }
0x21c1   : > { %v4000_v4 = vpop.xlane.xlu1 %3999 }
0x21c2   : > { %5482 = vrcp.f32 %v4000_v4 }
0x21cb   : > { %v5481_v6 = vpop.eup %5480 }
0x21cc   : > { %v4003_v8 = vmul.f32 %v5481_v6, %v5477_v59  ;;  %v5403_v59 = vld [vmem:[%s6597_s18 + $0x20] sm:$0xff]  }
0x21cf   : > { %v5483_v7 = vpop.eup %5482 }
0x21d0   : > { %v4004_v9 = vmul.f32 %v5483_v7, %v5479_v62 }
0x21d2   : > { %v4005_v10 = vpack.c.bf16 %v4004_v9, %v4003_v8 }
0x21d4   : > { %5256 = vmatmul.mubr.msk.bf16.vlgmr.msra.gmra.mxu1 %vm1144_vm4, %v4005_v10 }
0x21d5   : > { %5269 = vmatprep.mubr.msk.bf16.mxu1 %vm5560_vm2, %v5559_v39  ;;  %5266 = vmatpush3.bf16.msra.mxu1 %v5398_v28 }
0x21d6   : > { %5267 = vmatprep.subr.bf16.mxu1 %v5559_v39 }
0x21d9   : > { %5268 = vmatpush3.bf16.msra.mxu1 %v5399_v13 }
0x2294   : > { %v4044_v14 = vpop.f32.mrf.mxu1 }
0x2296   : > { %v5257_v16 = vpop.f32.mrf.mxu1 }
0x2298   : > { %v4047_v17 = vpop.f32.mrf.mxu1 }
0x2299   : > { %v4051_v18 = vpack.c.bf16 %v4047_v17, %v4044_v14 }
0x229a   : > { %v5258_v19 = vpop.f32.mrf.mxu1 }
0x229b   : > { %5262 = vmatmul.mubr.msk.bf16.vlgmr.msra.gmra.mxu0 %vm1096_vm3, %v4051_v18 }
0x229c   : > { %5281 = vmatprep.mubr.msk.bf16.mxu0 %vm5560_vm2, %v5559_v39  ;;  %5274 = vmatpush3.bf16.msra.mxu0 %v5400_v55 }
0x229d   : > { %5275 = vmatprep.subr.bf16.mxu0 %v5559_v39 }
0x22a0   : > { %5276 = vmatpush3.bf16.msra.mxu0 %v5401_v56 }
0x22a1   : > { %5277 = vmatprep.subr.bf16.mxu0 %v5559_v39 }
0x22a4   : > { %5278 = vmatpush3.bf16.msra.mxu0 %v5402_v57 }
0x22a5   : > { %5279 = vmatprep.subr.bf16.mxu0 %v5559_v39 }
0x22a8   : > { %5280 = vmatpush3.bf16.msra.mxu0 %v5403_v59 }
0x235b   : > { %v4094_v23 = vpop.f32.mrf.mxu0 }
0x235c   : > { %v4101_v25 = vadd.f32 %v4094_v23, %v6432_v40 }
0x235d   : > { %v5263_v29 = vpop.f32.mrf.mxu0 }
0x235e   : > { %v4103_v30 = vadd.f32 %v4101_v25, %v6154_v58 }
0x235f   : > { %v4097_v20 = vpop.f32.mrf.mxu0 }
0x2360   : > { %v6466_v31 = vadd.f32 %v4735_v27, %v4103_v30  ;;  %v4102_v32 = vadd.f32 %v4097_v20, %v6436_v61 }
0x2361   : > { %v5264_v33 = vpop.f32.mrf.mxu0 }
0x2362   : > { %v4104_v34 = vadd.f32 %v4102_v32, %v6159_v26  ;;  %v4119_v35 = vsel %vm854_vm1, %v6466_v31, 0.0 }
0x2363   : > { %4120 = vadd.xlane.f32.xlu0 %v4119_v35 }
0x2364   : > { %v6472_v36 = vadd.f32 %v4735_v27, %v4104_v34  ;;  %v4758_v34 = vld [vmem:[%s6598_s19 + $0x1] ss:$0 sm:$0xff] }
0x2366   : > { %v4122_v37 = vsel %vm854_vm1, %v6472_v36, 0.0 }
0x2367   : > { %4123 = vadd.xlane.f32.xlu1 %v4122_v37 }
0x23ec   : > { %v4121_v38 = vpop.xlane.xlu0 %4120 }
0x23ed   : > { %v4125_v58 = vmul.f32 0.03125, %v4121_v38 }
0x23ef   : > { %v4127_v1 = vsub.f32 %v6466_v31, %v4125_v58 }
0x23f0   : > { %v4124_v22 = vpop.xlane.xlu1 %4123 }
0x23f1   : > { %v4126_v40 = vmul.f32 0.03125, %v4124_v22  ;;  %v4129_v41 = vmul.f32 %v4127_v1, %v4127_v1 }
0x23f3   : > { %v4128_v42 = vsub.f32 %v6472_v36, %v4126_v40  ;;  %v4131_v26 = vsel %vm854_vm1, %v4129_v41, 0.0 }
0x23f4   : > { %4132 = vadd.xlane.f32.xlu0 %v4131_v26 }
0x23f5   : > { %v4130_v43 = vmul.f32 %v4128_v42, %v4128_v42 }
0x23f7   : > { %v4134_v61 = vsel %vm854_vm1, %v4130_v43, 0.0 }
0x23f8   : > { %4135 = vadd.xlane.f32.xlu1 %v4134_v61 }
0x247d   : > { %v4133_v44 = vpop.xlane.xlu0 %4132 }
0x247e   : > { %v4137_v45 = vmul.f32 0.03125, %v4133_v44 }
0x2480   : > { %v4139_v0 = vadd.f32 1e-06, %v4137_v45 }
0x2481   : > { %v4136_v15 = vpop.xlane.xlu1 %4135 }
0x2482   : > { %5484 = vrsqrt.f32 %v4139_v0  ;;  %v4138_v2 = vmul.f32 0.03125, %v4136_v15 }
0x2484   : > { %v4140_v21 = vadd.f32 1e-06, %v4138_v2 }
0x2486   : > { %5486 = vrsqrt.f32 %v4140_v21 }
0x248f   : > { %v5485_v46 = vpop.eup %5484 }
0x2490   : > { %v4143_v47 = vmul.f32 %v5485_v46, %v4127_v1 }
0x2492   : > { %v4151_v48 = vmul.f32 %v4738_v5, %v4143_v47 }
0x2493   : > { %v5487_v24 = vpop.eup %5486 }
0x2494   : > { %v4144_v49 = vmul.f32 %v5487_v24, %v4128_v42  ;;  %v4159_v52 = vadd.f32 %v4739_v50, %v4151_v48 }
0x2496   : > { %v4152_v51 = vmul.f32 %v4738_v5, %v4144_v49  ;;  %v4764_v49 = vld [vmem:[%s6599_s20] ss:$0 sm:$0xff] }
0x2498   : > { %v4160_v53 = vadd.f32 %v4739_v50, %v4152_v51  ;;  %v4765_v51 = vld [vmem:[%s6600_s21] ss:$0 sm:$0xff] }
0x249a   : > { %v4161_v54 = vpack.c.bf16 %v4160_v53, %v4159_v52 }
0x249c   : > { %5270 = vmatmul.mubr.msk.bf16.vlgmr.msra.gmra.mxu1 %vm854_vm1, %v4161_v54 }
0x255c   : > { %v4224_v62 = vpop.f32.mrf.mxu1 }
0x255d   : > { %v4225_v63 = vadd.f32 %v4745_v60, %v4224_v62 }
0x255e   : > { %v5271_v3 = vpop.f32.mrf.mxu1 }
0x255f   : > { %v4233_v4 = vmul.f32 0.044715, %v4225_v63  ;;  %v4231_v27 = vmul.f32 0.5, %v4225_v63 }
0x2560   : > { %v4227_v6 = vpop.f32.mrf.mxu1 }
0x2561   : > { %v4235_v7 = vmul.f32 %v4233_v4, %v4225_v63  ;;  %v4228_v8 = vadd.f32 %v4745_v60, %v4227_v6 }
0x2562   : > { %v5272_v9 = vpop.f32.mrf.mxu1 }
0x2563   : > { %v4237_v10 = vmul.f32 %v4235_v7, %v4225_v63  ;;  %v4234_v11 = vmul.f32 0.044715, %v4228_v8  ;;  %v4232_v29 = vmul.f32 0.5, %v4228_v8 }
0x2565   : > { %v4239_v12 = vadd.f32 %v4237_v10, %v4225_v63  ;;  %v4236_v14 = vmul.f32 %v4234_v11, %v4228_v8 }
0x2567   : > { %v4241_v16 = vmul.f32 0.7978846, %v4239_v12  ;;  %v4238_v17 = vmul.f32 %v4236_v14, %v4228_v8 }
0x2569   : > { %5488 = vtanh.f32 %v4241_v16  ;;  %v4240_v39 = vadd.f32 %v4238_v17, %v4228_v8 }
0x256b   : > { %v4242_v18 = vmul.f32 0.7978846, %v4240_v39 }
0x256d   : > { %5490 = vtanh.f32 %v4242_v18 }
0x2576   : > { %v5489_v19 = vpop.eup %5488 }
0x2577   : > { %v4245_v23 = vadd.f32 1.0, %v5489_v19 }
0x2579   : > { %v4247_v20 = vmul.f32 %v4245_v23, %v4231_v27 }
0x257a   : > { %v5491_v25 = vpop.eup %5490 }
0x257b   : > { %v4246_v30 = vadd.f32 1.0, %v5491_v25 }
0x257d   : > { %v4248_v32 = vmul.f32 %v4246_v30, %v4232_v29 }
0x257f   : > { %v4249_v33 = vpack.c.bf16 %v4248_v32, %v4247_v20 }
0x2581   : > { %5282 = vmatmul.mubr.msk.bf16.vlgmr.msra.gmra.mxu0 %vm803_vm0, %v4249_v33 }
0x2641   : > { %v4328_v35 = vpop.f32.mrf.mxu0 }
0x2642   : > { %v4329_v37 = vadd.f32 %v4758_v34, %v4328_v35 }
0x2643   : > { %v5283_v38 = vpop.f32.mrf.mxu0 }
0x2644   : > { %v4335_v58 = vadd.f32 %v4329_v37, %v6466_v31 }
0x2645   : > { %v4331_v1 = vpop.f32.mrf.mxu0 }
0x2646   : > { %v4332_v22 = vadd.f32 %v4758_v34, %v4331_v1  ;;  %v4339_v40 = vsel %vm854_vm1, %v4335_v58, 0.0 }
0x2647   : > { %4340 = vadd.xlane.f32.xlu0 %v4339_v40  ;;  %v5284_v41 = vpop.f32.mrf.mxu0 }
0x2648   : > { %v4336_v42 = vadd.f32 %v4332_v22, %v6472_v36 }
0x264a   : > { %v4342_v26 = vsel %vm854_vm1, %v4336_v42, 0.0 }
0x264b   : > { %4343 = vadd.xlane.f32.xlu1 %v4342_v26 }
0x26d0   : > { %v4341_v43 = vpop.xlane.xlu0 %4340 }
0x26d1   : > { %v4345_v61 = vmul.f32 0.03125, %v4341_v43 }
0x26d3   : > { %v4347_v28 = vsub.f32 %v4335_v58, %v4345_v61 }
0x26d4   : > { %v4344_v13 = vpop.xlane.xlu1 %4343 }
0x26d5   : > { %v4346_v44 = vmul.f32 0.03125, %v4344_v13  ;;  %v4349_v45 = vmul.f32 %v4347_v28, %v4347_v28 }
0x26d7   : > { %v4348_v0 = vsub.f32 %v4336_v42, %v4346_v44  ;;  %v4351_v31 = vsel %vm854_vm1, %v4349_v45, 0.0 }
0x26d8   : > { %4352 = vadd.xlane.f32.xlu0 %v4351_v31 }
0x26d9   : > { %v4350_v15 = vmul.f32 %v4348_v0, %v4348_v0 }
0x26db   : > { %v4354_v2 = vsel %vm854_vm1, %v4350_v15, 0.0 }
0x26dc   : > { %4355 = vadd.xlane.f32.xlu1 %v4354_v2 }
0x2761   : > { %v4353_v21 = vpop.xlane.xlu0 %4352 }
0x2762   : > { %v4357_v36 = vmul.f32 0.03125, %v4353_v21 }
0x2764   : > { %v4359_v46 = vadd.f32 1e-06, %v4357_v36 }
0x2765   : > { %v4356_v47 = vpop.xlane.xlu1 %4355 }
0x2766   : > { %5492 = vrsqrt.f32 %v4359_v46  ;;  %v4358_v5 = vmul.f32 0.03125, %v4356_v47 }
0x2768   : > { %v4360_v24 = vadd.f32 1e-06, %v4358_v5 }
0x276a   : > { %5494 = vrsqrt.f32 %v4360_v24 }
0x2773   : > { %v5493_v48 = vpop.eup %5492 }
0x2774   : > { %v4363_v50 = vmul.f32 %v5493_v48, %v4347_v28 }
0x2776   : > { %v4371_v52 = vmul.f32 %v4764_v49, %v4363_v50 }
0x2777   : > { %v5495_v53 = vpop.eup %5494 }
0x2778   : > { %v4364_v54 = vmul.f32 %v5495_v53, %v4348_v0  ;;  %v4379_v55 = vadd.f32 %v4765_v51, %v4371_v52 }
0x277a   : > { %v4372_v56 = vmul.f32 %v4764_v49, %v4364_v54  ;;  %4381 = vst.msk [vmem:[%s679_s3] sm:$0xff] %vm854_vm1, %v4379_v55 }
0x277c   : > { %v4380_v57 = vadd.f32 %v4765_v51, %v4372_v56 }
0x277e   : > { %4382 = vst.msk [vmem:[%s679_s3 + $0x8] sm:$0xff] %vm854_vm1, %v4380_v57 }
0x277f   : > { %5509 = shalt.err (!%p5506_p3)
}
0x2780   : > { %s5510_s30 = scalar_lea.hbm %s6534_s8, 256  ;;  %s5514_s22 = scalar_lea.hbm %s6646_s0, 512 }
0x2781   : > { %p5511_p4 = scmp.ne.s32.totalorder %s6534_s8, %s5510_s30  ;;  %p5515_p9 = scmp.lt.s32.totalorder %s6534_s8, %s6646_s0 }
0x2782   : > { %p5516_p10 = scmp.lt.s32.totalorder %s5514_s22, %s5510_s30 }
0x2783   : > { %p5512_p7 = pnand %p5511_p4, %p5717_p5 }
0x2784   : > { %p5517_p11 = por %p5516_p10, %p5515_p9 }
0x2785   : > { %p5513_p8 = pneg %p5512_p7 }
0x2787   : > { %p5518_p12 = pnand %p5517_p11, %p5513_p8 }
0x2789   : > { %5521 = shalt.err (!%p5518_p12)
}
0x278a   : > { %s5562_s4 = smov 128   ;;  %s5563_s29 = smov 8  }
0x278b   : > { %5285 = dma.vmem_to_hbm [thread:$0]  (%p5717_p5), %s6536_s5, 256, %s6534_s8, %s6539_s1, %s5562_s4, %s5562_s4, %s5563_s29  }
0x278c PF: > { %s6647_s7 = sld [smem:[#allocation7_spill]] }
0x278d   : > { %s6648_s23 = sld [smem:[#allocation5_spill]] }
0x2792   : > { %p5291_p13 = scmp.ge.s32.totalorder %s6647_s7, 2 }
0x2793   : > { %s4412_s10 = sand.u32 1, %s6648_s23  }
0x2794   : > { %p5288_p0 = pnand %p5291_p13, %p5721_p6  ;;  %s4413_s9 = scalar_lea.sflag [#allocation3], %s4412_s10 }
0x2796   : > { %p5289_p1 = pneg %p5288_p0 }
0x2798   : > { %5539 = dma.done.wait (%p5289_p1), %s4413_s9, 256  }
0x2799   : > { %5541 = vsyncadd (%p5289_p1), %s4413_s9, 4294967040  ;;  %s6650_s30 = sld [smem:[#allocation8_spill]]  ;;  %s6653_s3 = smov %s5548_s28 }
0x279a   : > { %s6651_s22 = sld [smem:[#allocation6_spill]] }
0x279b   : > { %s6652_s29 = sld [smem:[#allocation9_spill]] }
0x279f   : > { %p32_p2 = scmp.ge.s32.totalorder %s6650_s30, 4  }
0x27a0   : > { %s6654_s28 = smov %s6651_s22 }
0x27a1   :  { %34 = sbr.rel (!%p32_p2) target bundleno = 16 (0x10), region = 201 }
0x27a6   :  { %4418 = vsyncpa [#allocation3], 1 }
0x27a7   :  { %4420 = vsyncpa [#allocation3 + $0x1], 1 }

</bundles_post_ra>
